<compile_context>
chip_gen: v5e
topology: v5e:2x2
jax: 0.10.0
libtpu: 0.0.40
codegen_flags: <defaults>
</compile_context>

<pallas_src>
import functools

import jax
import jax.numpy as jnp
import numpy as np
from jax.experimental import pallas as pl
from jax.experimental.pallas import tpu as pltpu


def _closest_factors(n):
    f = int(n ** 0.5)
    while n % f != 0:
        f -= 1
    return max(f, n // f), min(f, n // f)


def _round_up(x, m):
    return ((x + m - 1) // m) * m


# ----------------------------------------------------------------------------
# Fused Pallas kernel: conv1 (VPU) -> conv2 (MXU, bf16) -> linear (MXU, bf16).
# ----------------------------------------------------------------------------
def _subsample_kernel(x9_ref, w1_ref, b1_ref, w2_ref, b2_ref, wl_ref, bl_ref,
                      out_ref, *, ts2, fs2):
    # Per-tile block shapes:
    #   x9_ref : (9, 1, F1, T1wp) f32   conv1 taps, channels-first, time on lanes
    #   w1_ref : (9, C, 1, 1)     f32
    #   b1_ref : (C, 1, 1)        f32
    #   w2_ref : (9, C, C)        bf16  [tap, c_out, c_in]
    #   b2_ref : (C, 1)           f32
    #   wl_ref : (F2, Npad, C)    bf16  permuted+padded linear weight
    #   bl_ref : (Npad, 1)        f32
    #   out_ref: (1, Tt2, Npad)   f32
    Tt2 = out_ref.shape[1]
    F2 = wl_ref.shape[0]
    Npad = wl_ref.shape[1]
    C = w2_ref.shape[1]
    F1 = x9_ref.shape[2]
    T1wp = x9_ref.shape[3]

    xw = x9_ref[...]                      # (9, 1, F1, T1wp)
    w1 = w1_ref[...]                      # (9, C, 1, 1)

    # ---- conv1 + ReLU on the VPU: 9 shifted multiply-adds (no MXU) --------------
    h1 = jnp.zeros((C, F1, T1wp), jnp.float32)
    for k in range(9):
        h1 = h1 + w1[k] * xw[k]           # (C,1,1) * (1,F1,T1wp) -> (C,F1,T1wp)
    h1 = jnp.maximum(h1 + b1_ref[...], 0.0).astype(jnp.bfloat16)

    # ---- conv2 + ReLU + Linear, fused per output-feature column on the MXU ------
    w2 = w2_ref[...]                      # (9, C, C) bf16
    wl = wl_ref[...]                      # (F2, Npad, C) bf16
    tlen = ts2 * (Tt2 - 1) + 1
    y = jnp.zeros((Npad, Tt2), jnp.float32)
    for f2 in range(F2):
        acc = jnp.zeros((C, Tt2), jnp.float32)
        for dh in range(3):
            for dw in range(3):
                rhs = h1[:, f2 * fs2 + dw, dh:dh + tlen:ts2]      # (C, Tt2) bf16
                acc = acc + jnp.dot(w2[dh * 3 + dw], rhs,
                                    preferred_element_type=jnp.float32)
        hcol = jnp.maximum(acc + b2_ref[...], 0.0).astype(jnp.bfloat16)   # (C, Tt2)
        y = y + jnp.dot(wl[f2], hcol, preferred_element_type=jnp.float32)  # (Npad, Tt2)
    y = y + bl_ref[...]
    out_ref[0] = y.T.astype(out_ref.dtype)            # (Tt2, Npad) lane-dense store


# ----------------------------------------------------------------------------
# Parameter setup (PyTorch layout) and the forward pass.
# ----------------------------------------------------------------------------
def init_params(key, input_dim, output_dim, time_stride=2, feature_stride=2):
    ts1, ts2 = _closest_factors(time_stride)
    fs1, fs2 = _closest_factors(feature_stride)
    conv_out_dim = (input_dim - (3 - 1) - 1) // fs1 + 1
    conv_out_dim = (conv_out_dim - (3 - 1) - 1) // fs2 + 1
    conv_out_dim = output_dim * conv_out_dim
    k1, k2, k3, k4, k5, k6 = jax.random.split(key, 6)
    s = 0.1
    return {
        "output_dim": output_dim,
        "tstrides": (ts1, ts2),
        "fstrides": (fs1, fs2),
        "conv1_w": s * jax.random.normal(k1, (output_dim, 1, 3, 3), jnp.float32),
        "conv1_b": s * jax.random.normal(k2, (output_dim,), jnp.float32),
        "conv2_w": s * jax.random.normal(k3, (output_dim, output_dim, 3, 3), jnp.float32),
        "conv2_b": s * jax.random.normal(k4, (output_dim,), jnp.float32),
        "lin_w": s * jax.random.normal(k5, (output_dim, conv_out_dim), jnp.float32),
        "lin_b": s * jax.random.normal(k6, (output_dim,), jnp.float32),
    }


def conv2d_subsampling_forward(params, x, *, time_tile=128):
    B, T, D = x.shape
    C = params["output_dim"]
    ts1, ts2 = params["tstrides"]
    fs1, fs2 = params["fstrides"]

    T1 = (T - 3) // ts1 + 1
    F1 = (D - 3) // fs1 + 1
    T2 = (T1 - 3) // ts2 + 1
    F2 = (F1 - 3) // fs2 + 1
    Npad = _round_up(C, 128)

    if T2 <= time_tile:
        Tt2, nT2 = T2, 1
    else:
        Tt2 = max(8, (time_tile // 8) * 8)
        nT2 = pl.cdiv(T2, Tt2)
    T1w = ts2 * (Tt2 - 1) + 3            # conv1 output rows needed per time tile
    T1wp = _round_up(T1w, 128)           # time is the minor (lane) dim of the x taps

    xf = x.astype(jnp.float32)

    # 9 strided (dh, dw) tap views of the raw input; row t1 of tap k holds exactly the
    # input sample conv1 output row t1 needs for that tap.  (Cheap: ~2.25x of x.)
    views = []
    for dh in range(3):
        for dw in range(3):
            views.append(jax.lax.slice(
                xf, (0, dh, dw),
                (B, dh + ts1 * (T1 - 1) + 1, dw + fs1 * (F1 - 1) + 1),
                (1, ts1, fs1)))
    x9 = jnp.stack(views, axis=0)                          # (9, B, T1, F1)

    # Regroup conv1 rows into per-tile windows (clamped pad rows) -> no halos needed
    # in the BlockSpecs; then move time to the minor axis for lane-dense tiles.
    row_idx = np.minimum(
        (np.arange(nT2)[:, None] * (Tt2 * ts2) + np.arange(T1wp)[None, :]).reshape(-1),
        T1 - 1).astype(np.int32)
    x9e = jnp.take(x9, jnp.asarray(row_idx), axis=2)       # (9, B, nT2*T1wp, F1)
    x9e = jnp.swapaxes(x9e, 2, 3)                          # (9, B, F1, nT2*T1wp)

    # One-time weight re-layouts (tiny).
    w1v = jnp.transpose(params["conv1_w"][:, 0], (1, 2, 0)).reshape(9, C)[:, :, None, None]
    b1v = params["conv1_b"][:, None, None]                                  # (C,1,1)
    w2v = jnp.transpose(params["conv2_w"], (2, 3, 0, 1)).reshape(9, C, C)   # [k,co,ci]
    w2v = w2v.astype(jnp.bfloat16)
    b2v = params["conv2_b"][:, None]                                        # (C,1)
    # Fold PyTorch's transpose(1,2)+flatten (index c*F2+f) into the Linear weight,
    # and zero-pad the output channels up to a lane multiple.
    wl3 = jnp.transpose(params["lin_w"].reshape(C, C, F2), (2, 0, 1))       # (F2, Cout, Cin)
    wl3 = jnp.pad(wl3, ((0, 0), (0, Npad - C), (0, 0))).astype(jnp.bfloat16)
    blv = jnp.pad(params["lin_b"], (0, Npad - C))[:, None]                  # (Npad,1)

    flops = 2 * B * nT2 * (9 * C * F1 * T1wp + F2 * 9 * C * C * Tt2 + F2 * Npad * C * Tt2)
    bytes_accessed = (x9e.size * 4 + w1v.size * 4 + b1v.size * 4 + w2v.size * 2 +
                      b2v.size * 4 + wl3.size * 2 + blv.size * 4 +
                      B * nT2 * Tt2 * Npad * 4)

    out = pl.pallas_call(
        functools.partial(_subsample_kernel, ts2=ts2, fs2=fs2),
        out_shape=jax.ShapeDtypeStruct((B, nT2 * Tt2, Npad), jnp.float32),
        grid=(B, nT2),
        in_specs=[
            pl.BlockSpec((9, 1, F1, T1wp), lambda b, j: (0, b, 0, j)),
            pl.BlockSpec((9, C, 1, 1), lambda b, j: (0, 0, 0, 0)),
            pl.BlockSpec((C, 1, 1), lambda b, j: (0, 0, 0)),
            pl.BlockSpec((9, C, C), lambda b, j: (0, 0, 0)),
            pl.BlockSpec((C, 1), lambda b, j: (0, 0)),
            pl.BlockSpec((F2, Npad, C), lambda b, j: (0, 0, 0)),
            pl.BlockSpec((Npad, 1), lambda b, j: (0, 0)),
        ],
        out_specs=pl.BlockSpec((1, Tt2, Npad), lambda b, j: (b, j, 0)),
        compiler_params=pltpu.CompilerParams(
            dimension_semantics=("parallel", "parallel"),
            vmem_limit_bytes=64 * 1024 * 1024,
        ),
        cost_estimate=pl.CostEstimate(flops=flops, transcendentals=0,
                                      bytes_accessed=bytes_accessed),
    )(x9e, w1v, b1v, w2v, b2v, wl3, blv)

    return out[:, :T2, :C]


# ----------------------------------------------------------------------------
# Pure-JAX reference (lax.conv, NCHW like PyTorch) for correctness checking.
# ----------------------------------------------------------------------------
def reference_forward(params, x):
    dn = ("NCHW", "OIHW", "NCHW")
    ts1, ts2 = params["tstrides"]
    fs1, fs2 = params["fstrides"]
    h = x[:, None, :, :]
    h = jax.lax.conv_general_dilated(
        h, params["conv1_w"], (ts1, fs1), "VALID", dimension_numbers=dn,
        precision=jax.lax.Precision.HIGHEST)
    h = jnp.maximum(h + params["conv1_b"][None, :, None, None], 0.0)
    h = jax.lax.conv_general_dilated(
        h, params["conv2_w"], (ts2, fs2), "VALID", dimension_numbers=dn,
        precision=jax.lax.Precision.HIGHEST)
    h = jnp.maximum(h + params["conv2_b"][None, :, None, None], 0.0)
    b, c, t, f = h.shape
    h = jnp.transpose(h, (0, 2, 1, 3)).reshape(b, t, c * f)
    return (jnp.dot(h, params["lin_w"].T, precision=jax.lax.Precision.HIGHEST)
            + params["lin_b"])


if __name__ == "__main__":
    key = jax.random.PRNGKey(0)
    pkey, xkey, xkey2 = jax.random.split(key, 3)

    # Test 1: toy shapes consistent with the module (batch=2, seq=16, input_dim=16, output_dim=8).
    B, T, D, H = 2, 16, 16, 8
    params = init_params(pkey, input_dim=D, output_dim=H, time_stride=2, feature_stride=2)
    x = jax.random.normal(xkey, (B, T, D), jnp.float32)
    out = jax.block_until_ready(conv2d_subsampling_forward(params, x))
    assert out.shape == (B, 5, H), out.shape
    ref = reference_forward(params, x)
    np.testing.assert_allclose(np.asarray(out), np.asarray(ref), rtol=2e-2, atol=2e-2)

    # Test 2: longer sequence with a small time tile -> exercises the multi-tile path
    # (grid > 1 along time, padded last tile, clamped halo rows).
    x2 = jax.random.normal(xkey2, (B, 65, D), jnp.float32)
    out2 = jax.block_until_ready(conv2d_subsampling_forward(params, x2, time_tile=8))
    ref2 = reference_forward(params, x2)
    assert out2.shape == ref2.shape, (out2.shape, ref2.shape)
    np.testing.assert_allclose(np.asarray(out2), np.asarray(ref2), rtol=2e-2, atol=2e-2)

    print("KERNEL_OK")
</pallas_src>

<mosaic_0001>
module attributes {stable_mosaic.version = 11 : i64} {
  func.func @_subsample_kernel(%arg0: i32, %arg1: i32, %arg2: memref<9x1x7x128xf32, #tpu.memory_space<vmem>>, %arg3: memref<9x8x1x1xf32, #tpu.memory_space<vmem>>, %arg4: memref<8x1x1xf32, #tpu.memory_space<vmem>>, %arg5: memref<9x8x8xbf16, #tpu.memory_space<vmem>>, %arg6: memref<8x1xf32, #tpu.memory_space<vmem>>, %arg7: memref<5x128x8xbf16, #tpu.memory_space<vmem>>, %arg8: memref<128x1xf32, #tpu.memory_space<vmem>>, %arg9: memref<1x5x128xf32, #tpu.memory_space<vmem>>) attributes {dimension_semantics = [#tpu.dimension_semantics<parallel>, #tpu.dimension_semantics<parallel>], iteration_bounds = array<i64: 2, 1>, scalar_prefetch = 0 : i64, scratch_operands = 0 : i64, tpu.core_type = #tpu.core_type<tc>, window_params = [{transform_indices = @transform_0, window_bounds = array<i64: 9, 1, 7, 128>}, {pipeline_mode = #tpu.pipeline_mode<synchronous>, transform_indices = @transform_1, window_bounds = array<i64: 9, 8, 1, 1>}, {pipeline_mode = #tpu.pipeline_mode<synchronous>, transform_indices = @transform_2, window_bounds = array<i64: 8, 1, 1>}, {pipeline_mode = #tpu.pipeline_mode<synchronous>, transform_indices = @transform_3, window_bounds = array<i64: 9, 8, 8>}, {pipeline_mode = #tpu.pipeline_mode<synchronous>, transform_indices = @transform_4, window_bounds = array<i64: 8, 1>}, {pipeline_mode = #tpu.pipeline_mode<synchronous>, transform_indices = @transform_5, window_bounds = array<i64: 5, 128, 8>}, {pipeline_mode = #tpu.pipeline_mode<synchronous>, transform_indices = @transform_6, window_bounds = array<i64: 128, 1>}, {transform_indices = @transform_7, window_bounds = array<i64: 1, 5, 128>}]} {
    %c0 = arith.constant 0 : index
    %c0_0 = arith.constant 0 : index
    %c0_1 = arith.constant 0 : index
    %c0_2 = arith.constant 0 : index
    %0 = vector.load %arg2[%c0, %c0_0, %c0_1, %c0_2] : memref<9x1x7x128xf32, #tpu.memory_space<vmem>>, vector<9x1x7x128xf32>
    %c0_3 = arith.constant 0 : index
    %c0_4 = arith.constant 0 : index
    %c0_5 = arith.constant 0 : index
    %c0_6 = arith.constant 0 : index
    %1 = vector.load %arg3[%c0_3, %c0_4, %c0_5, %c0_6] : memref<9x8x1x1xf32, #tpu.memory_space<vmem>>, vector<9x8x1x1xf32>
    %cst = arith.constant 0.000000e+00 : f32
    %2 = vector.broadcast %cst : f32 to vector<8x7x128xf32>
    %3 = vector.extract_strided_slice %1 {offsets = [0, 0, 0, 0], sizes = [1, 8, 1, 1], strides = [1, 1, 1, 1]} : vector<9x8x1x1xf32> to vector<1x8x1x1xf32>
    %4 = vector.shape_cast %3 : vector<1x8x1x1xf32> to vector<8x1x1xf32>
    %5 = vector.extract_strided_slice %0 {offsets = [0, 0, 0, 0], sizes = [1, 1, 7, 128], strides = [1, 1, 1, 1]} : vector<9x1x7x128xf32> to vector<1x1x7x128xf32>
    %6 = vector.shape_cast %5 : vector<1x1x7x128xf32> to vector<1x7x128xf32>
    %7 = vector.broadcast %4 : vector<8x1x1xf32> to vector<8x7x128xf32>
    %8 = vector.broadcast %6 : vector<1x7x128xf32> to vector<8x7x128xf32>
    %9 = arith.mulf %7, %8 : vector<8x7x128xf32>
    %10 = arith.addf %2, %9 : vector<8x7x128xf32>
    %11 = vector.extract_strided_slice %1 {offsets = [1, 0, 0, 0], sizes = [1, 8, 1, 1], strides = [1, 1, 1, 1]} : vector<9x8x1x1xf32> to vector<1x8x1x1xf32>
    %12 = vector.shape_cast %11 : vector<1x8x1x1xf32> to vector<8x1x1xf32>
    %13 = vector.extract_strided_slice %0 {offsets = [1, 0, 0, 0], sizes = [1, 1, 7, 128], strides = [1, 1, 1, 1]} : vector<9x1x7x128xf32> to vector<1x1x7x128xf32>
    %14 = vector.shape_cast %13 : vector<1x1x7x128xf32> to vector<1x7x128xf32>
    %15 = vector.broadcast %12 : vector<8x1x1xf32> to vector<8x7x128xf32>
    %16 = vector.broadcast %14 : vector<1x7x128xf32> to vector<8x7x128xf32>
    %17 = arith.mulf %15, %16 : vector<8x7x128xf32>
    %18 = arith.addf %10, %17 : vector<8x7x128xf32>
    %19 = vector.extract_strided_slice %1 {offsets = [2, 0, 0, 0], sizes = [1, 8, 1, 1], strides = [1, 1, 1, 1]} : vector<9x8x1x1xf32> to vector<1x8x1x1xf32>
    %20 = vector.shape_cast %19 : vector<1x8x1x1xf32> to vector<8x1x1xf32>
    %21 = vector.extract_strided_slice %0 {offsets = [2, 0, 0, 0], sizes = [1, 1, 7, 128], strides = [1, 1, 1, 1]} : vector<9x1x7x128xf32> to vector<1x1x7x128xf32>
    %22 = vector.shape_cast %21 : vector<1x1x7x128xf32> to vector<1x7x128xf32>
    %23 = vector.broadcast %20 : vector<8x1x1xf32> to vector<8x7x128xf32>
    %24 = vector.broadcast %22 : vector<1x7x128xf32> to vector<8x7x128xf32>
    %25 = arith.mulf %23, %24 : vector<8x7x128xf32>
    %26 = arith.addf %18, %25 : vector<8x7x128xf32>
    %27 = vector.extract_strided_slice %1 {offsets = [3, 0, 0, 0], sizes = [1, 8, 1, 1], strides = [1, 1, 1, 1]} : vector<9x8x1x1xf32> to vector<1x8x1x1xf32>
    %28 = vector.shape_cast %27 : vector<1x8x1x1xf32> to vector<8x1x1xf32>
    %29 = vector.extract_strided_slice %0 {offsets = [3, 0, 0, 0], sizes = [1, 1, 7, 128], strides = [1, 1, 1, 1]} : vector<9x1x7x128xf32> to vector<1x1x7x128xf32>
    %30 = vector.shape_cast %29 : vector<1x1x7x128xf32> to vector<1x7x128xf32>
    %31 = vector.broadcast %28 : vector<8x1x1xf32> to vector<8x7x128xf32>
    %32 = vector.broadcast %30 : vector<1x7x128xf32> to vector<8x7x128xf32>
    %33 = arith.mulf %31, %32 : vector<8x7x128xf32>
    %34 = arith.addf %26, %33 : vector<8x7x128xf32>
    %35 = vector.extract_strided_slice %1 {offsets = [4, 0, 0, 0], sizes = [1, 8, 1, 1], strides = [1, 1, 1, 1]} : vector<9x8x1x1xf32> to vector<1x8x1x1xf32>
    %36 = vector.shape_cast %35 : vector<1x8x1x1xf32> to vector<8x1x1xf32>
    %37 = vector.extract_strided_slice %0 {offsets = [4, 0, 0, 0], sizes = [1, 1, 7, 128], strides = [1, 1, 1, 1]} : vector<9x1x7x128xf32> to vector<1x1x7x128xf32>
    %38 = vector.shape_cast %37 : vector<1x1x7x128xf32> to vector<1x7x128xf32>
    %39 = vector.broadcast %36 : vector<8x1x1xf32> to vector<8x7x128xf32>
    %40 = vector.broadcast %38 : vector<1x7x128xf32> to vector<8x7x128xf32>
    %41 = arith.mulf %39, %40 : vector<8x7x128xf32>
    %42 = arith.addf %34, %41 : vector<8x7x128xf32>
    %43 = vector.extract_strided_slice %1 {offsets = [5, 0, 0, 0], sizes = [1, 8, 1, 1], strides = [1, 1, 1, 1]} : vector<9x8x1x1xf32> to vector<1x8x1x1xf32>
    %44 = vector.shape_cast %43 : vector<1x8x1x1xf32> to vector<8x1x1xf32>
    %45 = vector.extract_strided_slice %0 {offsets = [5, 0, 0, 0], sizes = [1, 1, 7, 128], strides = [1, 1, 1, 1]} : vector<9x1x7x128xf32> to vector<1x1x7x128xf32>
    %46 = vector.shape_cast %45 : vector<1x1x7x128xf32> to vector<1x7x128xf32>
    %47 = vector.broadcast %44 : vector<8x1x1xf32> to vector<8x7x128xf32>
    %48 = vector.broadcast %46 : vector<1x7x128xf32> to vector<8x7x128xf32>
    %49 = arith.mulf %47, %48 : vector<8x7x128xf32>
    %50 = arith.addf %42, %49 : vector<8x7x128xf32>
    %51 = vector.extract_strided_slice %1 {offsets = [6, 0, 0, 0], sizes = [1, 8, 1, 1], strides = [1, 1, 1, 1]} : vector<9x8x1x1xf32> to vector<1x8x1x1xf32>
    %52 = vector.shape_cast %51 : vector<1x8x1x1xf32> to vector<8x1x1xf32>
    %53 = vector.extract_strided_slice %0 {offsets = [6, 0, 0, 0], sizes = [1, 1, 7, 128], strides = [1, 1, 1, 1]} : vector<9x1x7x128xf32> to vector<1x1x7x128xf32>
    %54 = vector.shape_cast %53 : vector<1x1x7x128xf32> to vector<1x7x128xf32>
    %55 = vector.broadcast %52 : vector<8x1x1xf32> to vector<8x7x128xf32>
    %56 = vector.broadcast %54 : vector<1x7x128xf32> to vector<8x7x128xf32>
    %57 = arith.mulf %55, %56 : vector<8x7x128xf32>
    %58 = arith.addf %50, %57 : vector<8x7x128xf32>
    %59 = vector.extract_strided_slice %1 {offsets = [7, 0, 0, 0], sizes = [1, 8, 1, 1], strides = [1, 1, 1, 1]} : vector<9x8x1x1xf32> to vector<1x8x1x1xf32>
    %60 = vector.shape_cast %59 : vector<1x8x1x1xf32> to vector<8x1x1xf32>
    %61 = vector.extract_strided_slice %0 {offsets = [7, 0, 0, 0], sizes = [1, 1, 7, 128], strides = [1, 1, 1, 1]} : vector<9x1x7x128xf32> to vector<1x1x7x128xf32>
    %62 = vector.shape_cast %61 : vector<1x1x7x128xf32> to vector<1x7x128xf32>
    %63 = vector.broadcast %60 : vector<8x1x1xf32> to vector<8x7x128xf32>
    %64 = vector.broadcast %62 : vector<1x7x128xf32> to vector<8x7x128xf32>
    %65 = arith.mulf %63, %64 : vector<8x7x128xf32>
    %66 = arith.addf %58, %65 : vector<8x7x128xf32>
    %67 = vector.extract_strided_slice %1 {offsets = [8, 0, 0, 0], sizes = [1, 8, 1, 1], strides = [1, 1, 1, 1]} : vector<9x8x1x1xf32> to vector<1x8x1x1xf32>
    %68 = vector.shape_cast %67 : vector<1x8x1x1xf32> to vector<8x1x1xf32>
    %69 = vector.extract_strided_slice %0 {offsets = [8, 0, 0, 0], sizes = [1, 1, 7, 128], strides = [1, 1, 1, 1]} : vector<9x1x7x128xf32> to vector<1x1x7x128xf32>
    %70 = vector.shape_cast %69 : vector<1x1x7x128xf32> to vector<1x7x128xf32>
    %71 = vector.broadcast %68 : vector<8x1x1xf32> to vector<8x7x128xf32>
    %72 = vector.broadcast %70 : vector<1x7x128xf32> to vector<8x7x128xf32>
    %73 = arith.mulf %71, %72 : vector<8x7x128xf32>
    %74 = arith.addf %66, %73 : vector<8x7x128xf32>
    %c0_7 = arith.constant 0 : index
    %c0_8 = arith.constant 0 : index
    %c0_9 = arith.constant 0 : index
    %75 = vector.load %arg4[%c0_7, %c0_8, %c0_9] : memref<8x1x1xf32, #tpu.memory_space<vmem>>, vector<8x1x1xf32>
    %76 = vector.broadcast %75 : vector<8x1x1xf32> to vector<8x7x128xf32>
    %77 = arith.addf %74, %76 : vector<8x7x128xf32>
    %cst_10 = arith.constant 0.000000e+00 : f32
    %78 = vector.broadcast %cst_10 : f32 to vector<8x7x128xf32>
    %79 = arith.maximumf %77, %78 : vector<8x7x128xf32>
    %80 = arith.truncf %79 : vector<8x7x128xf32> to vector<8x7x128xbf16>
    %c0_11 = arith.constant 0 : index
    %c0_12 = arith.constant 0 : index
    %c0_13 = arith.constant 0 : index
    %81 = vector.load %arg5[%c0_11, %c0_12, %c0_13] : memref<9x8x8xbf16, #tpu.memory_space<vmem>>, vector<9x8x8xbf16>
    %c0_14 = arith.constant 0 : index
    %c0_15 = arith.constant 0 : index
    %c0_16 = arith.constant 0 : index
    %82 = vector.load %arg7[%c0_14, %c0_15, %c0_16] : memref<5x128x8xbf16, #tpu.memory_space<vmem>>, vector<5x128x8xbf16>
    %cst_17 = arith.constant 0.000000e+00 : f32
    %83 = vector.broadcast %cst_17 : f32 to vector<128x5xf32>
    %cst_18 = arith.constant 0.000000e+00 : f32
    %84 = vector.broadcast %cst_18 : f32 to vector<8x5xf32>
    %85 = vector.extract_strided_slice %80 {offsets = [0, 0, 0], sizes = [8, 1, 5], strides = [1, 1, 1]} : vector<8x7x128xbf16> to vector<8x1x5xbf16>
    %86 = vector.shape_cast %85 : vector<8x1x5xbf16> to vector<8x5xbf16>
    %87 = vector.extract_strided_slice %81 {offsets = [0, 0, 0], sizes = [1, 8, 8], strides = [1, 1, 1]} : vector<9x8x8xbf16> to vector<1x8x8xbf16>
    %88 = vector.shape_cast %87 : vector<1x8x8xbf16> to vector<8x8xbf16>
    %cst_19 = arith.constant dense<0.000000e+00> : vector<8x5xf32>
    %89 = tpu.matmul %88, %86, %cst_19 {dimension_numbers = #tpu.dot_dimension_numbers<[1], [0], [0], [1], [0, 0, 1, 1], [], []>} : vector<8x8xbf16>, vector<8x5xbf16>, vector<8x5xf32> -> vector<8x5xf32>
    %90 = arith.addf %84, %89 : vector<8x5xf32>
    %91 = vector.extract_strided_slice %80 {offsets = [0, 1, 0], sizes = [8, 1, 5], strides = [1, 1, 1]} : vector<8x7x128xbf16> to vector<8x1x5xbf16>
    %92 = vector.shape_cast %91 : vector<8x1x5xbf16> to vector<8x5xbf16>
    %93 = vector.extract_strided_slice %81 {offsets = [1, 0, 0], sizes = [1, 8, 8], strides = [1, 1, 1]} : vector<9x8x8xbf16> to vector<1x8x8xbf16>
    %94 = vector.shape_cast %93 : vector<1x8x8xbf16> to vector<8x8xbf16>
    %cst_20 = arith.constant dense<0.000000e+00> : vector<8x5xf32>
    %95 = tpu.matmul %94, %92, %cst_20 {dimension_numbers = #tpu.dot_dimension_numbers<[1], [0], [0], [1], [0, 0, 1, 1], [], []>} : vector<8x8xbf16>, vector<8x5xbf16>, vector<8x5xf32> -> vector<8x5xf32>
    %96 = arith.addf %90, %95 : vector<8x5xf32>
    %97 = vector.extract_strided_slice %80 {offsets = [0, 2, 0], sizes = [8, 1, 5], strides = [1, 1, 1]} : vector<8x7x128xbf16> to vector<8x1x5xbf16>
    %98 = vector.shape_cast %97 : vector<8x1x5xbf16> to vector<8x5xbf16>
    %99 = vector.extract_strided_slice %81 {offsets = [2, 0, 0], sizes = [1, 8, 8], strides = [1, 1, 1]} : vector<9x8x8xbf16> to vector<1x8x8xbf16>
    %100 = vector.shape_cast %99 : vector<1x8x8xbf16> to vector<8x8xbf16>
    %cst_21 = arith.constant dense<0.000000e+00> : vector<8x5xf32>
    %101 = tpu.matmul %100, %98, %cst_21 {dimension_numbers = #tpu.dot_dimension_numbers<[1], [0], [0], [1], [0, 0, 1, 1], [], []>} : vector<8x8xbf16>, vector<8x5xbf16>, vector<8x5xf32> -> vector<8x5xf32>
    %102 = arith.addf %96, %101 : vector<8x5xf32>
    %103 = vector.extract_strided_slice %80 {offsets = [0, 0, 1], sizes = [8, 1, 5], strides = [1, 1, 1]} : vector<8x7x128xbf16> to vector<8x1x5xbf16>
    %104 = vector.shape_cast %103 : vector<8x1x5xbf16> to vector<8x5xbf16>
    %105 = vector.extract_strided_slice %81 {offsets = [3, 0, 0], sizes = [1, 8, 8], strides = [1, 1, 1]} : vector<9x8x8xbf16> to vector<1x8x8xbf16>
    %106 = vector.shape_cast %105 : vector<1x8x8xbf16> to vector<8x8xbf16>
    %cst_22 = arith.constant dense<0.000000e+00> : vector<8x5xf32>
    %107 = tpu.matmul %106, %104, %cst_22 {dimension_numbers = #tpu.dot_dimension_numbers<[1], [0], [0], [1], [0, 0, 1, 1], [], []>} : vector<8x8xbf16>, vector<8x5xbf16>, vector<8x5xf32> -> vector<8x5xf32>
    %108 = arith.addf %102, %107 : vector<8x5xf32>
    %109 = vector.extract_strided_slice %80 {offsets = [0, 1, 1], sizes = [8, 1, 5], strides = [1, 1, 1]} : vector<8x7x128xbf16> to vector<8x1x5xbf16>
    %110 = vector.shape_cast %109 : vector<8x1x5xbf16> to vector<8x5xbf16>
    %111 = vector.extract_strided_slice %81 {offsets = [4, 0, 0], sizes = [1, 8, 8], strides = [1, 1, 1]} : vector<9x8x8xbf16> to vector<1x8x8xbf16>
    %112 = vector.shape_cast %111 : vector<1x8x8xbf16> to vector<8x8xbf16>
    %cst_23 = arith.constant dense<0.000000e+00> : vector<8x5xf32>
    %113 = tpu.matmul %112, %110, %cst_23 {dimension_numbers = #tpu.dot_dimension_numbers<[1], [0], [0], [1], [0, 0, 1, 1], [], []>} : vector<8x8xbf16>, vector<8x5xbf16>, vector<8x5xf32> -> vector<8x5xf32>
    %114 = arith.addf %108, %113 : vector<8x5xf32>
    %115 = vector.extract_strided_slice %80 {offsets = [0, 2, 1], sizes = [8, 1, 5], strides = [1, 1, 1]} : vector<8x7x128xbf16> to vector<8x1x5xbf16>
    %116 = vector.shape_cast %115 : vector<8x1x5xbf16> to vector<8x5xbf16>
    %117 = vector.extract_strided_slice %81 {offsets = [5, 0, 0], sizes = [1, 8, 8], strides = [1, 1, 1]} : vector<9x8x8xbf16> to vector<1x8x8xbf16>
    %118 = vector.shape_cast %117 : vector<1x8x8xbf16> to vector<8x8xbf16>
    %cst_24 = arith.constant dense<0.000000e+00> : vector<8x5xf32>
    %119 = tpu.matmul %118, %116, %cst_24 {dimension_numbers = #tpu.dot_dimension_numbers<[1], [0], [0], [1], [0, 0, 1, 1], [], []>} : vector<8x8xbf16>, vector<8x5xbf16>, vector<8x5xf32> -> vector<8x5xf32>
    %120 = arith.addf %114, %119 : vector<8x5xf32>
    %121 = vector.extract_strided_slice %80 {offsets = [0, 0, 2], sizes = [8, 1, 5], strides = [1, 1, 1]} : vector<8x7x128xbf16> to vector<8x1x5xbf16>
    %122 = vector.shape_cast %121 : vector<8x1x5xbf16> to vector<8x5xbf16>
    %123 = vector.extract_strided_slice %81 {offsets = [6, 0, 0], sizes = [1, 8, 8], strides = [1, 1, 1]} : vector<9x8x8xbf16> to vector<1x8x8xbf16>
    %124 = vector.shape_cast %123 : vector<1x8x8xbf16> to vector<8x8xbf16>
    %cst_25 = arith.constant dense<0.000000e+00> : vector<8x5xf32>
    %125 = tpu.matmul %124, %122, %cst_25 {dimension_numbers = #tpu.dot_dimension_numbers<[1], [0], [0], [1], [0, 0, 1, 1], [], []>} : vector<8x8xbf16>, vector<8x5xbf16>, vector<8x5xf32> -> vector<8x5xf32>
    %126 = arith.addf %120, %125 : vector<8x5xf32>
    %127 = vector.extract_strided_slice %80 {offsets = [0, 1, 2], sizes = [8, 1, 5], strides = [1, 1, 1]} : vector<8x7x128xbf16> to vector<8x1x5xbf16>
    %128 = vector.shape_cast %127 : vector<8x1x5xbf16> to vector<8x5xbf16>
    %129 = vector.extract_strided_slice %81 {offsets = [7, 0, 0], sizes = [1, 8, 8], strides = [1, 1, 1]} : vector<9x8x8xbf16> to vector<1x8x8xbf16>
    %130 = vector.shape_cast %129 : vector<1x8x8xbf16> to vector<8x8xbf16>
    %cst_26 = arith.constant dense<0.000000e+00> : vector<8x5xf32>
    %131 = tpu.matmul %130, %128, %cst_26 {dimension_numbers = #tpu.dot_dimension_numbers<[1], [0], [0], [1], [0, 0, 1, 1], [], []>} : vector<8x8xbf16>, vector<8x5xbf16>, vector<8x5xf32> -> vector<8x5xf32>
    %132 = arith.addf %126, %131 : vector<8x5xf32>
    %133 = vector.extract_strided_slice %80 {offsets = [0, 2, 2], sizes = [8, 1, 5], strides = [1, 1, 1]} : vector<8x7x128xbf16> to vector<8x1x5xbf16>
    %134 = vector.shape_cast %133 : vector<8x1x5xbf16> to vector<8x5xbf16>
    %135 = vector.extract_strided_slice %81 {offsets = [8, 0, 0], sizes = [1, 8, 8], strides = [1, 1, 1]} : vector<9x8x8xbf16> to vector<1x8x8xbf16>
    %136 = vector.shape_cast %135 : vector<1x8x8xbf16> to vector<8x8xbf16>
    %cst_27 = arith.constant dense<0.000000e+00> : vector<8x5xf32>
    %137 = tpu.matmul %136, %134, %cst_27 {dimension_numbers = #tpu.dot_dimension_numbers<[1], [0], [0], [1], [0, 0, 1, 1], [], []>} : vector<8x8xbf16>, vector<8x5xbf16>, vector<8x5xf32> -> vector<8x5xf32>
    %138 = arith.addf %132, %137 : vector<8x5xf32>
    %c0_28 = arith.constant 0 : index
    %c0_29 = arith.constant 0 : index
    %139 = vector.load %arg6[%c0_28, %c0_29] : memref<8x1xf32, #tpu.memory_space<vmem>>, vector<8x1xf32>
    %140 = vector.broadcast %139 : vector<8x1xf32> to vector<8x5xf32>
    %141 = arith.addf %138, %140 : vector<8x5xf32>
    %cst_30 = arith.constant 0.000000e+00 : f32
    %142 = vector.broadcast %cst_30 : f32 to vector<8x5xf32>
    %143 = arith.maximumf %141, %142 : vector<8x5xf32>
    %144 = arith.truncf %143 : vector<8x5xf32> to vector<8x5xbf16>
    %145 = vector.extract_strided_slice %82 {offsets = [0, 0, 0], sizes = [1, 128, 8], strides = [1, 1, 1]} : vector<5x128x8xbf16> to vector<1x128x8xbf16>
    %146 = vector.shape_cast %145 : vector<1x128x8xbf16> to vector<128x8xbf16>
    %cst_31 = arith.constant dense<0.000000e+00> : vector<128x5xf32>
    %147 = tpu.matmul %146, %144, %cst_31 {dimension_numbers = #tpu.dot_dimension_numbers<[1], [0], [0], [1], [0, 0, 1, 1], [], []>} : vector<128x8xbf16>, vector<8x5xbf16>, vector<128x5xf32> -> vector<128x5xf32>
    %148 = arith.addf %83, %147 : vector<128x5xf32>
    %cst_32 = arith.constant 0.000000e+00 : f32
    %149 = vector.broadcast %cst_32 : f32 to vector<8x5xf32>
    %150 = vector.extract_strided_slice %80 {offsets = [0, 1, 0], sizes = [8, 1, 5], strides = [1, 1, 1]} : vector<8x7x128xbf16> to vector<8x1x5xbf16>
    %151 = vector.shape_cast %150 : vector<8x1x5xbf16> to vector<8x5xbf16>
    %152 = vector.extract_strided_slice %81 {offsets = [0, 0, 0], sizes = [1, 8, 8], strides = [1, 1, 1]} : vector<9x8x8xbf16> to vector<1x8x8xbf16>
    %153 = vector.shape_cast %152 : vector<1x8x8xbf16> to vector<8x8xbf16>
    %cst_33 = arith.constant dense<0.000000e+00> : vector<8x5xf32>
    %154 = tpu.matmul %153, %151, %cst_33 {dimension_numbers = #tpu.dot_dimension_numbers<[1], [0], [0], [1], [0, 0, 1, 1], [], []>} : vector<8x8xbf16>, vector<8x5xbf16>, vector<8x5xf32> -> vector<8x5xf32>
    %155 = arith.addf %149, %154 : vector<8x5xf32>
    %156 = vector.extract_strided_slice %80 {offsets = [0, 2, 0], sizes = [8, 1, 5], strides = [1, 1, 1]} : vector<8x7x128xbf16> to vector<8x1x5xbf16>
    %157 = vector.shape_cast %156 : vector<8x1x5xbf16> to vector<8x5xbf16>
    %158 = vector.extract_strided_slice %81 {offsets = [1, 0, 0], sizes = [1, 8, 8], strides = [1, 1, 1]} : vector<9x8x8xbf16> to vector<1x8x8xbf16>
    %159 = vector.shape_cast %158 : vector<1x8x8xbf16> to vector<8x8xbf16>
    %cst_34 = arith.constant dense<0.000000e+00> : vector<8x5xf32>
    %160 = tpu.matmul %159, %157, %cst_34 {dimension_numbers = #tpu.dot_dimension_numbers<[1], [0], [0], [1], [0, 0, 1, 1], [], []>} : vector<8x8xbf16>, vector<8x5xbf16>, vector<8x5xf32> -> vector<8x5xf32>
    %161 = arith.addf %155, %160 : vector<8x5xf32>
    %162 = vector.extract_strided_slice %80 {offsets = [0, 3, 0], sizes = [8, 1, 5], strides = [1, 1, 1]} : vector<8x7x128xbf16> to vector<8x1x5xbf16>
    %163 = vector.shape_cast %162 : vector<8x1x5xbf16> to vector<8x5xbf16>
    %164 = vector.extract_strided_slice %81 {offsets = [2, 0, 0], sizes = [1, 8, 8], strides = [1, 1, 1]} : vector<9x8x8xbf16> to vector<1x8x8xbf16>
    %165 = vector.shape_cast %164 : vector<1x8x8xbf16> to vector<8x8xbf16>
    %cst_35 = arith.constant dense<0.000000e+00> : vector<8x5xf32>
    %166 = tpu.matmul %165, %163, %cst_35 {dimension_numbers = #tpu.dot_dimension_numbers<[1], [0], [0], [1], [0, 0, 1, 1], [], []>} : vector<8x8xbf16>, vector<8x5xbf16>, vector<8x5xf32> -> vector<8x5xf32>
    %167 = arith.addf %161, %166 : vector<8x5xf32>
    %168 = vector.extract_strided_slice %80 {offsets = [0, 1, 1], sizes = [8, 1, 5], strides = [1, 1, 1]} : vector<8x7x128xbf16> to vector<8x1x5xbf16>
    %169 = vector.shape_cast %168 : vector<8x1x5xbf16> to vector<8x5xbf16>
    %170 = vector.extract_strided_slice %81 {offsets = [3, 0, 0], sizes = [1, 8, 8], strides = [1, 1, 1]} : vector<9x8x8xbf16> to vector<1x8x8xbf16>
    %171 = vector.shape_cast %170 : vector<1x8x8xbf16> to vector<8x8xbf16>
    %cst_36 = arith.constant dense<0.000000e+00> : vector<8x5xf32>
    %172 = tpu.matmul %171, %169, %cst_36 {dimension_numbers = #tpu.dot_dimension_numbers<[1], [0], [0], [1], [0, 0, 1, 1], [], []>} : vector<8x8xbf16>, vector<8x5xbf16>, vector<8x5xf32> -> vector<8x5xf32>
    %173 = arith.addf %167, %172 : vector<8x5xf32>
    %174 = vector.extract_strided_slice %80 {offsets = [0, 2, 1], sizes = [8, 1, 5], strides = [1, 1, 1]} : vector<8x7x128xbf16> to vector<8x1x5xbf16>
    %175 = vector.shape_cast %174 : vector<8x1x5xbf16> to vector<8x5xbf16>
    %176 = vector.extract_strided_slice %81 {offsets = [4, 0, 0], sizes = [1, 8, 8], strides = [1, 1, 1]} : vector<9x8x8xbf16> to vector<1x8x8xbf16>
    %177 = vector.shape_cast %176 : vector<1x8x8xbf16> to vector<8x8xbf16>
    %cst_37 = arith.constant dense<0.000000e+00> : vector<8x5xf32>
    %178 = tpu.matmul %177, %175, %cst_37 {dimension_numbers = #tpu.dot_dimension_numbers<[1], [0], [0], [1], [0, 0, 1, 1], [], []>} : vector<8x8xbf16>, vector<8x5xbf16>, vector<8x5xf32> -> vector<8x5xf32>
    %179 = arith.addf %173, %178 : vector<8x5xf32>
    %180 = vector.extract_strided_slice %80 {offsets = [0, 3, 1], sizes = [8, 1, 5], strides = [1, 1, 1]} : vector<8x7x128xbf16> to vector<8x1x5xbf16>
    %181 = vector.shape_cast %180 : vector<8x1x5xbf16> to vector<8x5xbf16>
    %182 = vector.extract_strided_slice %81 {offsets = [5, 0, 0], sizes = [1, 8, 8], strides = [1, 1, 1]} : vector<9x8x8xbf16> to vector<1x8x8xbf16>
    %183 = vector.shape_cast %182 : vector<1x8x8xbf16> to vector<8x8xbf16>
    %cst_38 = arith.constant dense<0.000000e+00> : vector<8x5xf32>
    %184 = tpu.matmul %183, %181, %cst_38 {dimension_numbers = #tpu.dot_dimension_numbers<[1], [0], [0], [1], [0, 0, 1, 1], [], []>} : vector<8x8xbf16>, vector<8x5xbf16>, vector<8x5xf32> -> vector<8x5xf32>
    %185 = arith.addf %179, %184 : vector<8x5xf32>
    %186 = vector.extract_strided_slice %80 {offsets = [0, 1, 2], sizes = [8, 1, 5], strides = [1, 1, 1]} : vector<8x7x128xbf16> to vector<8x1x5xbf16>
    %187 = vector.shape_cast %186 : vector<8x1x5xbf16> to vector<8x5xbf16>
    %188 = vector.extract_strided_slice %81 {offsets = [6, 0, 0], sizes = [1, 8, 8], strides = [1, 1, 1]} : vector<9x8x8xbf16> to vector<1x8x8xbf16>
    %189 = vector.shape_cast %188 : vector<1x8x8xbf16> to vector<8x8xbf16>
    %cst_39 = arith.constant dense<0.000000e+00> : vector<8x5xf32>
    %190 = tpu.matmul %189, %187, %cst_39 {dimension_numbers = #tpu.dot_dimension_numbers<[1], [0], [0], [1], [0, 0, 1, 1], [], []>} : vector<8x8xbf16>, vector<8x5xbf16>, vector<8x5xf32> -> vector<8x5xf32>
    %191 = arith.addf %185, %190 : vector<8x5xf32>
    %192 = vector.extract_strided_slice %80 {offsets = [0, 2, 2], sizes = [8, 1, 5], strides = [1, 1, 1]} : vector<8x7x128xbf16> to vector<8x1x5xbf16>
    %193 = vector.shape_cast %192 : vector<8x1x5xbf16> to vector<8x5xbf16>
    %194 = vector.extract_strided_slice %81 {offsets = [7, 0, 0], sizes = [1, 8, 8], strides = [1, 1, 1]} : vector<9x8x8xbf16> to vector<1x8x8xbf16>
    %195 = vector.shape_cast %194 : vector<1x8x8xbf16> to vector<8x8xbf16>
    %cst_40 = arith.constant dense<0.000000e+00> : vector<8x5xf32>
    %196 = tpu.matmul %195, %193, %cst_40 {dimension_numbers = #tpu.dot_dimension_numbers<[1], [0], [0], [1], [0, 0, 1, 1], [], []>} : vector<8x8xbf16>, vector<8x5xbf16>, vector<8x5xf32> -> vector<8x5xf32>
    %197 = arith.addf %191, %196 : vector<8x5xf32>
    %198 = vector.extract_strided_slice %80 {offsets = [0, 3, 2], sizes = [8, 1, 5], strides = [1, 1, 1]} : vector<8x7x128xbf16> to vector<8x1x5xbf16>
    %199 = vector.shape_cast %198 : vector<8x1x5xbf16> to vector<8x5xbf16>
    %200 = vector.extract_strided_slice %81 {offsets = [8, 0, 0], sizes = [1, 8, 8], strides = [1, 1, 1]} : vector<9x8x8xbf16> to vector<1x8x8xbf16>
    %201 = vector.shape_cast %200 : vector<1x8x8xbf16> to vector<8x8xbf16>
    %cst_41 = arith.constant dense<0.000000e+00> : vector<8x5xf32>
    %202 = tpu.matmul %201, %199, %cst_41 {dimension_numbers = #tpu.dot_dimension_numbers<[1], [0], [0], [1], [0, 0, 1, 1], [], []>} : vector<8x8xbf16>, vector<8x5xbf16>, vector<8x5xf32> -> vector<8x5xf32>
    %203 = arith.addf %197, %202 : vector<8x5xf32>
    %c0_42 = arith.constant 0 : index
    %c0_43 = arith.constant 0 : index
    %204 = vector.load %arg6[%c0_42, %c0_43] : memref<8x1xf32, #tpu.memory_space<vmem>>, vector<8x1xf32>
    %205 = vector.broadcast %204 : vector<8x1xf32> to vector<8x5xf32>
    %206 = arith.addf %203, %205 : vector<8x5xf32>
    %cst_44 = arith.constant 0.000000e+00 : f32
    %207 = vector.broadcast %cst_44 : f32 to vector<8x5xf32>
    %208 = arith.maximumf %206, %207 : vector<8x5xf32>
    %209 = arith.truncf %208 : vector<8x5xf32> to vector<8x5xbf16>
    %210 = vector.extract_strided_slice %82 {offsets = [1, 0, 0], sizes = [1, 128, 8], strides = [1, 1, 1]} : vector<5x128x8xbf16> to vector<1x128x8xbf16>
    %211 = vector.shape_cast %210 : vector<1x128x8xbf16> to vector<128x8xbf16>
    %cst_45 = arith.constant dense<0.000000e+00> : vector<128x5xf32>
    %212 = tpu.matmul %211, %209, %cst_45 {dimension_numbers = #tpu.dot_dimension_numbers<[1], [0], [0], [1], [0, 0, 1, 1], [], []>} : vector<128x8xbf16>, vector<8x5xbf16>, vector<128x5xf32> -> vector<128x5xf32>
    %213 = arith.addf %148, %212 : vector<128x5xf32>
    %cst_46 = arith.constant 0.000000e+00 : f32
    %214 = vector.broadcast %cst_46 : f32 to vector<8x5xf32>
    %215 = vector.extract_strided_slice %80 {offsets = [0, 2, 0], sizes = [8, 1, 5], strides = [1, 1, 1]} : vector<8x7x128xbf16> to vector<8x1x5xbf16>
    %216 = vector.shape_cast %215 : vector<8x1x5xbf16> to vector<8x5xbf16>
    %217 = vector.extract_strided_slice %81 {offsets = [0, 0, 0], sizes = [1, 8, 8], strides = [1, 1, 1]} : vector<9x8x8xbf16> to vector<1x8x8xbf16>
    %218 = vector.shape_cast %217 : vector<1x8x8xbf16> to vector<8x8xbf16>
    %cst_47 = arith.constant dense<0.000000e+00> : vector<8x5xf32>
    %219 = tpu.matmul %218, %216, %cst_47 {dimension_numbers = #tpu.dot_dimension_numbers<[1], [0], [0], [1], [0, 0, 1, 1], [], []>} : vector<8x8xbf16>, vector<8x5xbf16>, vector<8x5xf32> -> vector<8x5xf32>
    %220 = arith.addf %214, %219 : vector<8x5xf32>
    %221 = vector.extract_strided_slice %80 {offsets = [0, 3, 0], sizes = [8, 1, 5], strides = [1, 1, 1]} : vector<8x7x128xbf16> to vector<8x1x5xbf16>
    %222 = vector.shape_cast %221 : vector<8x1x5xbf16> to vector<8x5xbf16>
    %223 = vector.extract_strided_slice %81 {offsets = [1, 0, 0], sizes = [1, 8, 8], strides = [1, 1, 1]} : vector<9x8x8xbf16> to vector<1x8x8xbf16>
    %224 = vector.shape_cast %223 : vector<1x8x8xbf16> to vector<8x8xbf16>
    %cst_48 = arith.constant dense<0.000000e+00> : vector<8x5xf32>
    %225 = tpu.matmul %224, %222, %cst_48 {dimension_numbers = #tpu.dot_dimension_numbers<[1], [0], [0], [1], [0, 0, 1, 1], [], []>} : vector<8x8xbf16>, vector<8x5xbf16>, vector<8x5xf32> -> vector<8x5xf32>
    %226 = arith.addf %220, %225 : vector<8x5xf32>
    %227 = vector.extract_strided_slice %80 {offsets = [0, 4, 0], sizes = [8, 1, 5], strides = [1, 1, 1]} : vector<8x7x128xbf16> to vector<8x1x5xbf16>
    %228 = vector.shape_cast %227 : vector<8x1x5xbf16> to vector<8x5xbf16>
    %229 = vector.extract_strided_slice %81 {offsets = [2, 0, 0], sizes = [1, 8, 8], strides = [1, 1, 1]} : vector<9x8x8xbf16> to vector<1x8x8xbf16>
    %230 = vector.shape_cast %229 : vector<1x8x8xbf16> to vector<8x8xbf16>
    %cst_49 = arith.constant dense<0.000000e+00> : vector<8x5xf32>
    %231 = tpu.matmul %230, %228, %cst_49 {dimension_numbers = #tpu.dot_dimension_numbers<[1], [0], [0], [1], [0, 0, 1, 1], [], []>} : vector<8x8xbf16>, vector<8x5xbf16>, vector<8x5xf32> -> vector<8x5xf32>
    %232 = arith.addf %226, %231 : vector<8x5xf32>
    %233 = vector.extract_strided_slice %80 {offsets = [0, 2, 1], sizes = [8, 1, 5], strides = [1, 1, 1]} : vector<8x7x128xbf16> to vector<8x1x5xbf16>
    %234 = vector.shape_cast %233 : vector<8x1x5xbf16> to vector<8x5xbf16>
    %235 = vector.extract_strided_slice %81 {offsets = [3, 0, 0], sizes = [1, 8, 8], strides = [1, 1, 1]} : vector<9x8x8xbf16> to vector<1x8x8xbf16>
    %236 = vector.shape_cast %235 : vector<1x8x8xbf16> to vector<8x8xbf16>
    %cst_50 = arith.constant dense<0.000000e+00> : vector<8x5xf32>
    %237 = tpu.matmul %236, %234, %cst_50 {dimension_numbers = #tpu.dot_dimension_numbers<[1], [0], [0], [1], [0, 0, 1, 1], [], []>} : vector<8x8xbf16>, vector<8x5xbf16>, vector<8x5xf32> -> vector<8x5xf32>
    %238 = arith.addf %232, %237 : vector<8x5xf32>
    %239 = vector.extract_strided_slice %80 {offsets = [0, 3, 1], sizes = [8, 1, 5], strides = [1, 1, 1]} : vector<8x7x128xbf16> to vector<8x1x5xbf16>
    %240 = vector.shape_cast %239 : vector<8x1x5xbf16> to vector<8x5xbf16>
    %241 = vector.extract_strided_slice %81 {offsets = [4, 0, 0], sizes = [1, 8, 8], strides = [1, 1, 1]} : vector<9x8x8xbf16> to vector<1x8x8xbf16>
    %242 = vector.shape_cast %241 : vector<1x8x8xbf16> to vector<8x8xbf16>
    %cst_51 = arith.constant dense<0.000000e+00> : vector<8x5xf32>
    %243 = tpu.matmul %242, %240, %cst_51 {dimension_numbers = #tpu.dot_dimension_numbers<[1], [0], [0], [1], [0, 0, 1, 1], [], []>} : vector<8x8xbf16>, vector<8x5xbf16>, vector<8x5xf32> -> vector<8x5xf32>
    %244 = arith.addf %238, %243 : vector<8x5xf32>
    %245 = vector.extract_strided_slice %80 {offsets = [0, 4, 1], sizes = [8, 1, 5], strides = [1, 1, 1]} : vector<8x7x128xbf16> to vector<8x1x5xbf16>
    %246 = vector.shape_cast %245 : vector<8x1x5xbf16> to vector<8x5xbf16>
    %247 = vector.extract_strided_slice %81 {offsets = [5, 0, 0], sizes = [1, 8, 8], strides = [1, 1, 1]} : vector<9x8x8xbf16> to vector<1x8x8xbf16>
    %248 = vector.shape_cast %247 : vector<1x8x8xbf16> to vector<8x8xbf16>
    %cst_52 = arith.constant dense<0.000000e+00> : vector<8x5xf32>
    %249 = tpu.matmul %248, %246, %cst_52 {dimension_numbers = #tpu.dot_dimension_numbers<[1], [0], [0], [1], [0, 0, 1, 1], [], []>} : vector<8x8xbf16>, vector<8x5xbf16>, vector<8x5xf32> -> vector<8x5xf32>
    %250 = arith.addf %244, %249 : vector<8x5xf32>
    %251 = vector.extract_strided_slice %80 {offsets = [0, 2, 2], sizes = [8, 1, 5], strides = [1, 1, 1]} : vector<8x7x128xbf16> to vector<8x1x5xbf16>
    %252 = vector.shape_cast %251 : vector<8x1x5xbf16> to vector<8x5xbf16>
    %253 = vector.extract_strided_slice %81 {offsets = [6, 0, 0], sizes = [1, 8, 8], strides = [1, 1, 1]} : vector<9x8x8xbf16> to vector<1x8x8xbf16>
    %254 = vector.shape_cast %253 : vector<1x8x8xbf16> to vector<8x8xbf16>
    %cst_53 = arith.constant dense<0.000000e+00> : vector<8x5xf32>
    %255 = tpu.matmul %254, %252, %cst_53 {dimension_numbers = #tpu.dot_dimension_numbers<[1], [0], [0], [1], [0, 0, 1, 1], [], []>} : vector<8x8xbf16>, vector<8x5xbf16>, vector<8x5xf32> -> vector<8x5xf32>
    %256 = arith.addf %250, %255 : vector<8x5xf32>
    %257 = vector.extract_strided_slice %80 {offsets = [0, 3, 2], sizes = [8, 1, 5], strides = [1, 1, 1]} : vector<8x7x128xbf16> to vector<8x1x5xbf16>
    %258 = vector.shape_cast %257 : vector<8x1x5xbf16> to vector<8x5xbf16>
    %259 = vector.extract_strided_slice %81 {offsets = [7, 0, 0], sizes = [1, 8, 8], strides = [1, 1, 1]} : vector<9x8x8xbf16> to vector<1x8x8xbf16>
    %260 = vector.shape_cast %259 : vector<1x8x8xbf16> to vector<8x8xbf16>
    %cst_54 = arith.constant dense<0.000000e+00> : vector<8x5xf32>
    %261 = tpu.matmul %260, %258, %cst_54 {dimension_numbers = #tpu.dot_dimension_numbers<[1], [0], [0], [1], [0, 0, 1, 1], [], []>} : vector<8x8xbf16>, vector<8x5xbf16>, vector<8x5xf32> -> vector<8x5xf32>
    %262 = arith.addf %256, %261 : vector<8x5xf32>
    %263 = vector.extract_strided_slice %80 {offsets = [0, 4, 2], sizes = [8, 1, 5], strides = [1, 1, 1]} : vector<8x7x128xbf16> to vector<8x1x5xbf16>
    %264 = vector.shape_cast %263 : vector<8x1x5xbf16> to vector<8x5xbf16>
    %265 = vector.extract_strided_slice %81 {offsets = [8, 0, 0], sizes = [1, 8, 8], strides = [1, 1, 1]} : vector<9x8x8xbf16> to vector<1x8x8xbf16>
    %266 = vector.shape_cast %265 : vector<1x8x8xbf16> to vector<8x8xbf16>
    %cst_55 = arith.constant dense<0.000000e+00> : vector<8x5xf32>
    %267 = tpu.matmul %266, %264, %cst_55 {dimension_numbers = #tpu.dot_dimension_numbers<[1], [0], [0], [1], [0, 0, 1, 1], [], []>} : vector<8x8xbf16>, vector<8x5xbf16>, vector<8x5xf32> -> vector<8x5xf32>
    %268 = arith.addf %262, %267 : vector<8x5xf32>
    %c0_56 = arith.constant 0 : index
    %c0_57 = arith.constant 0 : index
    %269 = vector.load %arg6[%c0_56, %c0_57] : memref<8x1xf32, #tpu.memory_space<vmem>>, vector<8x1xf32>
    %270 = vector.broadcast %269 : vector<8x1xf32> to vector<8x5xf32>
    %271 = arith.addf %268, %270 : vector<8x5xf32>
    %cst_58 = arith.constant 0.000000e+00 : f32
    %272 = vector.broadcast %cst_58 : f32 to vector<8x5xf32>
    %273 = arith.maximumf %271, %272 : vector<8x5xf32>
    %274 = arith.truncf %273 : vector<8x5xf32> to vector<8x5xbf16>
    %275 = vector.extract_strided_slice %82 {offsets = [2, 0, 0], sizes = [1, 128, 8], strides = [1, 1, 1]} : vector<5x128x8xbf16> to vector<1x128x8xbf16>
    %276 = vector.shape_cast %275 : vector<1x128x8xbf16> to vector<128x8xbf16>
    %cst_59 = arith.constant dense<0.000000e+00> : vector<128x5xf32>
    %277 = tpu.matmul %276, %274, %cst_59 {dimension_numbers = #tpu.dot_dimension_numbers<[1], [0], [0], [1], [0, 0, 1, 1], [], []>} : vector<128x8xbf16>, vector<8x5xbf16>, vector<128x5xf32> -> vector<128x5xf32>
    %278 = arith.addf %213, %277 : vector<128x5xf32>
    %cst_60 = arith.constant 0.000000e+00 : f32
    %279 = vector.broadcast %cst_60 : f32 to vector<8x5xf32>
    %280 = vector.extract_strided_slice %80 {offsets = [0, 3, 0], sizes = [8, 1, 5], strides = [1, 1, 1]} : vector<8x7x128xbf16> to vector<8x1x5xbf16>
    %281 = vector.shape_cast %280 : vector<8x1x5xbf16> to vector<8x5xbf16>
    %282 = vector.extract_strided_slice %81 {offsets = [0, 0, 0], sizes = [1, 8, 8], strides = [1, 1, 1]} : vector<9x8x8xbf16> to vector<1x8x8xbf16>
    %283 = vector.shape_cast %282 : vector<1x8x8xbf16> to vector<8x8xbf16>
    %cst_61 = arith.constant dense<0.000000e+00> : vector<8x5xf32>
    %284 = tpu.matmul %283, %281, %cst_61 {dimension_numbers = #tpu.dot_dimension_numbers<[1], [0], [0], [1], [0, 0, 1, 1], [], []>} : vector<8x8xbf16>, vector<8x5xbf16>, vector<8x5xf32> -> vector<8x5xf32>
    %285 = arith.addf %279, %284 : vector<8x5xf32>
    %286 = vector.extract_strided_slice %80 {offsets = [0, 4, 0], sizes = [8, 1, 5], strides = [1, 1, 1]} : vector<8x7x128xbf16> to vector<8x1x5xbf16>
    %287 = vector.shape_cast %286 : vector<8x1x5xbf16> to vector<8x5xbf16>
    %288 = vector.extract_strided_slice %81 {offsets = [1, 0, 0], sizes = [1, 8, 8], strides = [1, 1, 1]} : vector<9x8x8xbf16> to vector<1x8x8xbf16>
    %289 = vector.shape_cast %288 : vector<1x8x8xbf16> to vector<8x8xbf16>
    %cst_62 = arith.constant dense<0.000000e+00> : vector<8x5xf32>
    %290 = tpu.matmul %289, %287, %cst_62 {dimension_numbers = #tpu.dot_dimension_numbers<[1], [0], [0], [1], [0, 0, 1, 1], [], []>} : vector<8x8xbf16>, vector<8x5xbf16>, vector<8x5xf32> -> vector<8x5xf32>
    %291 = arith.addf %285, %290 : vector<8x5xf32>
    %292 = vector.extract_strided_slice %80 {offsets = [0, 5, 0], sizes = [8, 1, 5], strides = [1, 1, 1]} : vector<8x7x128xbf16> to vector<8x1x5xbf16>
    %293 = vector.shape_cast %292 : vector<8x1x5xbf16> to vector<8x5xbf16>
    %294 = vector.extract_strided_slice %81 {offsets = [2, 0, 0], sizes = [1, 8, 8], strides = [1, 1, 1]} : vector<9x8x8xbf16> to vector<1x8x8xbf16>
    %295 = vector.shape_cast %294 : vector<1x8x8xbf16> to vector<8x8xbf16>
    %cst_63 = arith.constant dense<0.000000e+00> : vector<8x5xf32>
    %296 = tpu.matmul %295, %293, %cst_63 {dimension_numbers = #tpu.dot_dimension_numbers<[1], [0], [0], [1], [0, 0, 1, 1], [], []>} : vector<8x8xbf16>, vector<8x5xbf16>, vector<8x5xf32> -> vector<8x5xf32>
    %297 = arith.addf %291, %296 : vector<8x5xf32>
    %298 = vector.extract_strided_slice %80 {offsets = [0, 3, 1], sizes = [8, 1, 5], strides = [1, 1, 1]} : vector<8x7x128xbf16> to vector<8x1x5xbf16>
    %299 = vector.shape_cast %298 : vector<8x1x5xbf16> to vector<8x5xbf16>
    %300 = vector.extract_strided_slice %81 {offsets = [3, 0, 0], sizes = [1, 8, 8], strides = [1, 1, 1]} : vector<9x8x8xbf16> to vector<1x8x8xbf16>
    %301 = vector.shape_cast %300 : vector<1x8x8xbf16> to vector<8x8xbf16>
    %cst_64 = arith.constant dense<0.000000e+00> : vector<8x5xf32>
    %302 = tpu.matmul %301, %299, %cst_64 {dimension_numbers = #tpu.dot_dimension_numbers<[1], [0], [0], [1], [0, 0, 1, 1], [], []>} : vector<8x8xbf16>, vector<8x5xbf16>, vector<8x5xf32> -> vector<8x5xf32>
    %303 = arith.addf %297, %302 : vector<8x5xf32>
    %304 = vector.extract_strided_slice %80 {offsets = [0, 4, 1], sizes = [8, 1, 5], strides = [1, 1, 1]} : vector<8x7x128xbf16> to vector<8x1x5xbf16>
    %305 = vector.shape_cast %304 : vector<8x1x5xbf16> to vector<8x5xbf16>
    %306 = vector.extract_strided_slice %81 {offsets = [4, 0, 0], sizes = [1, 8, 8], strides = [1, 1, 1]} : vector<9x8x8xbf16> to vector<1x8x8xbf16>
    %307 = vector.shape_cast %306 : vector<1x8x8xbf16> to vector<8x8xbf16>
    %cst_65 = arith.constant dense<0.000000e+00> : vector<8x5xf32>
    %308 = tpu.matmul %307, %305, %cst_65 {dimension_numbers = #tpu.dot_dimension_numbers<[1], [0], [0], [1], [0, 0, 1, 1], [], []>} : vector<8x8xbf16>, vector<8x5xbf16>, vector<8x5xf32> -> vector<8x5xf32>
    %309 = arith.addf %303, %308 : vector<8x5xf32>
    %310 = vector.extract_strided_slice %80 {offsets = [0, 5, 1], sizes = [8, 1, 5], strides = [1, 1, 1]} : vector<8x7x128xbf16> to vector<8x1x5xbf16>
    %311 = vector.shape_cast %310 : vector<8x1x5xbf16> to vector<8x5xbf16>
    %312 = vector.extract_strided_slice %81 {offsets = [5, 0, 0], sizes = [1, 8, 8], strides = [1, 1, 1]} : vector<9x8x8xbf16> to vector<1x8x8xbf16>
    %313 = vector.shape_cast %312 : vector<1x8x8xbf16> to vector<8x8xbf16>
    %cst_66 = arith.constant dense<0.000000e+00> : vector<8x5xf32>
    %314 = tpu.matmul %313, %311, %cst_66 {dimension_numbers = #tpu.dot_dimension_numbers<[1], [0], [0], [1], [0, 0, 1, 1], [], []>} : vector<8x8xbf16>, vector<8x5xbf16>, vector<8x5xf32> -> vector<8x5xf32>
    %315 = arith.addf %309, %314 : vector<8x5xf32>
    %316 = vector.extract_strided_slice %80 {offsets = [0, 3, 2], sizes = [8, 1, 5], strides = [1, 1, 1]} : vector<8x7x128xbf16> to vector<8x1x5xbf16>
    %317 = vector.shape_cast %316 : vector<8x1x5xbf16> to vector<8x5xbf16>
    %318 = vector.extract_strided_slice %81 {offsets = [6, 0, 0], sizes = [1, 8, 8], strides = [1, 1, 1]} : vector<9x8x8xbf16> to vector<1x8x8xbf16>
    %319 = vector.shape_cast %318 : vector<1x8x8xbf16> to vector<8x8xbf16>
    %cst_67 = arith.constant dense<0.000000e+00> : vector<8x5xf32>
    %320 = tpu.matmul %319, %317, %cst_67 {dimension_numbers = #tpu.dot_dimension_numbers<[1], [0], [0], [1], [0, 0, 1, 1], [], []>} : vector<8x8xbf16>, vector<8x5xbf16>, vector<8x5xf32> -> vector<8x5xf32>
    %321 = arith.addf %315, %320 : vector<8x5xf32>
    %322 = vector.extract_strided_slice %80 {offsets = [0, 4, 2], sizes = [8, 1, 5], strides = [1, 1, 1]} : vector<8x7x128xbf16> to vector<8x1x5xbf16>
    %323 = vector.shape_cast %322 : vector<8x1x5xbf16> to vector<8x5xbf16>
    %324 = vector.extract_strided_slice %81 {offsets = [7, 0, 0], sizes = [1, 8, 8], strides = [1, 1, 1]} : vector<9x8x8xbf16> to vector<1x8x8xbf16>
    %325 = vector.shape_cast %324 : vector<1x8x8xbf16> to vector<8x8xbf16>
    %cst_68 = arith.constant dense<0.000000e+00> : vector<8x5xf32>
    %326 = tpu.matmul %325, %323, %cst_68 {dimension_numbers = #tpu.dot_dimension_numbers<[1], [0], [0], [1], [0, 0, 1, 1], [], []>} : vector<8x8xbf16>, vector<8x5xbf16>, vector<8x5xf32> -> vector<8x5xf32>
    %327 = arith.addf %321, %326 : vector<8x5xf32>
    %328 = vector.extract_strided_slice %80 {offsets = [0, 5, 2], sizes = [8, 1, 5], strides = [1, 1, 1]} : vector<8x7x128xbf16> to vector<8x1x5xbf16>
    %329 = vector.shape_cast %328 : vector<8x1x5xbf16> to vector<8x5xbf16>
    %330 = vector.extract_strided_slice %81 {offsets = [8, 0, 0], sizes = [1, 8, 8], strides = [1, 1, 1]} : vector<9x8x8xbf16> to vector<1x8x8xbf16>
    %331 = vector.shape_cast %330 : vector<1x8x8xbf16> to vector<8x8xbf16>
    %cst_69 = arith.constant dense<0.000000e+00> : vector<8x5xf32>
    %332 = tpu.matmul %331, %329, %cst_69 {dimension_numbers = #tpu.dot_dimension_numbers<[1], [0], [0], [1], [0, 0, 1, 1], [], []>} : vector<8x8xbf16>, vector<8x5xbf16>, vector<8x5xf32> -> vector<8x5xf32>
    %333 = arith.addf %327, %332 : vector<8x5xf32>
    %c0_70 = arith.constant 0 : index
    %c0_71 = arith.constant 0 : index
    %334 = vector.load %arg6[%c0_70, %c0_71] : memref<8x1xf32, #tpu.memory_space<vmem>>, vector<8x1xf32>
    %335 = vector.broadcast %334 : vector<8x1xf32> to vector<8x5xf32>
    %336 = arith.addf %333, %335 : vector<8x5xf32>
    %cst_72 = arith.constant 0.000000e+00 : f32
    %337 = vector.broadcast %cst_72 : f32 to vector<8x5xf32>
    %338 = arith.maximumf %336, %337 : vector<8x5xf32>
    %339 = arith.truncf %338 : vector<8x5xf32> to vector<8x5xbf16>
    %340 = vector.extract_strided_slice %82 {offsets = [3, 0, 0], sizes = [1, 128, 8], strides = [1, 1, 1]} : vector<5x128x8xbf16> to vector<1x128x8xbf16>
    %341 = vector.shape_cast %340 : vector<1x128x8xbf16> to vector<128x8xbf16>
    %cst_73 = arith.constant dense<0.000000e+00> : vector<128x5xf32>
    %342 = tpu.matmul %341, %339, %cst_73 {dimension_numbers = #tpu.dot_dimension_numbers<[1], [0], [0], [1], [0, 0, 1, 1], [], []>} : vector<128x8xbf16>, vector<8x5xbf16>, vector<128x5xf32> -> vector<128x5xf32>
    %343 = arith.addf %278, %342 : vector<128x5xf32>
    %cst_74 = arith.constant 0.000000e+00 : f32
    %344 = vector.broadcast %cst_74 : f32 to vector<8x5xf32>
    %345 = vector.extract_strided_slice %80 {offsets = [0, 4, 0], sizes = [8, 1, 5], strides = [1, 1, 1]} : vector<8x7x128xbf16> to vector<8x1x5xbf16>
    %346 = vector.shape_cast %345 : vector<8x1x5xbf16> to vector<8x5xbf16>
    %347 = vector.extract_strided_slice %81 {offsets = [0, 0, 0], sizes = [1, 8, 8], strides = [1, 1, 1]} : vector<9x8x8xbf16> to vector<1x8x8xbf16>
    %348 = vector.shape_cast %347 : vector<1x8x8xbf16> to vector<8x8xbf16>
    %cst_75 = arith.constant dense<0.000000e+00> : vector<8x5xf32>
    %349 = tpu.matmul %348, %346, %cst_75 {dimension_numbers = #tpu.dot_dimension_numbers<[1], [0], [0], [1], [0, 0, 1, 1], [], []>} : vector<8x8xbf16>, vector<8x5xbf16>, vector<8x5xf32> -> vector<8x5xf32>
    %350 = arith.addf %344, %349 : vector<8x5xf32>
    %351 = vector.extract_strided_slice %80 {offsets = [0, 5, 0], sizes = [8, 1, 5], strides = [1, 1, 1]} : vector<8x7x128xbf16> to vector<8x1x5xbf16>
    %352 = vector.shape_cast %351 : vector<8x1x5xbf16> to vector<8x5xbf16>
    %353 = vector.extract_strided_slice %81 {offsets = [1, 0, 0], sizes = [1, 8, 8], strides = [1, 1, 1]} : vector<9x8x8xbf16> to vector<1x8x8xbf16>
    %354 = vector.shape_cast %353 : vector<1x8x8xbf16> to vector<8x8xbf16>
    %cst_76 = arith.constant dense<0.000000e+00> : vector<8x5xf32>
    %355 = tpu.matmul %354, %352, %cst_76 {dimension_numbers = #tpu.dot_dimension_numbers<[1], [0], [0], [1], [0, 0, 1, 1], [], []>} : vector<8x8xbf16>, vector<8x5xbf16>, vector<8x5xf32> -> vector<8x5xf32>
    %356 = arith.addf %350, %355 : vector<8x5xf32>
    %357 = vector.extract_strided_slice %80 {offsets = [0, 6, 0], sizes = [8, 1, 5], strides = [1, 1, 1]} : vector<8x7x128xbf16> to vector<8x1x5xbf16>
    %358 = vector.shape_cast %357 : vector<8x1x5xbf16> to vector<8x5xbf16>
    %359 = vector.extract_strided_slice %81 {offsets = [2, 0, 0], sizes = [1, 8, 8], strides = [1, 1, 1]} : vector<9x8x8xbf16> to vector<1x8x8xbf16>
    %360 = vector.shape_cast %359 : vector<1x8x8xbf16> to vector<8x8xbf16>
    %cst_77 = arith.constant dense<0.000000e+00> : vector<8x5xf32>
    %361 = tpu.matmul %360, %358, %cst_77 {dimension_numbers = #tpu.dot_dimension_numbers<[1], [0], [0], [1], [0, 0, 1, 1], [], []>} : vector<8x8xbf16>, vector<8x5xbf16>, vector<8x5xf32> -> vector<8x5xf32>
    %362 = arith.addf %356, %361 : vector<8x5xf32>
    %363 = vector.extract_strided_slice %80 {offsets = [0, 4, 1], sizes = [8, 1, 5], strides = [1, 1, 1]} : vector<8x7x128xbf16> to vector<8x1x5xbf16>
    %364 = vector.shape_cast %363 : vector<8x1x5xbf16> to vector<8x5xbf16>
    %365 = vector.extract_strided_slice %81 {offsets = [3, 0, 0], sizes = [1, 8, 8], strides = [1, 1, 1]} : vector<9x8x8xbf16> to vector<1x8x8xbf16>
    %366 = vector.shape_cast %365 : vector<1x8x8xbf16> to vector<8x8xbf16>
    %cst_78 = arith.constant dense<0.000000e+00> : vector<8x5xf32>
    %367 = tpu.matmul %366, %364, %cst_78 {dimension_numbers = #tpu.dot_dimension_numbers<[1], [0], [0], [1], [0, 0, 1, 1], [], []>} : vector<8x8xbf16>, vector<8x5xbf16>, vector<8x5xf32> -> vector<8x5xf32>
    %368 = arith.addf %362, %367 : vector<8x5xf32>
    %369 = vector.extract_strided_slice %80 {offsets = [0, 5, 1], sizes = [8, 1, 5], strides = [1, 1, 1]} : vector<8x7x128xbf16> to vector<8x1x5xbf16>
    %370 = vector.shape_cast %369 : vector<8x1x5xbf16> to vector<8x5xbf16>
    %371 = vector.extract_strided_slice %81 {offsets = [4, 0, 0], sizes = [1, 8, 8], strides = [1, 1, 1]} : vector<9x8x8xbf16> to vector<1x8x8xbf16>
    %372 = vector.shape_cast %371 : vector<1x8x8xbf16> to vector<8x8xbf16>
    %cst_79 = arith.constant dense<0.000000e+00> : vector<8x5xf32>
    %373 = tpu.matmul %372, %370, %cst_79 {dimension_numbers = #tpu.dot_dimension_numbers<[1], [0], [0], [1], [0, 0, 1, 1], [], []>} : vector<8x8xbf16>, vector<8x5xbf16>, vector<8x5xf32> -> vector<8x5xf32>
    %374 = arith.addf %368, %373 : vector<8x5xf32>
    %375 = vector.extract_strided_slice %80 {offsets = [0, 6, 1], sizes = [8, 1, 5], strides = [1, 1, 1]} : vector<8x7x128xbf16> to vector<8x1x5xbf16>
    %376 = vector.shape_cast %375 : vector<8x1x5xbf16> to vector<8x5xbf16>
    %377 = vector.extract_strided_slice %81 {offsets = [5, 0, 0], sizes = [1, 8, 8], strides = [1, 1, 1]} : vector<9x8x8xbf16> to vector<1x8x8xbf16>
    %378 = vector.shape_cast %377 : vector<1x8x8xbf16> to vector<8x8xbf16>
    %cst_80 = arith.constant dense<0.000000e+00> : vector<8x5xf32>
    %379 = tpu.matmul %378, %376, %cst_80 {dimension_numbers = #tpu.dot_dimension_numbers<[1], [0], [0], [1], [0, 0, 1, 1], [], []>} : vector<8x8xbf16>, vector<8x5xbf16>, vector<8x5xf32> -> vector<8x5xf32>
    %380 = arith.addf %374, %379 : vector<8x5xf32>
    %381 = vector.extract_strided_slice %80 {offsets = [0, 4, 2], sizes = [8, 1, 5], strides = [1, 1, 1]} : vector<8x7x128xbf16> to vector<8x1x5xbf16>
    %382 = vector.shape_cast %381 : vector<8x1x5xbf16> to vector<8x5xbf16>
    %383 = vector.extract_strided_slice %81 {offsets = [6, 0, 0], sizes = [1, 8, 8], strides = [1, 1, 1]} : vector<9x8x8xbf16> to vector<1x8x8xbf16>
    %384 = vector.shape_cast %383 : vector<1x8x8xbf16> to vector<8x8xbf16>
    %cst_81 = arith.constant dense<0.000000e+00> : vector<8x5xf32>
    %385 = tpu.matmul %384, %382, %cst_81 {dimension_numbers = #tpu.dot_dimension_numbers<[1], [0], [0], [1], [0, 0, 1, 1], [], []>} : vector<8x8xbf16>, vector<8x5xbf16>, vector<8x5xf32> -> vector<8x5xf32>
    %386 = arith.addf %380, %385 : vector<8x5xf32>
    %387 = vector.extract_strided_slice %80 {offsets = [0, 5, 2], sizes = [8, 1, 5], strides = [1, 1, 1]} : vector<8x7x128xbf16> to vector<8x1x5xbf16>
    %388 = vector.shape_cast %387 : vector<8x1x5xbf16> to vector<8x5xbf16>
    %389 = vector.extract_strided_slice %81 {offsets = [7, 0, 0], sizes = [1, 8, 8], strides = [1, 1, 1]} : vector<9x8x8xbf16> to vector<1x8x8xbf16>
    %390 = vector.shape_cast %389 : vector<1x8x8xbf16> to vector<8x8xbf16>
    %cst_82 = arith.constant dense<0.000000e+00> : vector<8x5xf32>
    %391 = tpu.matmul %390, %388, %cst_82 {dimension_numbers = #tpu.dot_dimension_numbers<[1], [0], [0], [1], [0, 0, 1, 1], [], []>} : vector<8x8xbf16>, vector<8x5xbf16>, vector<8x5xf32> -> vector<8x5xf32>
    %392 = arith.addf %386, %391 : vector<8x5xf32>
    %393 = vector.extract_strided_slice %80 {offsets = [0, 6, 2], sizes = [8, 1, 5], strides = [1, 1, 1]} : vector<8x7x128xbf16> to vector<8x1x5xbf16>
    %394 = vector.shape_cast %393 : vector<8x1x5xbf16> to vector<8x5xbf16>
    %395 = vector.extract_strided_slice %81 {offsets = [8, 0, 0], sizes = [1, 8, 8], strides = [1, 1, 1]} : vector<9x8x8xbf16> to vector<1x8x8xbf16>
    %396 = vector.shape_cast %395 : vector<1x8x8xbf16> to vector<8x8xbf16>
    %cst_83 = arith.constant dense<0.000000e+00> : vector<8x5xf32>
    %397 = tpu.matmul %396, %394, %cst_83 {dimension_numbers = #tpu.dot_dimension_numbers<[1], [0], [0], [1], [0, 0, 1, 1], [], []>} : vector<8x8xbf16>, vector<8x5xbf16>, vector<8x5xf32> -> vector<8x5xf32>
    %398 = arith.addf %392, %397 : vector<8x5xf32>
    %c0_84 = arith.constant 0 : index
    %c0_85 = arith.constant 0 : index
    %399 = vector.load %arg6[%c0_84, %c0_85] : memref<8x1xf32, #tpu.memory_space<vmem>>, vector<8x1xf32>
    %400 = vector.broadcast %399 : vector<8x1xf32> to vector<8x5xf32>
    %401 = arith.addf %398, %400 : vector<8x5xf32>
    %cst_86 = arith.constant 0.000000e+00 : f32
    %402 = vector.broadcast %cst_86 : f32 to vector<8x5xf32>
    %403 = arith.maximumf %401, %402 : vector<8x5xf32>
    %404 = arith.truncf %403 : vector<8x5xf32> to vector<8x5xbf16>
    %405 = vector.extract_strided_slice %82 {offsets = [4, 0, 0], sizes = [1, 128, 8], strides = [1, 1, 1]} : vector<5x128x8xbf16> to vector<1x128x8xbf16>
    %406 = vector.shape_cast %405 : vector<1x128x8xbf16> to vector<128x8xbf16>
    %cst_87 = arith.constant dense<0.000000e+00> : vector<128x5xf32>
    %407 = tpu.matmul %406, %404, %cst_87 {dimension_numbers = #tpu.dot_dimension_numbers<[1], [0], [0], [1], [0, 0, 1, 1], [], []>} : vector<128x8xbf16>, vector<8x5xbf16>, vector<128x5xf32> -> vector<128x5xf32>
    %408 = arith.addf %343, %407 : vector<128x5xf32>
    %c0_88 = arith.constant 0 : index
    %c0_89 = arith.constant 0 : index
    %409 = vector.load %arg8[%c0_88, %c0_89] : memref<128x1xf32, #tpu.memory_space<vmem>>, vector<128x1xf32>
    %410 = vector.broadcast %409 : vector<128x1xf32> to vector<128x5xf32>
    %411 = arith.addf %408, %410 : vector<128x5xf32>
    %412 = tpu.transpose %411, [1, 0] : vector<128x5xf32> -> vector<5x128xf32>
    %c0_90 = arith.constant 0 : index
    %c0_91 = arith.constant 0 : index
    %c0_92 = arith.constant 0 : index
    %413 = vector.load %arg9[%c0_90, %c0_91, %c0_92] : memref<1x5x128xf32, #tpu.memory_space<vmem>>, vector<1x5x128xf32>
    %414 = vector.shape_cast %413 : vector<1x5x128xf32> to vector<5x128xf32>
    %415 = vector.shape_cast %412 : vector<5x128xf32> to vector<1x5x128xf32>
    tpu.vector_store %arg9[%c0_90, %c0_91, %c0_92], %415 {strides = array<i32>} : memref<1x5x128xf32, #tpu.memory_space<vmem>>, vector<1x5x128xf32>,
    return
  }
  func.func @transform_0(%arg0: i32, %arg1: i32) -> (i32, i32, i32, i32) {
    %c0_i32 = arith.constant 0 : i32
    %c0_i32_0 = arith.constant 0 : i32
    %c0_i32_1 = arith.constant 0 : i32
    return %c0_i32, %arg0, %c0_i32_0, %arg1 : i32, i32, i32, i32
  }
  func.func @transform_1(%arg0: i32, %arg1: i32) -> (i32, i32, i32, i32) {
    %c0_i32 = arith.constant 0 : i32
    %c0_i32_0 = arith.constant 0 : i32
    %c0_i32_1 = arith.constant 0 : i32
    %c0_i32_2 = arith.constant 0 : i32
    %c0_i32_3 = arith.constant 0 : i32
    return %c0_i32, %c0_i32_0, %c0_i32_1, %c0_i32_2 : i32, i32, i32, i32
  }
  func.func @transform_2(%arg0: i32, %arg1: i32) -> (i32, i32, i32) {
    %c0_i32 = arith.constant 0 : i32
    %c0_i32_0 = arith.constant 0 : i32
    %c0_i32_1 = arith.constant 0 : i32
    %c0_i32_2 = arith.constant 0 : i32
    return %c0_i32, %c0_i32_0, %c0_i32_1 : i32, i32, i32
  }
  func.func @transform_3(%arg0: i32, %arg1: i32) -> (i32, i32, i32) {
    %c0_i32 = arith.constant 0 : i32
    %c0_i32_0 = arith.constant 0 : i32
    %c0_i32_1 = arith.constant 0 : i32
    %c0_i32_2 = arith.constant 0 : i32
    return %c0_i32, %c0_i32_0, %c0_i32_1 : i32, i32, i32
  }
  func.func @transform_4(%arg0: i32, %arg1: i32) -> (i32, i32) {
    %c0_i32 = arith.constant 0 : i32
    %c0_i32_0 = arith.constant 0 : i32
    %c0_i32_1 = arith.constant 0 : i32
    return %c0_i32, %c0_i32_0 : i32, i32
  }
  func.func @transform_5(%arg0: i32, %arg1: i32) -> (i32, i32, i32) {
    %c0_i32 = arith.constant 0 : i32
    %c0_i32_0 = arith.constant 0 : i32
    %c0_i32_1 = arith.constant 0 : i32
    %c0_i32_2 = arith.constant 0 : i32
    return %c0_i32, %c0_i32_0, %c0_i32_1 : i32, i32, i32
  }
  func.func @transform_6(%arg0: i32, %arg1: i32) -> (i32, i32) {
    %c0_i32 = arith.constant 0 : i32
    %c0_i32_0 = arith.constant 0 : i32
    %c0_i32_1 = arith.constant 0 : i32
    return %c0_i32, %c0_i32_0 : i32, i32
  }
  func.func @transform_7(%arg0: i32, %arg1: i32) -> (i32, i32, i32) {
    %c0_i32 = arith.constant 0 : i32
    %c0_i32_0 = arith.constant 0 : i32
    return %arg0, %arg1, %c0_i32 : i32, i32, i32
  }
}

</mosaic_0001>

<bundles_post_ra>
// kernel: tpu_custom_call.1
= control target key start
LH: loop header
LB: loop body
LE: loop exit
PB: predicated region body
PF: predicated region fallthrough
CT: control target
= control target key end

     0   :  { %s3464_s24 = smov 0   ;;  %s3466_s25 = smov 0   ;;  %s4509_s0 = inlined_call_operand.vmem [shape: f32[9,2,7,128], index: 0, kind: input, shape index: {}]   ;;  %s4510_s1 = inlined_call_operand.vmem [shape: f32[9,8,1,1], index: 1, kind: input, shape index: {}]   ;;  %s4511_s2 = inlined_call_operand.vmem [shape: f32[8,1,1], index: 2, kind: input, shape index: {}]   ;;  %s4512_s3 = inlined_call_operand.vmem [shape: bf16[9,8,8], index: 3, kind: input, shape index: {}]   ;;  %s4513_s4 = inlined_call_operand.vmem [shape: f32[8,1], index: 4, kind: input, shape index: {}]   ;;  %s4514_s5 = inlined_call_operand.vmem [shape: bf16[5,128,8], index: 5, kind: input, shape index: {}]   ;;  %s4515_s6 = inlined_call_operand.vmem [shape: f32[128,1], index: 6, kind: input, shape index: {}]   ;;  %s4516_s7 = inlined_call_operand.vmem [shape: f32[2,5,128], index: 7, kind: output, shape index: {}]  }
   0x1   :  { %s3468_s26 = smov 0   ;;  %s3470_s27 = smov 0  }
   0x2   :  { %s3472_s28 = smov 0  }
   0x3 LB: > { %s29_s29 = sadd.s32 1, %s3415_s27  ;;  %p45_p1 = scmp.ne.s32.totalorder %s3407_s25, %s3403_s24  ;;  %s3419_s28 = sphi %s3472_s28, %s17_s28   ;;  %s3415_s27 = sphi %s3470_s27, %s4520_s27   ;;  %s3411_s26 = sphi %s3468_s26, %s4519_s26   ;;  %s3407_s25 = sphi %s3466_s25, %s4518_s25   ;;  %s3403_s24 = sphi %s3464_s24, %s4517_s24  }
   0x4   : > { %p31_p0 = scmp.ge.s32.totalorder %s29_s29, 2  ;;  %p46_p2 = scmp.eq.s32.totalorder %s3419_s28, 0 }
   0x5   : > { %s38_s8 = sadd.s32 1, %s3407_s25  ;;  %p2953_p5 = scmp.ge.s32.totalorder %s3419_s28, 2 }
   0x6   : > { %s4522_s29 = smov (%p31_p0, %s29_s29), 0  ;;  %p47_p3 = por %p46_p2, %p45_p1 }
   0x7   : > { %s33_s30 = ssub.s32 %s3415_s27, %s4522_s29  ;;  %243 = sbr.rel (%p2953_p5) target bundleno = 25 (0x19), region = 40 }
   0x8   : > { %p36_p4 = scmp.eq.s32.totalorder %s33_s30, 0 }
   0xa   : > { %s3499_s9 = scalar_select %p36_p4, %s3407_s25, %s38_s8  }
   0xc   : > { %246 = sbr.rel (!%p47_p3) target bundleno = 25 (0x19), region = 44  ;;  %s248_s10 = sand.u32 (%p47_p3), 1, %s3407_s25  }
   0xd   : > { %s2954_s11 = sshll.u32 (%p47_p3), %s3415_s27, 3  ;;  %s3253_s12 = smul.u32 (%p47_p3), 72, %s248_s10 }
   0xe   : > { %s253_s15 = scalar_lea.vmem (%p47_p3), %s4509_s0, %s2954_s11 }
   0xf   : > { %v298_v0 = vld [vmem:[%s253_s15] sm:$0xff] (%p47_p3)  ;;  %v300_v1 = vld [vmem:[%s253_s15 + $0x10] sm:$0xff] (%p47_p3)  ;;  %s250_s16 = scalar_lea.vmem (%p47_p3), [#allocation2], %s3253_s12 }
  0x10   : > { %v302_v2 = vld [vmem:[%s253_s15 + $0x20] sm:$0xff] (%p47_p3)  ;;  %299 = vst [vmem:[%s250_s16] sm:$0xff] (%p47_p3), %v298_v0  ;;  %v304_v3 = vld [vmem:[%s253_s15 + $0x30] sm:$0xff] (%p47_p3) }
  0x11   : > { %301 = vst [vmem:[%s250_s16 + $0x8] sm:$0xff] %v300_v1  ;;  %v306_v4 = vld [vmem:[%s253_s15 + $0x40] sm:$0xff]  ;;  %v308_v5 = vld [vmem:[%s253_s15 + $0x50] sm:$0xff] }
  0x12   : > { %303 = vst [vmem:[%s250_s16 + $0x10] sm:$0xff] %v302_v2  ;;  %v310_v6 = vld [vmem:[%s253_s15 + $0x60] sm:$0xff]  ;;  %v312_v7 = vld [vmem:[%s253_s15 + $0x70] sm:$0xff] }
  0x13   : > { %305 = vst [vmem:[%s250_s16 + $0x18] sm:$0xff] %v304_v3  ;;  %v314_v8 = vld [vmem:[%s253_s15 + $0x80] sm:$0xff] }
  0x14   : > { %307 = vst [vmem:[%s250_s16 + $0x20] sm:$0xff] %v306_v4 }
  0x15   : > { %309 = vst [vmem:[%s250_s16 + $0x28] sm:$0xff] %v308_v5 }
  0x16   : > { %311 = vst [vmem:[%s250_s16 + $0x30] sm:$0xff] %v310_v6 }
  0x17   : > { %313 = vst [vmem:[%s250_s16 + $0x38] sm:$0xff] %v312_v7 }
  0x18   : > { %315 = vst [vmem:[%s250_s16 + $0x40] sm:$0xff] %v314_v8 }
  0x19 PF: > { %p2955_p6 = scmp.ge.s32.totalorder %s3419_s28, 1  ;;  %p320_p7 = scmp.lt.s32.totalorder %s3419_s28, 3 }
  0x1b   : > { %p321_p8 = pnand %p2955_p6, %p320_p7 }
  0x1c   : > { %s327_s17 = sand.u32 (!%p321_p8), 1, %s3403_s24   ;;  %s3423_s19 = smov (!%p321_p8), 127  }
  0x1d   : > { %324 = sbr.rel (%p321_p8) target bundleno = 1365 (0x555), region = 82  ;;  %p360_p9 = scmp.lt.s32.totalorder (!%p321_p8), %s3411_s26, 1 }
  0x1e   : > { %s3254_s22 = smul.u32 (!%p321_p8), 72, %s327_s17 }
  0x20   : > { %s3645_s12 = scalar_lea.vmem (!%p321_p8), [#allocation2], %s3254_s22 }
  0x22   : > { %v3301_v9 = vld [vmem:[%s4510_s1 + $0x9] ss:$0 sm:$0xff]  ;;  %v3421_v10 = vmov 0   ;;  %v3302_v11 = vld [vmem:[%s4510_s1 + $0x1] ss:$0 sm:$0xff]  ;;  %vm1227_vm0 = vcmask 1041409  }
  0x23   : > { %3300 = vset.pattern.permute.xlu2 %v3421_v10  ;;  %3299 = vset.pattern.permute.xlu1 %v3421_v10  ;;  %v3303_v12 = vld [vmem:[%s4510_s1] ss:$0 sm:$0xff]  ;;  %v3304_v13 = vld [vmem:[%s4510_s1 + $0xa] ss:$0 sm:$0xff]  ;;  %v3305_v14 = vld [vmem:[%s4510_s1 + $0x2] ss:$0 sm:$0xff] }
  0x24   : > { %3298 = vset.pattern.permute.xlu0 %v3421_v10  ;;  %534 = vperm.xlu2 %3300, %v3301_v9   ;;  %v3306_v15 = vld [vmem:[%s4510_s1 + $0x8] ss:$0 sm:$0xff]  ;;  %v3307_v16 = vld [vmem:[%s4510_s1 + $0x10] ss:$0 sm:$0xff]  ;;  %v3308_v17 = vld [vmem:[%s4510_s1 + $0xb] ss:$0 sm:$0xff] }
  0x25   : > { %470 = vperm.xlu1 %3299, %v3302_v11   ;;  %466 = vperm.xlu0 %3298, %v3303_v12   ;;  %v3309_v18 = vld [vmem:[%s4510_s1 + $0x3] ss:$0 sm:$0xff]  ;;  %v3310_v19 = vld [vmem:[%s4510_s1 + $0x11] ss:$0 sm:$0xff]  ;;  %v3311_v20 = vld [vmem:[%s4510_s1 + $0xc] ss:$0 sm:$0xff] }
  0x26   : > { %v3312_v21 = vld [vmem:[%s4510_s1 + $0x4] ss:$0 sm:$0xff]  ;;  %v3313_v22 = vld [vmem:[%s4510_s1 + $0xd] ss:$0 sm:$0xff]  ;;  %v3314_v23 = vld [vmem:[%s4510_s1 + $0x5] ss:$0 sm:$0xff] }
  0x27   : > { %v3315_v24 = vld [vmem:[%s4510_s1 + $0x12] ss:$0 sm:$0xff]  ;;  %v3316_v25 = vld [vmem:[%s4510_s1 + $0x6] ss:$0 sm:$0xff]  ;;  %v3317_v26 = vld [vmem:[%s4510_s1 + $0x18] ss:$0 sm:$0xff] }
  0x28   : > { %v3318_v27 = vld [vmem:[%s4510_s1 + $0x13] ss:$0 sm:$0xff]  ;;  %v3319_v28 = vld [vmem:[%s4510_s1 + $0x19] ss:$0 sm:$0xff]  ;;  %v3320_v29 = vld [vmem:[%s4510_s1 + $0x14] ss:$0 sm:$0xff] }
  0x29   : > { %v3321_v30 = vld [vmem:[%s4510_s1 + $0xe] ss:$0 sm:$0xff]  ;;  %v3322_v31 = vld [vmem:[%s4510_s1 + $0xf] ss:$0 sm:$0xff]  ;;  %v3323_v32 = vld [vmem:[%s4510_s1 + $0x7] ss:$0 sm:$0xff] }
  0x2a   : > { %v3324_v33 = vld [vmem:[%s4510_s1 + $0x1a] ss:$0 sm:$0xff]  ;;  %v3325_v34 = vld [vmem:[%s4510_s1 + $0x20] ss:$0 sm:$0xff]  ;;  %v3326_v35 = vld [vmem:[%s4510_s1 + $0x1b] ss:$0 sm:$0xff] }
  0x2b   : > { %v3327_v36 = vld [vmem:[%s4510_s1 + $0x15] ss:$0 sm:$0xff]  ;;  %v3328_v37 = vld [vmem:[%s4510_s1 + $0x21] ss:$0 sm:$0xff]  ;;  %v3329_v38 = vld [vmem:[%s4510_s1 + $0x1c] ss:$0 sm:$0xff] }
  0x2c   : > { %538 = vperm.xlu2 %3300, %v3304_v13   ;;  %v3330_v39 = vld [vmem:[%s4510_s1 + $0x16] ss:$0 sm:$0xff]  ;;  %v3331_v40 = vld [vmem:[%s4510_s1 + $0x1d] ss:$0 sm:$0xff]  ;;  %v3332_v41 = vld [vmem:[%s4510_s1 + $0x17] ss:$0 sm:$0xff] }
  0x2d   : > { %474 = vperm.xlu1 %3299, %v3305_v14   ;;  %530 = vperm.xlu0 %3298, %v3306_v15   ;;  %v3333_v42 = vld [vmem:[%s4510_s1 + $0x22] ss:$0 sm:$0xff]  ;;  %v3334_v43 = vld [vmem:[%s4510_s1 + $0x1e] ss:$0 sm:$0xff]  ;;  %v3335_v44 = vld [vmem:[%s4510_s1 + $0x28] ss:$0 sm:$0xff] }
  0x2e   : > { %v3336_v45 = vld [vmem:[%s4510_s1 + $0x23] ss:$0 sm:$0xff]  ;;  %v3337_v47 = vld [vmem:[%s4510_s1 + $0x2a] ss:$0 sm:$0xff]  ;;  %v3338_v48 = vld [vmem:[%s4510_s1 + $0x29] ss:$0 sm:$0xff] }
  0x2f   : > { %v3339_v49 = vld [vmem:[%s4510_s1 + $0x24] ss:$0 sm:$0xff]  ;;  %v3340_v51 = vld [vmem:[%s4510_s1 + $0x2b] ss:$0 sm:$0xff]  ;;  %v3341_v52 = vld [vmem:[%s4510_s1 + $0x25] ss:$0 sm:$0xff] }
  0x30   : > { %v3342_v53 = vld [vmem:[%s4510_s1 + $0x1f] ss:$0 sm:$0xff]  ;;  %v3343_v55 = vld [vmem:[%s4510_s1 + $0x2c] ss:$0 sm:$0xff]  ;;  %v3344_v56 = vld [vmem:[%s4510_s1 + $0x26] ss:$0 sm:$0xff] }
  0x31   : > { %v3345_v57 = vld [vmem:[%s4510_s1 + $0x30] ss:$0 sm:$0xff]  ;;  %v3654_v60 = vld [vmem:[%s3645_s12] sm:$0x7f]  ;;  %v3346_v3 = vld [vmem:[%s4510_s1 + $0x27] ss:$0 sm:$0xff] }
  0x32   : > { %v3648_v58 = vld [vmem:[%s3645_s12 + $0x8] sm:$0x7f]  ;;  %v3651_v59 = vld [vmem:[%s3645_s12 + $0x10] sm:$0x7f]  ;;  %vm1230_vm1 = vcmask 1042434   ;;  %vm1233_vm2 = vcmask 1043459  }
  0x33   : > { %v3347_v4 = vld [vmem:[%s4510_s1 + $0x32] ss:$0 sm:$0xff]  ;;  %v3348_v6 = vld [vmem:[%s4510_s1 + $0x31] ss:$0 sm:$0xff]  ;;  %v3349_v13 = vld [vmem:[%s4510_s1 + $0x38] ss:$0 sm:$0xff] }
  0x34   : > { %594 = vperm.xlu2 %3300, %v3307_v16   ;;  %v3350_v16 = vld [vmem:[%s4510_s1 + $0x33] ss:$0 sm:$0xff]  ;;  %vm1236_vm3 = vcmask 1044484   ;;  %vm1239_vm4 = vcmask 1045509   ;;  %vm1245_vm5 = vcmask 1047559   ;;  %vm1242_vm6 = vcmask 1046534  }
  0x35   : > { %542 = vperm.xlu1 %3299, %v3308_v17   ;;  %478 = vperm.xlu0 %3298, %v3309_v18   ;;  %v3351_v18 = vld [vmem:[%s4510_s1 + $0x2d] ss:$0 sm:$0xff]  ;;  %vm1252_vm7 = vcmask 1043456   ;;  %vm1248_vm8 = vcmask 64512   ;;  %s4524_s26 = smov (!%p360_p9, %s3411_s26), 1 }
  0x36   : > { %s2956_s17 = sshll.u32 %s4524_s26, 3 }
  0x3c   : > { %598 = vperm.xlu2 %3300, %v3310_v19  }
  0x3d   : > { %546 = vperm.xlu1 %3299, %v3311_v20   ;;  %482 = vperm.xlu0 %3298, %v3312_v21  }
  0x44   : > { %550 = vperm.xlu2 %3300, %v3313_v22  }
  0x45   : > { %486 = vperm.xlu1 %3299, %v3314_v23   ;;  %602 = vperm.xlu0 %3298, %v3315_v24  }
  0x4c   : > { %490 = vperm.xlu2 %3300, %v3316_v25  }
  0x4d   : > { %658 = vperm.xlu1 %3299, %v3317_v26   ;;  %606 = vperm.xlu0 %3298, %v3318_v27   ;;  %v3352_v26 = vld [vmem:[%s4510_s1 + $0x39] ss:$0 sm:$0xff] }
  0x54   : > { %662 = vperm.xlu2 %3300, %v3319_v28   ;;  %v3353_v28 = vld [vmem:[%s4510_s1 + $0x34] ss:$0 sm:$0xff] }
  0x55   : > { %610 = vperm.xlu1 %3299, %v3320_v29   ;;  %554 = vperm.xlu0 %3298, %v3321_v30   ;;  %v3354_v29 = vld [vmem:[%s4510_s1 + $0x2e] ss:$0 sm:$0xff] }
  0x5c   : > { %558 = vperm.xlu2 %3300, %v3322_v31   ;;  %v3696_v31 = vld [vmem:[%s3645_s12 + $0x18] sm:$0x7f] }
  0x5d   : > { %494 = vperm.xlu1 %3299, %v3323_v32   ;;  %666 = vperm.xlu0 %3298, %v3324_v33  }
  0x64   : > { %722 = vperm.xlu2 %3300, %v3325_v34  }
  0x65   : > { %670 = vperm.xlu1 %3299, %v3326_v35   ;;  %614 = vperm.xlu0 %3298, %v3327_v36  }
  0x6c   : > { %726 = vperm.xlu2 %3300, %v3328_v37   ;;  %v3355_v37 = vld [vmem:[%s4510_s1 + $0x35] ss:$0 sm:$0xff] }
  0x6d   : > { %674 = vperm.xlu1 %3299, %v3329_v38   ;;  %618 = vperm.xlu0 %3298, %v3330_v39  }
  0x74   : > { %678 = vperm.xlu2 %3300, %v3331_v40   ;;  %v3356_v40 = vld [vmem:[%s4510_s1 + $0x2f] ss:$0 sm:$0xff] }
  0x75   : > { %622 = vperm.xlu1 %3299, %v3332_v41   ;;  %730 = vperm.xlu0 %3298, %v3333_v42   ;;  %v3357_v41 = vld [vmem:[%s4510_s1 + $0x3a] ss:$0 sm:$0xff] }
  0x7c   : > { %682 = vperm.xlu2 %3300, %v3334_v43  }
  0x7d   : > { %786 = vperm.xlu1 %3299, %v3335_v44   ;;  %734 = vperm.xlu0 %3298, %v3336_v45  }
  0x7e   : > { %v535_v46 = vpop.permute.xlu2 %534 }
  0x7f   : > { %v562_v61 = vmul.f32 %v535_v46, %v3648_v58 }
  0x84   : > { %794 = vperm.xlu2 %3300, %v3337_v47  }
  0x85   : > { %790 = vperm.xlu1 %3299, %v3338_v48   ;;  %738 = vperm.xlu0 %3298, %v3339_v49   ;;  %v3358_v48 = vld [vmem:[%s4510_s1 + $0x36] ss:$0 sm:$0xff] }
  0x86   : > { %v539_v50 = vpop.permute.xlu2 %538 }
  0x87   : > { %v563_v8 = vmul.f32 %v539_v50, %v3648_v58  ;;  %v3359_v50 = vld [vmem:[%s4510_s1 + $0x40] ss:$0 sm:$0xff] }
  0x8c   : > { %798 = vperm.xlu2 %3300, %v3340_v51  }
  0x8d   : > { %742 = vperm.xlu1 %3299, %v3341_v52   ;;  %686 = vperm.xlu0 %3298, %v3342_v53   ;;  %v3360_v52 = vld [vmem:[%s4510_s1 + $0x3b] ss:$0 sm:$0xff] }
  0x8e   : > { %v595_v54 = vpop.permute.xlu2 %594 }
  0x8f   : > { %v625_v19 = vmul.f32 %v595_v54, %v3651_v59 }
  0x94   : > { %802 = vperm.xlu2 %3300, %v3343_v55   ;;  %v3723_v55 = vld [vmem:[%s3645_s12 + $0x20] sm:$0x7f] }
  0x95   : > { %746 = vperm.xlu1 %3299, %v3344_v56   ;;  %850 = vperm.xlu0 %3298, %v3345_v57  }
  0x96   : > { %v599_v62 = vpop.permute.xlu2 %598 }
  0x97   : > { %v471_v63 = vpop.permute.xlu1 %470  ;;  %v626_v0 = vmul.f32 %v599_v62, %v3651_v59  ;;  %v467_v2 = vpop.permute.xlu0 %466  ;;  %v3361_v62 = vld [vmem:[%s4510_s1 + $0x42] ss:$0 sm:$0xff] }
  0x98   : > { %v498_v1 = vmul.f32 %v471_v63, %v3654_v60  ;;  %v497_v14 = vmul.f32 %v467_v2, %v3654_v60 }
  0x9a   : > { %v570_v5 = vadd.f32 %v562_v61, %v498_v1 }
  0x9c   : > { %750 = vperm.xlu2 %3300, %v3346_v3   ;;  %v634_v7 = vadd.f32 %v626_v0, %v570_v5  ;;  %v3362_v0 = vld [vmem:[%s4510_s1 + $0x41] ss:$0 sm:$0xff]  ;;  %v3363_v3 = vld [vmem:[%s4510_s1 + $0x3c] ss:$0 sm:$0xff] }
  0x9d   : > { %858 = vperm.xlu1 %3299, %v3347_v4   ;;  %854 = vperm.xlu0 %3298, %v3348_v6  }
  0x9e   : > { %v551_v9 = vpop.permute.xlu2 %550 }
  0x9f   : > { %v475_v10 = vpop.permute.xlu1 %474  ;;  %v531_v12 = vpop.permute.xlu0 %530  ;;  %v566_v45 = vmul.f32 %v551_v9, %v3648_v58 }
  0xa0   : > { %v499_v11 = vmul.f32 %v475_v10, %v3654_v60  ;;  %v561_v15 = vmul.f32 %v531_v12, %v3648_v58 }
  0xa2   : > { %v571_v17 = vadd.f32 %v563_v8, %v499_v11  ;;  %v569_v20 = vadd.f32 %v561_v15, %v497_v14  ;;  %v3364_v11 = vld [vmem:[%s4510_s1 + $0x43] ss:$0 sm:$0xff]  ;;  %v3365_v15 = vld [vmem:[%s4510_s1 + $0x3d] ss:$0 sm:$0xff] }
  0xa4   : > { %914 = vperm.xlu2 %3300, %v3349_v13   ;;  %v633_v21 = vadd.f32 %v625_v19, %v569_v20 }
  0xa5   : > { %862 = vperm.xlu1 %3299, %v3350_v16   ;;  %806 = vperm.xlu0 %3298, %v3351_v18  }
  0xa6   : > { %v3682_v22 = vpop.permute.xlu2 %490 }
  0xa7   : > { %v543_v23 = vpop.permute.xlu1 %542  ;;  %v479_v25 = vpop.permute.xlu0 %478  ;;  %v503_v12 = vmul.f32 %v3682_v22, %v3654_v60 }
  0xa8   : > { %v564_v24 = vmul.f32 %v543_v23, %v3648_v58  ;;  %v500_v27 = vmul.f32 %v479_v25, %v3654_v60 }
  0xaa   : > { %v572_v30 = vadd.f32 %v564_v24, %v500_v27  ;;  %v3367_v24 = vld [vmem:[%s4510_s1 + $0x3f] ss:$0 sm:$0xff] }
  0xac   : > { %918 = vperm.xlu2 %3300, %v3352_v26   ;;  %v3368_v26 = vld [vmem:[%s4510_s1 + $0x44] ss:$0 sm:$0xff] }
  0xad   : > { %866 = vperm.xlu1 %3299, %v3353_v28   ;;  %810 = vperm.xlu0 %3298, %v3354_v29   ;;  %v3369_v28 = vld [vmem:[%s4510_s1 + $0x3e] ss:$0 sm:$0xff] }
  0xae   : > { %v663_v32 = vpop.permute.xlu2 %662 }
  0xaf   : > { %v690_v33 = vmul.f32 %v663_v32, %v3696_v31  ;;  %v547_v34 = vpop.permute.xlu1 %546  ;;  %v483_v36 = vpop.permute.xlu0 %482 }
  0xb0   : > { %v565_v35 = vmul.f32 %v547_v34, %v3648_v58  ;;  %v501_v39 = vmul.f32 %v483_v36, %v3654_v60 }
  0xb1   : > { %v698_v38 = vadd.f32 %v690_v33, %v634_v7  ;;  %v3370_v33 = vld [vmem:[%s4510_s1 + $0x46] ss:$0 sm:$0xff] }
  0xb2   : > { %v573_v42 = vadd.f32 %v565_v35, %v501_v39  ;;  %v3371_v35 = vld [vmem:[%s4511_s2] ss:$0 sm:$0xff] }
  0xb4   : > { %870 = vperm.xlu2 %3300, %v3355_v37   ;;  %v3372_v37 = vld [vmem:[%s4510_s1 + $0x45] ss:$0 sm:$0xff] }
  0xb5   : > { %814 = vperm.xlu1 %3299, %v3356_v40   ;;  %922 = vperm.xlu0 %3298, %v3357_v41  }
  0xb6   : > { %v559_v43 = vpop.permute.xlu2 %558 }
  0xb7   : > { %v487_v44 = vpop.permute.xlu1 %486  ;;  %v603_v47 = vpop.permute.xlu0 %602 }
  0xb8   : > { %v502_v46 = vmul.f32 %v487_v44, %v3654_v60  ;;  %v627_v49 = vmul.f32 %v603_v47, %v3651_v59  ;;  %v3374_v47 = vld [vmem:[%s4511_s2 + $0x2] ss:$0 sm:$0xff] }
  0xba   : > { %v574_v51 = vadd.f32 %v566_v45, %v502_v46  ;;  %v635_v53 = vadd.f32 %v627_v49, %v571_v17  ;;  %v3366_v17 = vld [vmem:[%s4510_s1 + $0x37] ss:$0 sm:$0xff]  ;;  %v3373_v45 = vld [vmem:[%s4510_s1 + $0x47] ss:$0 sm:$0xff]  ;;  %v3375_v49 = vld [vmem:[%s4511_s2 + $0x1] ss:$0 sm:$0xff] }
  0xbc   : > { %874 = vperm.xlu2 %3300, %v3358_v48  }
  0xbd   : > { %978 = vperm.xlu1 %3299, %v3359_v50   ;;  %926 = vperm.xlu0 %3298, %v3360_v52  }
  0xbe   : > { %v723_v54 = vpop.permute.xlu2 %722 }
  0xbf   : > { %v659_v56 = vpop.permute.xlu1 %658  ;;  %v607_v61 = vpop.permute.xlu0 %606  ;;  %v753_v1 = vmul.f32 %v723_v54, %v3723_v55 }
  0xc0   : > { %v689_v57 = vmul.f32 %v659_v56, %v3696_v31  ;;  %v628_v63 = vmul.f32 %v607_v61, %v3651_v59  ;;  %v3792_v56 = vld [vmem:[%s3645_s12 + $0x28] sm:$0x7f] }
  0xc2   : > { %v697_v2 = vadd.f32 %v689_v57, %v633_v21  ;;  %v636_v4 = vadd.f32 %v628_v63, %v572_v30  ;;  %v568_v21 = vmul.f32 %v559_v43, %v3648_v58 }
  0xc4   : > { %986 = vperm.xlu2 %3300, %v3361_v62   ;;  %v3737_v5 = vadd.f32 %v753_v1, %v697_v2  ;;  %v3376_v62 = vld [vmem:[%s4511_s2 + $0x5] ss:$0 sm:$0xff]  ;;  %v3378_v2 = vld [vmem:[%s4511_s2 + $0x3] ss:$0 sm:$0xff] }
  0xc5   : > { %982 = vperm.xlu1 %3299, %v3362_v0   ;;  %930 = vperm.xlu0 %3298, %v3363_v3   ;;  %v3377_v0 = vld [vmem:[%s4511_s2 + $0x4] ss:$0 sm:$0xff] }
  0xc6   : > { %v727_v6 = vpop.permute.xlu2 %726 }
  0xc7   : > { %v754_v7 = vmul.f32 %v727_v6, %v3723_v55  ;;  %v611_v8 = vpop.permute.xlu1 %610  ;;  %v555_v10 = vpop.permute.xlu0 %554 }
  0xc8   : > { %v629_v9 = vmul.f32 %v611_v8, %v3651_v59  ;;  %v567_v14 = vmul.f32 %v555_v10, %v3648_v58 }
  0xc9   : > { %v3746_v13 = vadd.f32 %v754_v7, %v698_v38 }
  0xca   : > { %v637_v16 = vadd.f32 %v629_v9, %v573_v42  ;;  %v575_v18 = vadd.f32 %v567_v14, %v503_v12  ;;  %v3380_v14 = vld [vmem:[%s4511_s2 + $0x6] ss:$0 sm:$0xff] }
  0xcc   : > { %990 = vperm.xlu2 %3300, %v3364_v11   ;;  %v3379_v11 = vld [vmem:[%s4511_s2 + $0x7] ss:$0 sm:$0xff] }
  0xcd   : > { %934 = vperm.xlu1 %3299, %v3365_v15   ;;  %878 = vperm.xlu0 %3298, %v3366_v17  }
  0xce   : > { %v679_v19 = vpop.permute.xlu2 %678 }
  0xcf   : > { %v495_v20 = vpop.permute.xlu1 %494  ;;  %v667_v23 = vpop.permute.xlu0 %666  ;;  %v694_v38 = vmul.f32 %v679_v19, %v3696_v31 }
  0xd0   : > { %v504_v22 = vmul.f32 %v495_v20, %v3654_v60  ;;  %v691_v25 = vmul.f32 %v667_v23, %v3696_v31 }
  0xd2   : > { %v576_v27 = vadd.f32 %v568_v21, %v504_v22  ;;  %v699_v29 = vadd.f32 %v691_v25, %v635_v53 }
  0xd4   : > { %942 = vperm.xlu2 %3300, %v3367_v24  }
  0xd5   : > { %994 = vperm.xlu1 %3299, %v3368_v26   ;;  %938 = vperm.xlu0 %3298, %v3369_v28  }
  0xd6   : > { %v683_v58 = vpop.permute.xlu2 %682 }
  0xd7   : > { %v671_v60 = vpop.permute.xlu1 %670  ;;  %v615_v32 = vpop.permute.xlu0 %614  ;;  %v695_v50 = vmul.f32 %v683_v58, %v3696_v31 }
  0xd8   : > { %v692_v30 = vmul.f32 %v671_v60, %v3696_v31  ;;  %v630_v34 = vmul.f32 %v615_v32, %v3651_v59 }
  0xda   : > { %v700_v36 = vadd.f32 %v692_v30, %v636_v4  ;;  %v638_v39 = vadd.f32 %v630_v34, %v574_v51 }
  0xdc   : > { %1002 = vperm.xlu2 %3300, %v3370_v33   ;;  %v702_v40 = vadd.f32 %v694_v38, %v638_v39 }
  0xdd   : > { %1050 = vperm.xlu1 %3299, %v3371_v35   ;;  %998 = vperm.xlu0 %3298, %v3372_v37   ;;  %v3826_v35 = vld [vmem:[%s3645_s12 + $0x30] sm:$0x7f] }
  0xde   : > { %v795_v41 = vpop.permute.xlu2 %794 }
  0xdf   : > { %v675_v42 = vpop.permute.xlu1 %674  ;;  %v619_v44 = vpop.permute.xlu0 %618  ;;  %v819_v3 = vmul.f32 %v795_v41, %v3792_v56 }
  0xe0   : > { %v693_v43 = vmul.f32 %v675_v42, %v3696_v31  ;;  %v631_v46 = vmul.f32 %v619_v44, %v3651_v59 }
  0xe2   : > { %v701_v48 = vadd.f32 %v693_v43, %v637_v16  ;;  %v639_v51 = vadd.f32 %v631_v46, %v575_v18 }
  0xe4   : > { %1006 = vperm.xlu2 %3300, %v3373_v45   ;;  %v703_v52 = vadd.f32 %v695_v50, %v639_v51 }
  0xe5   : > { %1058 = vperm.xlu1 %3299, %v3374_v47   ;;  %1054 = vperm.xlu0 %3298, %v3375_v49  }
  0xe6   : > { %v799_v53 = vpop.permute.xlu2 %798 }
  0xe7   : > { %v623_v54 = vpop.permute.xlu1 %622  ;;  %v731_v61 = vpop.permute.xlu0 %730  ;;  %v820_v15 = vmul.f32 %v799_v53, %v3792_v56 }
  0xe8   : > { %v632_v57 = vmul.f32 %v623_v54, %v3651_v59  ;;  %v755_v63 = vmul.f32 %v731_v61, %v3723_v55 }
  0xea   : > { %v640_v1 = vadd.f32 %v632_v57, %v576_v27  ;;  %v763_v4 = vadd.f32 %v755_v63, %v699_v29 }
  0xec   : > { %1070 = vperm.xlu2 %3300, %v3376_v62   ;;  %v827_v59 = vadd.f32 %v819_v3, %v763_v4 }
  0xed   : > { %1066 = vperm.xlu1 %3299, %v3377_v0   ;;  %1062 = vperm.xlu0 %3298, %v3378_v2  }
  0xee   : > { %v803_v6 = vpop.permute.xlu2 %802 }
  0xef   : > { %v787_v7 = vpop.permute.xlu1 %786  ;;  %v735_v9 = vpop.permute.xlu0 %734  ;;  %v821_v23 = vmul.f32 %v803_v6, %v3792_v56 }
  0xf0   : > { %v817_v8 = vmul.f32 %v787_v7, %v3792_v56  ;;  %v756_v10 = vmul.f32 %v735_v9, %v3723_v55 }
  0xf2   : > { %v825_v12 = vadd.f32 %v817_v8, %v3737_v5  ;;  %v764_v16 = vadd.f32 %v756_v10, %v700_v36  ;;  %v375_v8 = vld [vmem:[%s3645_s12 + $0x38] sm:$0x7f] }
  0xf4   : > { %v828_v17 = vadd.f32 %v820_v15, %v764_v16 }
  0xf5   : > { %1078 = vperm.xlu1 %3299, %v3379_v11   ;;  %1074 = vperm.xlu0 %3298, %v3380_v14   ;;  %v376_v11 = vld [vmem:[%s3645_s12 + $0x40] sm:$0x7f]  ;;  %s3422_s12 = smov 126  }
  0xf6   : > { %v751_v18 = vpop.permute.xlu2 %750 }
  0xf7   : > { %v791_v19 = vpop.permute.xlu1 %790  ;;  %v739_v21 = vpop.permute.xlu0 %738  ;;  %v760_v30 = vmul.f32 %v751_v18, %v3723_v55 }
  0xf8   : > { %v818_v20 = vmul.f32 %v791_v19, %v3792_v56  ;;  %v757_v22 = vmul.f32 %v739_v21, %v3723_v55 }
  0xfa   : > { %v826_v5 = vadd.f32 %v818_v20, %v3746_v13  ;;  %v765_v24 = vadd.f32 %v757_v22, %v701_v48 }
  0xfc   : > { %v3820_v25 = vadd.f32 %v821_v23, %v765_v24 }
  0xfe   : > { %v915_v26 = vpop.permute.xlu2 %914 }
  0xff   : > { %v743_v27 = vpop.permute.xlu1 %742  ;;  %v687_v29 = vpop.permute.xlu0 %686 }
 0x100   : > { %v758_v28 = vmul.f32 %v743_v27, %v3723_v55  ;;  %v696_v58 = vmul.f32 %v687_v29, %v3696_v31 }
 0x102   : > { %v766_v60 = vadd.f32 %v758_v28, %v702_v40  ;;  %v704_v32 = vadd.f32 %v696_v58, %v640_v1 }
 0x104   : > { %v768_v33 = vadd.f32 %v760_v30, %v704_v32 }
 0x106   : > { %v919_v34 = vpop.permute.xlu2 %918 }
 0x107   : > { %v747_v13 = vpop.permute.xlu1 %746  ;;  %v851_v37 = vpop.permute.xlu0 %850 }
 0x108   : > { %v759_v36 = vmul.f32 %v747_v13, %v3723_v55  ;;  %v881_v38 = vmul.f32 %v851_v37, %v3826_v35  ;;  %v946_v13 = vmul.f32 %v919_v34, %v375_v8 }
 0x10a   : > { %v767_v39 = vadd.f32 %v759_v36, %v703_v52  ;;  %v889_v41 = vadd.f32 %v881_v38, %v825_v12  ;;  %v945_v12 = vmul.f32 %v915_v26, %v375_v8 }
 0x10c   : > { %v953_v16 = vadd.f32 %v945_v12, %v889_v41 }
 0x10e   : > { %v871_v42 = vpop.permute.xlu2 %870 }
 0x10f   : > { %v859_v43 = vpop.permute.xlu1 %858  ;;  %v855_v40 = vpop.permute.xlu0 %854 }
 0x110   : > { %v883_v31 = vmul.f32 %v859_v43, %v3826_v35  ;;  %v882_v44 = vmul.f32 %v855_v40, %v3826_v35 }
 0x112   : > { %v891_v45 = vadd.f32 %v883_v31, %v827_v59  ;;  %v890_v46 = vadd.f32 %v882_v44, %v826_v5 }
 0x116   : > { %v875_v48 = vpop.permute.xlu2 %874 }
 0x117   : > { %v863_v47 = vpop.permute.xlu1 %862  ;;  %v807_v50 = vpop.permute.xlu0 %806  ;;  %v887_v40 = vmul.f32 %v875_v48, %v3826_v35 }
 0x118   : > { %v884_v49 = vmul.f32 %v863_v47, %v3826_v35  ;;  %v822_v55 = vmul.f32 %v807_v50, %v3792_v56 }
 0x11a   : > { %v892_v51 = vadd.f32 %v884_v49, %v828_v17  ;;  %v830_v52 = vadd.f32 %v822_v55, %v766_v60  ;;  %v886_v17 = vmul.f32 %v871_v42, %v3826_v35  ;;  %v954_v49 = vadd.f32 %v946_v13, %v890_v46 }
 0x11c   : > { %v894_v5 = vadd.f32 %v886_v17, %v830_v52 }
 0x11e   : > { %v987_v57 = vpop.permute.xlu2 %986 }
 0x11f   : > { %v867_v53 = vpop.permute.xlu1 %866  ;;  %v811_v54 = vpop.permute.xlu0 %810  ;;  %v1011_v41 = vmul.f32 %v987_v57, %v376_v11 }
 0x120   : > { %v823_v22 = vmul.f32 %v811_v54, %v3792_v56  ;;  %v885_v42 = vmul.f32 %v867_v53, %v3826_v35 }
 0x122   : > { %v831_v36 = vadd.f32 %v823_v22, %v767_v39  ;;  %v893_v57 = vadd.f32 %v885_v42, %v3820_v25 }
 0x124   : > { %v895_v34 = vadd.f32 %v887_v40, %v831_v36 }
 0x126   : > { %v991_v63 = vpop.permute.xlu2 %990 }
 0x127   : > { %v815_v61 = vpop.permute.xlu1 %814  ;;  %v923_v62 = vpop.permute.xlu0 %922  ;;  %v1012_v53 = vmul.f32 %v991_v63, %v376_v11 }
 0x128   : > { %v824_v19 = vmul.f32 %v815_v61, %v3792_v56  ;;  %v947_v20 = vmul.f32 %v923_v62, %v375_v8 }
 0x12a   : > { %v832_v58 = vadd.f32 %v824_v19, %v768_v33  ;;  %v955_v60 = vadd.f32 %v947_v20, %v891_v45 }
 0x12c   : > { %v1019_v55 = vadd.f32 %v1011_v41, %v955_v60 }
 0x12e   : > { %v943_v2 = vpop.permute.xlu2 %942 }
 0x12f   : > { %v979_v0 = vpop.permute.xlu1 %978  ;;  %v927_v1 = vpop.permute.xlu0 %926  ;;  %v952_v50 = vmul.f32 %v943_v2, %v375_v8 }
 0x130   : > { %v1009_v14 = vmul.f32 %v979_v0, %v376_v11  ;;  %v948_v30 = vmul.f32 %v927_v1, %v375_v8 }
 0x132   : > { %v1017_v21 = vadd.f32 %v1009_v14, %v953_v16  ;;  %v956_v33 = vadd.f32 %v948_v30, %v892_v51 }
 0x136   : > { %v1003_v6 = vpop.permute.xlu2 %1002 }
 0x137   : > { %v983_v3 = vpop.permute.xlu1 %982  ;;  %v931_v4 = vpop.permute.xlu0 %930 }
 0x138   : > { %v1010_v37 = vmul.f32 %v983_v3, %v376_v11  ;;  %v949_v52 = vmul.f32 %v931_v4, %v375_v8  ;;  %v1015_v4 = vmul.f32 %v1003_v6, %v376_v11 }
 0x13a   : > { %v1018_v61 = vadd.f32 %v1010_v37, %v954_v49 }
 0x13e   : > { %v1007_v15 = vpop.permute.xlu2 %1006 }
 0x13f   : > { %v935_v59 = vpop.permute.xlu1 %934  ;;  %v879_v7 = vpop.permute.xlu0 %878  ;;  %v1016_v46 = vmul.f32 %v1007_v15, %v376_v11 }
 0x140   : > { %v950_v18 = vmul.f32 %v935_v59, %v375_v8  ;;  %v888_v24 = vmul.f32 %v879_v7, %v3826_v35  ;;  %v1020_v7 = vadd.f32 %v1012_v53, %v956_v33 }
 0x142   : > { %v958_v29 = vadd.f32 %v950_v18, %v894_v5  ;;  %v896_v56 = vadd.f32 %v888_v24, %v832_v58 }
 0x144   : > { %v960_v1 = vadd.f32 %v952_v50, %v896_v56 }
 0x146   : > { %v1071_v43 = vpop.permute.xlu2 %1070  ;;  %v1024_v16 = vadd.f32 %v1016_v46, %v960_v1 }
 0x147   : > { %v995_v9 = vpop.permute.xlu1 %994  ;;  %v939_v10 = vpop.permute.xlu0 %938 }
 0x148   : > { %v951_v44 = vmul.f32 %v939_v10, %v375_v8  ;;  %v1013_v3 = vmul.f32 %v995_v9, %v376_v11  ;;  %v957_v8 = vadd.f32 %v949_v52, %v893_v57 }
 0x14a   : > { %v959_v35 = vadd.f32 %v951_v44, %v895_v34  ;;  %v1021_v9 = vadd.f32 %v1013_v3, %v957_v8 }
 0x14c   : > { %v1023_v17 = vadd.f32 %v1015_v4, %v959_v35 }
 0x14f   : > { %v1051_v23 = vpop.permute.xlu1 %1050  ;;  %v999_v28 = vpop.permute.xlu0 %998 }
 0x150   : > { %v1081_v27 = vadd.f32 %v1051_v23, %v1017_v21  ;;  %v1014_v26 = vmul.f32 %v999_v28, %v376_v11 }
 0x152   : > { %v1089_v32 = vmax.f32 %v1081_v27, 0.0  ;;  %v1022_v38 = vadd.f32 %v1014_v26, %v958_v29 }
 0x154   : > { %v1097_v31 = vpack.c.bf16 %v1089_v32, %v1089_v32  ;;  %v1086_v47 = vadd.f32 %v1071_v43, %v1022_v38 }
 0x156   : > { %v1202_v45 = vunpack.c.l.b16 %v1097_v31  ;;  %v1094_v39 = vmax.f32 %v1086_v47, 0.0 }
 0x157   : > { %v1059_v54 = vpop.permute.xlu1 %1058  ;;  %v1055_v0 = vpop.permute.xlu0 %1054 }
 0x158   : > { %v1083_v62 = vadd.f32 %v1059_v54, %v1019_v55  ;;  %v1102_v48 = vpack.c.bf16 %v1094_v39, %v1094_v39  ;;  %v1082_v59 = vadd.f32 %v1055_v0, %v1018_v61  ;;  %v3843_v2 = vunpack.i.l.s16 %v1202_v45 }
 0x15a   : > { %v1091_v51 = vmax.f32 %v1083_v62, 0.0  ;;  %v1207_v10 = vunpack.c.l.b16 %v1102_v48  ;;  %v1090_v12 = vmax.f32 %v1082_v59, 0.0  ;;  %v1226_v15 = vrot.slane %v3843_v2, 1 }
 0x15b   : > { %v1303_v19 = vrot.slane %v3843_v2, 2  ;;  %v1892_v20 = vrot.slane %v3843_v2, 4  ;;  %v1505_v22 = vrot.slane %v3843_v2, 3  ;;  %v2179_v5 = vrot.slane %v3843_v2, 5 }
 0x15c   : > { %v1099_v14 = vpack.c.bf16 %v1091_v51, %v1091_v51  ;;  %v3845_v25 = vunpack.i.l.s16 %v1207_v10  ;;  %v1098_v63 = vpack.c.bf16 %v1090_v12, %v1090_v12 }
 0x15e   : > { %v1204_v18 = vunpack.c.l.b16 %v1099_v14  ;;  %v1203_v6 = vunpack.c.l.b16 %v1098_v63  ;;  %v1277_v21 = vrot.slane %v3845_v25, 3  ;;  %v1238_v28 = vrot.slane %v3845_v25, 4 }
 0x15f   : > { %v1067_v11 = vpop.permute.xlu1 %1066  ;;  %v1063_v27 = vpop.permute.xlu0 %1062  ;;  %v1311_v29 = vrot.slane %v3845_v25, 5  ;;  %v1900_v60 = vrot.slane %v3845_v25, 7  ;;  %v1513_v30 = vrot.slane %v3845_v25, 6 }
 0x160   : > { %v3853_v23 = vunpack.i.l.s16 %v1204_v18  ;;  %v1085_v24 = vadd.f32 %v1067_v11, %v1021_v9  ;;  %v3857_v26 = vunpack.i.l.s16 %v1203_v6  ;;  %v1084_v58 = vadd.f32 %v1063_v27, %v1020_v7 }
 0x162   : > { %v1093_v32 = vmax.f32 %v1085_v24, 0.0  ;;  %v1271_v13 = vrot.slane %v3853_v23, 6  ;;  %v1229_v36 = vrot.slane %v3853_v23, 7  ;;  %v1895_v37 = vrot.slane %v3853_v23, 2 }
 0x163   : > { %v1092_v38 = vmax.f32 %v1084_v58, 0.0  ;;  %v1269_v41 = vrot.slane %v3857_v26, 7  ;;  %v1228_v42 = vsel %vm1227_vm0, %v3857_v26, %v1226_v15  ;;  %v1304_v56 = vrot.slane %v3857_v26, 1 }
 0x164   : > { %v1101_v43 = vpack.c.bf16 %v1093_v32, %v1093_v32  ;;  %v1231_v31 = vsel %vm1230_vm1, %v1229_v36, %v1228_v42  ;;  %v1893_v40 = vrot.slane %v3857_v26, 3  ;;  %v1506_v44 = vrot.slane %v3857_v26, 2 }
 0x165   : > { %v1100_v47 = vpack.c.bf16 %v1092_v38, %v1092_v38  ;;  %v1270_v49 = vsel %vm1227_vm0, %v1269_v41, %v3843_v2  ;;  %v1305_v50 = vsel %vm1227_vm0, %v1304_v56, %v1303_v19  ;;  %v1508_v33 = vrot.slane %v3853_v23, 1 }
 0x166   : > { %v1206_v45 = vunpack.c.l.b16 %v1101_v43  ;;  %v1272_v55 = vsel %vm1230_vm1, %v1271_v13, %v1270_v49  ;;  %v1306_v52 = vsel %vm1230_vm1, %v3853_v23, %v1305_v50  ;;  %v1894_v34 = vsel %vm1227_vm0, %v1893_v40, %v1892_v20 }
 0x167   : > { %v1205_v39 = vunpack.c.l.b16 %v1100_v47  ;;  %v1079_v54 = vpop.permute.xlu1 %1078  ;;  %v1896_v61 = vsel %vm1230_vm1, %v1895_v37, %v1894_v34  ;;  %v1507_v57 = vsel %vm1227_vm0, %v1506_v44, %v1505_v22  ;;  %v2180_v53 = vrot.slane %v3857_v26, 4  ;;  %v1075_v1 = vpop.permute.xlu0 %1074 }
 0x168   : > { %v3882_v62 = vunpack.i.l.s16 %v1206_v45  ;;  %v1088_v0 = vadd.f32 %v1079_v54, %v1024_v16  ;;  %v1509_v3 = vsel %vm1230_vm1, %v1508_v33, %v1507_v57  ;;  %v2182_v35 = vrot.slane %v3853_v23, 3 }
 0x169   : > { %v3886_v48 = vunpack.i.l.s16 %v1205_v39  ;;  %v1087_v59 = vadd.f32 %v1075_v1, %v1023_v17  ;;  %v2181_v46 = vsel %vm1227_vm0, %v2180_v53, %v2179_v5  ;;  %v2467_v51 = vrot.slane %v3857_v26, 5 }
 0x16a   : > { %v1096_v7 = vmax.f32 %v1088_v0, 0.0  ;;  %v1275_v4 = vrot.slane %v3882_v62, 4  ;;  %v1235_v8 = vrot.slane %v3882_v62, 5  ;;  %v1309_v10 = vrot.slane %v3882_v62, 6 }
 0x16b   : > { %v1095_v12 = vmax.f32 %v1087_v59, 0.0  ;;  %v1273_v14 = vrot.slane %v3886_v48, 5  ;;  %v1232_v16 = vrot.slane %v3886_v48, 6  ;;  %v1307_v63 = vrot.slane %v3886_v48, 7 }
 0x16c   : > { %v1104_v9 = vpack.c.bf16 %v1096_v7, %v1096_v7  ;;  %v1897_v17 = vrot.slane %v3886_v48, 1  ;;  %v1510_v18 = vsel %vm1233_vm2, %v3886_v48, %v1509_v3  ;;  %v1511_v15 = vrot.slane %v3882_v62, 7 }
 0x16d   : > { %v1103_v19 = vpack.c.bf16 %v1095_v12, %v1095_v12  ;;  %v1274_v20 = vsel %vm1233_vm2, %v1273_v14, %v1272_v55  ;;  %v1234_v6 = vsel %vm1233_vm2, %v1232_v16, %v1231_v31  ;;  %v1308_v11 = vsel %vm1233_vm2, %v1307_v63, %v1306_v52  ;;  %v3959_v14 = vld [vmem:[%s4512_s3 + $0x4] sm:$0xf] }
 0x16e   : > { %v1209_v22 = vunpack.c.l.b16 %v1104_v9  ;;  %v1276_v5 = vsel %vm1236_vm3, %v1275_v4, %v1274_v20  ;;  %v1237_v24 = vsel %vm1236_vm3, %v1235_v8, %v1234_v6  ;;  %v1310_v27 = vsel %vm1236_vm3, %v1309_v10, %v1308_v11 }
 0x16f   : > { %v1208_v58 = vunpack.c.l.b16 %v1103_v19  ;;  %v1278_v32 = vsel %vm1239_vm4, %v1277_v21, %v1276_v5  ;;  %v1240_v13 = vsel %vm1239_vm4, %v1238_v28, %v1237_v24  ;;  %v1312_v36 = vsel %vm1239_vm4, %v1311_v29, %v1310_v27 }
 0x170   : > { %v3915_v37 = vunpack.i.l.s16 %v1209_v22  ;;  %v1898_v38 = vsel %vm1233_vm2, %v1897_v17, %v1896_v61  ;;  %v1512_v41 = vsel %vm1236_vm3, %v1511_v15, %v1510_v18  ;;  %v2183_v42 = vsel %vm1230_vm1, %v2182_v35, %v2181_v46 }
 0x171   : > { %v2963_v56 = vunpack.i.l.s16 %v1208_v58  ;;  %v1899_v21 = vsel %vm1236_vm3, %v3882_v62, %v1898_v38  ;;  %v1514_v28 = vsel %vm1239_vm4, %v1513_v30, %v1512_v41  ;;  %v2184_v43 = vrot.slane %v3886_v48, 2  ;;  %v1470_v58 = vld [vmem:[%s4513_s4] sm:$0xff]  ;;  %v2728_v38 = vld [vmem:[%s4515_s6 + $0x8] sm:$0xff] }
 0x172   : > { %v1281_v29 = vrot.slane %v3915_v37, 1  ;;  %v1244_v31 = vrot.slane %v3915_v37, 2  ;;  %v1315_v40 = vrot.slane %v3915_v37, 3  ;;  %v1901_v44 = vsel %vm1239_vm4, %v1900_v60, %v1899_v21  ;;  %v4031_v41 = vld [vmem:[%s4512_s3 + $0x8] sm:$0xf]  ;;  %v2731_v21 = vld [vmem:[%s4515_s6 + $0x20] sm:$0xff] }
 0x173   : > { %v1279_v47 = vrot.slane %v2963_v56, 2  ;;  %v1241_v49 = vrot.slane %v2963_v56, 3  ;;  %v1313_v50 = vrot.slane %v2963_v56, 4  ;;  %v1902_v33 = vrot.slane %v2963_v56, 6 }
 0x174   : > { %v1904_v45 = vrot.slane %v3915_v37, 5  ;;  %v1515_v55 = vrot.slane %v2963_v56, 5  ;;  %v1517_v30 = vrot.slane %v3915_v37, 4  ;;  %v2185_v52 = vsel %vm1233_vm2, %v2184_v43, %v2183_v42  ;;  %v2732_v42 = vld [vmem:[%s4515_s6 + $0x28] sm:$0xff]  ;;  %v2733_v43 = vld [vmem:[%s4515_s6 + $0x30] sm:$0xff] }
 0x175   : > { %v1280_v34 = vsel %vm1242_vm6, %v1279_v47, %v1278_v32  ;;  %v1243_v39 = vsel %vm1242_vm6, %v1241_v49, %v1240_v13  ;;  %v1314_v54 = vsel %vm1242_vm6, %v1313_v50, %v1312_v36  ;;  %v1903_v61 = vsel %vm1242_vm6, %v1902_v33, %v1901_v44  ;;  %v4007_v32 = vld [vmem:[%s4512_s3] sm:$0xf]  ;;  %v2729_v36 = vld [vmem:[%s4515_s6 + $0x10] sm:$0xff]  ;;  %v2740_v50 = vld [vmem:[%s4515_s6 + $0x68] sm:$0xff] }
 0x176   : > { %v1282_v60 = vsel %vm1245_vm5, %v1281_v29, %v1280_v34  ;;  %v1246_v57 = vsel %vm1245_vm5, %v1244_v31, %v1243_v39  ;;  %v1316_v53 = vsel %vm1245_vm5, %v1315_v40, %v1314_v54  ;;  %v1905_v0 = vsel %vm1245_vm5, %v1904_v45, %v1903_v61  ;;  %v2734_v29 = vld [vmem:[%s4515_s6 + $0x38] sm:$0xff]  ;;  %v2736_v40 = vld [vmem:[%s4515_s6 + $0x48] sm:$0xff]  ;;  %v2737_v44 = vld [vmem:[%s4515_s6 + $0x50] sm:$0xff] }
 0x177   : > { %v1283_v1 = vpack.c.b16 %v1282_v60, %v1282_v60  ;;  %v1247_v3 = vpack.c.b16 %v1246_v57, %v1246_v57  ;;  %v2466_v35 = vrot.slane %v3843_v2, 6  ;;  %v1317_v59 = vpack.c.b16 %v1316_v53, %v1316_v53  ;;  %v2738_v31 = vld [vmem:[%s4515_s6 + $0x58] sm:$0xff]  ;;  %v2741_v47 = vld [vmem:[%s4515_s6 + $0x70] sm:$0xff]  ;;  %v2739_v49 = vld [vmem:[%s4515_s6 + $0x60] sm:$0xff] }
 0x178   : > { %v1516_v46 = vsel %vm1242_vm6, %v1515_v55, %v1514_v28  ;;  %v2186_v7 = vrot.slane %v3882_v62, 1  ;;  %v2189_v4 = vrot.slane %v2963_v56, 7  ;;  %v2191_v2 = vrot.slane %v3915_v37, 6  ;;  %v2735_v28 = vld [vmem:[%s4515_s6 + $0x40] sm:$0xff]  ;;  %v2742_v33 = vld [vmem:[%s4515_s6 + $0x78] sm:$0xff] }
 0x179   : > { %1404 = vrot.lane.b32.xlu1 %v1283_v1, %s3422_s12  ;;  %1338 = vrot.lane.b32.xlu2 %v1283_v1, %s3423_s19  ;;  %v3949_v8 = vsel %vm1252_vm7, %v1247_v3, 0  ;;  %v1288_v10 = vsel %vm1252_vm7, %v1283_v1, 0  ;;  %v1518_v12 = vsel %vm1245_vm5, %v1517_v30, %v1516_v46  ;;  %v2468_v63 = vsel %vm1227_vm0, %v2467_v51, %v2466_v35  ;;  %v4078_v30 = vld [vmem:[%s4512_s3 + $0xc] sm:$0xf]  ;;  %v4090_v54 = vld [vmem:[%s4512_s3 + $0x1c] sm:$0xf] }
 0x17a   : > { %1360 = vrot.lane.b32.xlu0 %v1247_v3, %s3423_s19  ;;  %1263 = vmatpush.bf16.msra.mxu0 %v3949_v8  ;;  %v2187_v16 = vsel %vm1236_vm3, %v2186_v7, %v2185_v52  ;;  %v2469_v9 = vrot.slane %v3853_v23, 4  ;;  %v2471_v18 = vrot.slane %v3886_v48, 3  ;;  %v2473_v15 = vrot.slane %v3882_v62, 2  ;;  %v4105_v1 = vld [vmem:[%s4512_s3 + $0x10] sm:$0xf] }
 0x17b   : > { %v2188_v17 = vsel %vm1239_vm4, %v3845_v25, %v2187_v16  ;;  %v2475_v6 = vrot.slane %v3845_v25, 1  ;;  %v3976_v26 = vsel %vm1252_vm7, %v1317_v59, 0  ;;  %v2478_v48 = vrot.slane %v3915_v37, 7  ;;  %v2727_v37 = vld [vmem:[%s4515_s6] sm:$0xff]  ;;  %v4116_v7 = vld [vmem:[%s4512_s3 + $0x14] sm:$0xf] }
 0x17c   : > { %v2190_v19 = vsel %vm1242_vm6, %v2189_v4, %v2188_v17  ;;  %v2470_v20 = vsel %vm1230_vm1, %v2469_v9, %v2468_v63  ;;  %v3989_v5 = vpack.c.b16 %v1905_v0, %v1905_v0  ;;  %v1519_v24 = vpack.c.b16 %v1518_v12, %v1518_v12  ;;  %v4099_v0 = vld [vmem:[%s4512_s3 + $0x18] sm:$0xf]  ;;  %v4130_v12 = vld [vmem:[%s4512_s3 + $0x20] sm:$0xf] }
 0x17d   : > { %2965 = vmatmul.msk.bf16.vlgmr.msra.gmra.mxu0 %vm1248_vm8, %v3959_v14  ;;  %v2192_v23 = vsel %vm1245_vm5, %v2191_v2, %v2190_v19  ;;  %v2472_v51 = vsel %vm1233_vm2, %v2471_v18, %v2470_v20 }
 0x17e   : > { %1297 = vmatpush.bf16.msrb.mxu0 %v1288_v10  ;;  %v2474_v62 = vsel %vm1236_vm3, %v2473_v15, %v2472_v51  ;;  %v3995_v27 = vpack.c.b16 %v2192_v23, %v2192_v23  ;;  %v4084_v39 = vsel %vm1252_vm7, %v1519_v24, 0  ;;  %v4156_v19 = vsel %vm1252_vm7, %v3989_v5, 0 }
 0x17f   : > { %v2476_v11 = vsel %vm1239_vm4, %v2475_v6, %v2474_v62 }
 0x180   : > { %v2477_v25 = vsel %vm1242_vm6, %v2963_v56, %v2476_v11  ;;  %v2730_v56 = vld [vmem:[%s4515_s6 + $0x18] sm:$0xff] }
 0x181   : > { %1448 = vrot.lane.b32.xlu1 %v1317_v59, %s3422_s12  ;;  %1426 = vrot.lane.b32.xlu2 %v1247_v3, %s3422_s12  ;;  %v2479_v22 = vsel %vm1245_vm5, %v2478_v48, %v2477_v25 }
 0x182   : > { %1331 = vmatpush.bf16.msra.mxu0 %v3976_v26  ;;  %1382 = vrot.lane.b32.xlu0 %v1317_v59, %s3423_s19  ;;  %v4011_v13 = vpack.c.b16 %v2479_v22, %v2479_v22 }
 0x189   : > { %1952 = vrot.lane.b32.xlu1 %v3989_v5, %s3423_s19  ;;  %1612 = vrot.lane.b32.xlu2 %v1519_v24, %s3422_s12 }
 0x18a   : > { %1565 = vrot.lane.b32.xlu0 %v1519_v24, %s3423_s19 }
 0x18d   : > { %2966 = vmatmul.msk.bf16.vlgmr.msrb.gmra.mxu0 %vm1248_vm8, %v4007_v32 }
 0x191   : > { %2239 = vrot.lane.b32.xlu1 %v3995_v27, %s3423_s19  ;;  %1999 = vrot.lane.b32.xlu2 %v3989_v5, %s3422_s12 }
 0x192   : > { %1473 = vperm.xlu0 %3298, %v1470_v58  }
 0x199   : > { %2573 = vrot.lane.b32.xlu1 %v4011_v13, %s3422_s12  ;;  %2286 = vrot.lane.b32.xlu2 %v3995_v27, %s3422_s12 }
 0x19a   : > { %2526 = vrot.lane.b32.xlu0 %v4011_v13, %s3423_s19  ;;  %s366_s19 = scalar_lea.vmem %s4516_s7, %s2956_s17 }
 0x19d   : > { %2967 = vmatmul.msk.bf16.vlgmr.msra.gmra.mxu0 %vm1248_vm8, %v4031_v41 }
 0x1a1   : > { %2755 = vperm.xlu1 %3299, %v2729_v36   ;;  %2745 = vperm.xlu2 %3300, %v2727_v37  }
 0x1a2   : > { %2750 = vperm.xlu0 %3298, %v2728_v38  }
 0x1a9   : > { %2770 = vperm.xlu1 %3299, %v2732_v42   ;;  %2760 = vperm.xlu2 %3300, %v2730_v56  }
 0x1aa   : > { %2765 = vperm.xlu0 %3298, %v2731_v21  }
 0x1b1   : > { %2785 = vperm.xlu1 %3299, %v2735_v28   ;;  %2775 = vperm.xlu2 %3300, %v2733_v43  }
 0x1b2   : > { %2780 = vperm.xlu0 %3298, %v2734_v29  }
 0x1b9   : > { %2800 = vperm.xlu1 %3299, %v2738_v31   ;;  %2790 = vperm.xlu2 %3300, %v2736_v40  }
 0x1ba   : > { %2795 = vperm.xlu0 %3298, %v2737_v44  }
 0x1c1   : > { %2815 = vperm.xlu1 %3299, %v2741_v47   ;;  %2805 = vperm.xlu2 %3300, %v2739_v49   ;;  %v4198_v49 = vsel %vm1252_vm7, %v3995_v27, 0 }
 0x1c2   : > { %2810 = vperm.xlu0 %3298, %v2740_v50  }
 0x1c9   : > { %2820 = vperm.xlu2 %3300, %v2742_v33  }
 0x1d3   : > { %v1339_v45 = vpop.permute.xlu2 %1338 }
 0x1d4   : > { %v1344_v55 = vsel %vm1252_vm7, %v1339_v45, 0 }
 0x1d5   : > { %1353 = vmatpush.bf16.msra.mxu3 %v1344_v55 }
 0x1d8   : > { %2968 = vmatmul.msk.bf16.vlgmr.msra.gmra.mxu3 %vm1248_vm8, %v4078_v30 }
 0x1db   : > { %v1427_v52 = vpop.permute.xlu2 %1426 }
 0x1dc   : > { %v1432_v34 = vsel %vm1252_vm7, %v1427_v52, 0 }
 0x1dd   : > { %1441 = vmatpush.bf16.msrb.mxu3 %v1432_v34 }
 0x1e1   : > { %1530 = vmatpush.bf16.msra.mxu3 %v4084_v39 }
 0x1e3   : > { %v1613_v16 = vpop.permute.xlu2 %1612 }
 0x1e4   : > { %v4139_v63 = vsel %vm1252_vm7, %v1613_v16, 0 }
 0x1e8   : > { %2972 = vmatmul.msk.bf16.vlgmr.msrb.gmra.mxu3 %vm1248_vm8, %v4090_v54 }
 0x1e9   : > { %1591 = vmatpush.bf16.msrb.mxu3 %v1432_v34 }
 0x1eb   : > { %v1405_v61 = vpop.permute.xlu1 %1404  ;;  %v2000_v51 = vpop.permute.xlu2 %1999 }
 0x1ec   : > { %v1361_v60 = vpop.permute.xlu0 %1360  ;;  %v1410_v57 = vsel %vm1252_vm7, %v1405_v61, 0  ;;  %v4176_v48 = vsel %vm1252_vm7, %v2000_v51, 0  ;;  %v3212_v61 = vld [vmem:[%s4514_s5] sm:$0xff] }
 0x1ed   : > { %v1366_v53 = vsel %vm1252_vm7, %v1361_v60, 0  ;;  %1419 = vmatpush.bf16.msra.mxu2 %v1410_v57 }
 0x1ee   : > { %1375 = vmatpush.bf16.msrb.mxu0 %v1366_v53 }
 0x1f0   : > { %2971 = vmatmul.msk.bf16.vlgmr.msra.gmra.mxu2 %vm1248_vm8, %v4099_v0 }
 0x1f1   : > { %1499 = vmatpush.bf16.msrb.mxu2 %v3949_v8  ;;  %2969 = vmatmul.msk.bf16.vlgmr.msrb.gmra.mxu0 %vm1248_vm8, %v4105_v1 }
 0x1f3   : > { %v1449_v3 = vpop.permute.xlu1 %1448 }
 0x1f4   : > { %v1454_v35 = vsel %vm1252_vm7, %v1449_v3, 0  ;;  %v1383_v59 = vpop.permute.xlu0 %1382 }
 0x1f5   : > { %v1388_v46 = vsel %vm1252_vm7, %v1383_v59, 0  ;;  %1463 = vmatpush.bf16.msra.mxu0 %v1454_v35 }
 0x1f6   : > { %1397 = vmatpush.bf16.msra.mxu1 %v1388_v46 }
 0x1f8   : > { %2976 = vmatmul.msk.bf16.vlgmr.msra.gmra.mxu3 %vm1248_vm8, %v4031_v41 }
 0x1f9   : > { %1544 = vmatpush.bf16.msrb.mxu0 %v1366_v53  ;;  %2970 = vmatmul.msk.bf16.vlgmr.msra.gmra.mxu1 %vm1248_vm8, %v4116_v7 }
 0x1fa   : > { %1486 = vmatpush.bf16.msrb.mxu1 %v3976_v26  ;;  %v1265_v8 = vpop.f32.mrf.mxu0 }
 0x1fc   : > { %v1566_v4 = vpop.permute.xlu0 %1565 }
 0x1fd   : > { %v4124_v10 = vsel %vm1252_vm7, %v1566_v4, 0 }
 0x1fe   : > { %1558 = vmatpush.bf16.msra.mxu1 %v1388_v46  ;;  %1577 = vmatpush.bf16.msra.mxu2 %v4124_v10 }
 0x200   : > { %2975 = vmatmul.msk.bf16.vlgmr.msrb.gmra.mxu2 %vm1248_vm8, %v4007_v32 }
 0x201   : > { %2973 = vmatmul.msk.bf16.vlgmr.msra.gmra.mxu0 %vm1248_vm8, %v4130_v12 }
 0x202   : > { %1605 = vmatpush.bf16.msra.mxu0 %v1454_v35  ;;  %v1267_v2 = vpop.f32.mrf.mxu0 }
 0x204   : > { %v4191_v44 = vpop.permute.xlu0 %1473 }
 0x208   : > { %2980 = vmatmul.msk.bf16.vlgmr.msrb.gmra.mxu3 %vm1248_vm8, %v4099_v0 }
 0x209   : > { %2974 = vmatmul.msk.bf16.vlgmr.msrb.gmra.mxu1 %vm1248_vm8, %v3959_v14 }
 0x20a   : > { %1624 = vmatpush.bf16.msrb.mxu1 %v4139_v63  ;;  %v1299_v9 = vpop.f32.mrf.mxu0 }
 0x20b   : > { %v1300_v17 = vadd.f32 %v1299_v9, %v1265_v8 }
 0x210   : > { %2979 = vmatmul.msk.bf16.vlgmr.msra.gmra.mxu2 %vm1248_vm8, %v4116_v7 }
 0x211   : > { %2977 = vmatmul.msk.bf16.vlgmr.msrb.gmra.mxu0 %vm1248_vm8, %v4078_v30 }
 0x212   : > { %1873 = vmatpush.bf16.msrb.mxu0 %v4084_v39  ;;  %v1301_v18 = vpop.f32.mrf.mxu0 }
 0x213   : > { %v3213_v18 = vld [vmem:[%s4514_s5 + $0x8] sm:$0xff] }
 0x219   : > { %2978 = vmatmul.msk.bf16.vlgmr.msra.gmra.mxu1 %vm1248_vm8, %v4105_v1 }
 0x21a   : > { %1886 = vmatpush.bf16.msra.mxu1 %v3976_v26  ;;  %v1333_v15 = vpop.f32.mrf.mxu0  ;;  %v1953_v26 = vpop.permute.xlu1 %1952 }
 0x21b   : > { %v1337_v20 = vadd.f32 %v1333_v15, %v1300_v17  ;;  %v4165_v23 = vsel %vm1252_vm7, %v1953_v26, 0 }
 0x221   : > { %2981 = vmatmul.msk.bf16.vlgmr.msra.gmra.mxu0 %vm1248_vm8, %v4090_v54 }
 0x222   : > { %1917 = vmatpush.bf16.msra.mxu0 %v4156_v19  ;;  %v1335_v6 = vpop.f32.mrf.mxu0  ;;  %v2240_v53 = vpop.permute.xlu1 %2239 }
 0x223   : > { %v2287_v6 = vpop.permute.xlu2 %2286 }
 0x229   : > { %2982 = vmatmul.msk.bf16.vlgmr.msrb.gmra.mxu1 %vm1248_vm8, %v4130_v12 }
 0x22a   : > { %1931 = vmatpush.bf16.msrb.mxu1 %v1388_v46  ;;  %v4207_v46 = vsel %vm1252_vm7, %v2240_v53, 0 }
 0x231   : > { %3063 = vmatmul.msk.bf16.vlgmr.msrb.gmra.mxu0 %vm1248_vm8, %v3959_v14 }
 0x232   : > { %1945 = vmatpush.bf16.msrb.mxu0 %v4124_v10 }
 0x239   : > { %3064 = vmatmul.msk.bf16.vlgmr.msra.gmra.mxu1 %vm1248_vm8, %v4007_v32 }
 0x23a   : > { %1964 = vmatpush.bf16.msra.mxu1 %v4165_v23 }
 0x241   : > { %3065 = vmatmul.msk.bf16.vlgmr.msra.gmra.mxu0 %vm1248_vm8, %v4031_v41 }
 0x242   : > { %1978 = vmatpush.bf16.msra.mxu0 %v1454_v35 }
 0x249   : > { %3066 = vmatmul.msk.bf16.vlgmr.msrb.gmra.mxu1 %vm1248_vm8, %v4078_v30 }
 0x24a   : > { %1992 = vmatpush.bf16.msrb.mxu1 %v4139_v63 }
 0x251   : > { %3067 = vmatmul.msk.bf16.vlgmr.msrb.gmra.mxu0 %vm1248_vm8, %v4105_v1 }
 0x252   : > { %2011 = vmatpush.bf16.msrb.mxu0 %v4176_v48 }
 0x259   : > { %3068 = vmatmul.msk.bf16.vlgmr.msra.gmra.mxu1 %vm1248_vm8, %v4116_v7 }
 0x25b   : > { %v1355_v62 = vpop.f32.mrf.mxu3 }
 0x25c   : > { %v1359_v5 = vadd.f32 %v1355_v62, %v1337_v20 }
 0x261   : > { %3069 = vmatmul.msk.bf16.vlgmr.msra.gmra.mxu0 %vm1248_vm8, %v4099_v0 }
 0x262   : > { %2160 = vmatpush.bf16.msra.mxu0 %v4156_v19 }
 0x263   : > { %v1357_v11 = vpop.f32.mrf.mxu3 }
 0x264   : > { %v4217_v11 = vsel %vm1252_vm7, %v2287_v6, 0 }
 0x269   : > { %3070 = vmatmul.msk.bf16.vlgmr.msrb.gmra.mxu1 %vm1248_vm8, %v4090_v54 }
 0x26b   : > { %v1443_v25 = vpop.f32.mrf.mxu3 }
 0x26e   : > { %v1377_v22 = vpop.f32.mrf.mxu0 }
 0x26f   : > { %v1381_v36 = vadd.f32 %v1377_v22, %v1359_v5 }
 0x271   : > { %3071 = vmatmul.msk.bf16.vlgmr.msrb.gmra.mxu0 %vm1248_vm8, %v4130_v12 }
 0x272   : > { %2173 = vmatpush.bf16.msrb.mxu0 %v4084_v39 }
 0x273   : > { %v1421_v24 = vpop.f32.mrf.mxu2  ;;  %v1445_v58 = vpop.f32.mrf.mxu3 }
 0x274   : > { %v3214_v58 = vld [vmem:[%s4514_s5 + $0x10] sm:$0xff] }
 0x276   : > { %v1379_v37 = vpop.f32.mrf.mxu0  ;;  %v1399_v38 = vpop.f32.mrf.mxu1 }
 0x277   : > { %v1403_v42 = vadd.f32 %v1399_v38, %v1381_v36 }
 0x279   : > { %v1425_v56 = vadd.f32 %v1421_v24, %v1403_v42 }
 0x27b   : > { %v1423_v21 = vpop.f32.mrf.mxu2  ;;  %v1532_v28 = vpop.f32.mrf.mxu3  ;;  %v1447_v43 = vadd.f32 %v1443_v25, %v1425_v56 }
 0x27e   : > { %v1401_v29 = vpop.f32.mrf.mxu1  ;;  %v1465_v31 = vpop.f32.mrf.mxu0 }
 0x27f   : > { %v1469_v40 = vadd.f32 %v1465_v31, %v1447_v43  ;;  %v3215_v31 = vld [vmem:[%s4514_s5 + $0x18] sm:$0xff] }
 0x281   : > { %v1476_v47 = vadd.f32 %v4191_v44, %v1469_v40  ;;  %3112 = vmatmul.msk.bf16.vlgmr.msra.gmra.mxu0 %vm1248_vm8, %v3959_v14 }
 0x282   : > { %2204 = vmatpush.bf16.msra.mxu0 %v4198_v49 }
 0x283   : > { %v1477_v50 = vmax.f32 %v1476_v47, 0.0  ;;  %v1501_v33 = vpop.f32.mrf.mxu2  ;;  %v1534_v45 = vpop.f32.mrf.mxu3 }
 0x285   : > { %v1478_v55 = vpack.c.bf16 %v1477_v50, %v1477_v50  ;;  %v3216_v50 = vld [vmem:[%s4514_s5 + $0x20] sm:$0xff] }
 0x286   : > { %v1467_v52 = vpop.f32.mrf.mxu0  ;;  %v1488_v34 = vpop.f32.mrf.mxu1 }
 0x287   : > { %v1815_v39 = vsel %vm1252_vm7, %v1478_v55, 0  ;;  %v1502_v60 = vadd.f32 %v1501_v33, %v1488_v34  ;;  %v2527_v33 = vpop.permute.xlu0 %2526  ;;  %v3222_v52 = vld [vmem:[%s4514_s5 + $0x50] sm:$0xff] }
 0x288   : > { %1824 = vmatpush.bf16.msra.mxu3 %v1815_v39  ;;  %v2529_v34 = vsel %vm1252_vm7, %v2527_v33, 0 }
 0x289   : > { %v1536_v59 = vadd.f32 %v1532_v28, %v1502_v60  ;;  %v3220_v28 = vld [vmem:[%s4514_s5 + $0x40] sm:$0xff]  ;;  %v3217_v60 = vld [vmem:[%s4514_s5 + $0x28] sm:$0xff] }
 0x28b   : > { %3055 = vmatmul.msk.bf16.vlgmr.msra.gmra.mxu3 %vm1248_vm8, %v3212_v61  ;;  %v1503_v27 = vpop.f32.mrf.mxu2  ;;  %v1593_v57 = vpop.f32.mrf.mxu3 }
 0x28c   : > { %v2574_v27 = vpop.permute.xlu1 %2573 }
 0x28e   : > { %v1490_v3 = vpop.f32.mrf.mxu1  ;;  %v1546_v35 = vpop.f32.mrf.mxu0 }
 0x28f   : > { %v1550_v4 = vadd.f32 %v1546_v35, %v1536_v59  ;;  %v3223_v35 = vld [vmem:[%s4514_s5 + $0x58] sm:$0xff] }
 0x291   : > { %3113 = vmatmul.msk.bf16.vlgmr.msrb.gmra.mxu0 %vm1248_vm8, %v4007_v32 }
 0x292   : > { %2251 = vmatpush.bf16.msrb.mxu0 %v4207_v46 }
 0x293   : > { %v1579_v8 = vpop.f32.mrf.mxu2  ;;  %v1595_v2 = vpop.f32.mrf.mxu3 }
 0x296   : > { %v1548_v16 = vpop.f32.mrf.mxu0  ;;  %v1560_v9 = vpop.f32.mrf.mxu1 }
 0x297   : > { %v1564_v17 = vadd.f32 %v1560_v9, %v1550_v4  ;;  %v3218_v9 = vld [vmem:[%s4514_s5 + $0x30] sm:$0xff] }
 0x299   : > { %v1583_v15 = vadd.f32 %v1579_v8, %v1564_v17 }
 0x29b   : > { %3056 = vmatmul.msk.bf16.gmra.mxu3 %vm1248_vm8, %v3213_v18  ;;  %v1581_v20 = vpop.f32.mrf.mxu2  ;;  %v1597_v62 = vadd.f32 %v1593_v57, %v1583_v15 }
 0x29e   : > { %v1562_v26 = vpop.f32.mrf.mxu1  ;;  %v1607_v51 = vpop.f32.mrf.mxu0 }
 0x29f   : > { %v1611_v25 = vadd.f32 %v1607_v51, %v1597_v62  ;;  %v3224_v51 = vld [vmem:[%s4514_s5 + $0x60] sm:$0xff] }
 0x2a1   : > { %3114 = vmatmul.msk.bf16.vlgmr.msra.gmra.mxu0 %vm1248_vm8, %v4031_v41 }
 0x2a2   : > { %2298 = vmatpush.bf16.msra.mxu0 %v4217_v11 }
 0x2a6   : > { %v1609_v22 = vpop.f32.mrf.mxu0  ;;  %v1626_v5 = vpop.f32.mrf.mxu1 }
 0x2a7   : > { %v1630_v24 = vadd.f32 %v1626_v5, %v1611_v25 }
 0x2a9   : > { %v1631_v36 = vadd.f32 %v1630_v24, %v4191_v44 }
 0x2ab   : > { %v1632_v37 = vmax.f32 %v1631_v36, 0.0  ;;  %3057 = vmatmul.msk.bf16.gmra.mxu3 %vm1248_vm8, %v3214_v58  ;;  %v3219_v58 = vld [vmem:[%s4514_s5 + $0x38] sm:$0xff]  ;;  %v3228_v36 = vld [vmem:[%s4514_s5 + $0x80] sm:$0xff] }
 0x2ad   : > { %v1633_v38 = vpack.c.bf16 %v1632_v37, %v1632_v37  ;;  %v3229_v37 = vld [vmem:[%s4514_s5 + $0x88] sm:$0xff] }
 0x2ae   : > { %v1628_v42 = vpop.f32.mrf.mxu1  ;;  %v1875_v56 = vpop.f32.mrf.mxu0 }
 0x2af   : > { %v1699_v21 = vsel %vm1252_vm7, %v1633_v38, 0 }
 0x2b0   : > { %1708 = vmatpush.bf16.msrb.mxu2 %v1699_v21  ;;  %v3233_v21 = vld [vmem:[%s4514_s5 + $0xa8] sm:$0xff] }
 0x2b1   : > { %3117 = vmatmul.msk.bf16.vlgmr.msrb.gmra.mxu0 %vm1248_vm8, %v4116_v7 }
 0x2b2   : > { %2460 = vmatpush.bf16.msrb.mxu0 %v4156_v19 }
 0x2b3   : > { %3015 = vmatmul.msk.bf16.vlgmr.msrb.gmra.mxu2 %vm1248_vm8, %v3220_v28  ;;  %v3227_v28 = vld [vmem:[%s4514_s5 + $0x78] sm:$0xff] }
 0x2b4   : > { %2218 = vmatpush.bf16.msra.mxu2 %v4124_v10  ;;  %v3221_v10 = vld [vmem:[%s4514_s5 + $0x48] sm:$0xff] }
 0x2b6   : > { %v1877_v43 = vpop.f32.mrf.mxu0  ;;  %v1888_v29 = vpop.f32.mrf.mxu1 }
 0x2b7   : > { %v1889_v3 = vadd.f32 %v1888_v29, %v1875_v56  ;;  %v3230_v56 = vld [vmem:[%s4514_s5 + $0x90] sm:$0xff]  ;;  %v3231_v29 = vld [vmem:[%s4514_s5 + $0x98] sm:$0xff] }
 0x2b8   : > { %2265 = vmatpush.bf16.msrb.mxu2 %v4139_v63 }
 0x2bb   : > { %3058 = vmatmul.msk.bf16.gmra.mxu3 %vm1248_vm8, %v3215_v31  ;;  %v3234_v31 = vld [vmem:[%s4514_s5 + $0xb0] sm:$0xff] }
 0x2be   : > { %v1890_v40 = vpop.f32.mrf.mxu1  ;;  %v1919_v47 = vpop.f32.mrf.mxu0 }
 0x2bf   : > { %v1923_v59 = vadd.f32 %v1919_v47, %v1889_v3 }
 0x2c1   : > { %3120 = vmatmul.msk.bf16.vlgmr.msra.gmra.mxu0 %vm1248_vm8, %v4130_v12 }
 0x2c2   : > { %2505 = vmatpush.bf16.msra.mxu0 %v4165_v23 }
 0x2c3   : > { %3016 = vmatmul.msk.bf16.gmra.mxu2 %vm1248_vm8, %v3221_v10 }
 0x2c6   : > { %v1921_v63 = vpop.f32.mrf.mxu0  ;;  %v1933_v19 = vpop.f32.mrf.mxu1 }
 0x2c7   : > { %v1937_v4 = vadd.f32 %v1933_v19, %v1923_v59  ;;  %v3235_v63 = vld [vmem:[%s4514_s5 + $0xb8] sm:$0xff] }
 0x2cb   : > { %3059 = vmatmul.msk.bf16.gmra.mxu3 %vm1248_vm8, %v3216_v50 }
 0x2ce   : > { %v1935_v45 = vpop.f32.mrf.mxu1  ;;  %v1947_v55 = vpop.f32.mrf.mxu0 }
 0x2cf   : > { %v1951_v16 = vadd.f32 %v1947_v55, %v1937_v4 }
 0x2d1   : > { %3162 = vmatmul.msk.bf16.vlgmr.msrb.gmra.mxu0 %vm1248_vm8, %v4007_v32  ;;  %v2576_v32 = vsel %vm1252_vm7, %v2574_v27, 0 }
 0x2d2   : > { %2538 = vmatpush.bf16.msrb.mxu0 %v2529_v34 }
 0x2d3   : > { %3017 = vmatmul.msk.bf16.gmra.mxu2 %vm1248_vm8, %v3222_v52 }
 0x2d6   : > { %v1949_v39 = vpop.f32.mrf.mxu0  ;;  %v1966_v61 = vpop.f32.mrf.mxu1 }
 0x2d7   : > { %v1970_v17 = vadd.f32 %v1966_v61, %v1951_v16 }
 0x2db   : > { %3060 = vmatmul.msk.bf16.gmra.mxu3 %vm1248_vm8, %v3217_v60 }
 0x2de   : > { %v1968_v57 = vpop.f32.mrf.mxu1  ;;  %v1980_v53 = vpop.f32.mrf.mxu0 }
 0x2df   : > { %v1984_v18 = vadd.f32 %v1980_v53, %v1970_v17 }
 0x2e1   : > { %3164 = vmatmul.msk.bf16.vlgmr.msra.gmra.mxu0 %vm1248_vm8, %v4078_v30 }
 0x2e2   : > { %2585 = vmatpush.bf16.msra.mxu0 %v2576_v32 }
 0x2e3   : > { %3018 = vmatmul.msk.bf16.gmra.mxu2 %vm1248_vm8, %v3223_v35 }
 0x2e6   : > { %v1982_v8 = vpop.f32.mrf.mxu0  ;;  %v1994_v2 = vpop.f32.mrf.mxu1 }
 0x2e7   : > { %v1998_v15 = vadd.f32 %v1994_v2, %v1984_v18 }
 0x2eb   : > { %3061 = vmatmul.msk.bf16.gmra.mxu3 %vm1248_vm8, %v3218_v9 }
 0x2ee   : > { %v1996_v20 = vpop.f32.mrf.mxu1  ;;  %v2013_v6 = vpop.f32.mrf.mxu0 }
 0x2ef   : > { %v2017_v26 = vadd.f32 %v2013_v6, %v1998_v15 }
 0x2f1   : > { %v2018_v62 = vadd.f32 %v2017_v26, %v4191_v44  ;;  %3166 = vmatmul.msk.bf16.vlgmr.msrb.gmra.mxu0 %vm1248_vm8, %v4116_v7  ;;  %v3225_v7 = vld [vmem:[%s4514_s5 + $0x68] sm:$0xff] }
 0x2f3   : > { %v2019_v25 = vmax.f32 %v2018_v62, 0.0  ;;  %3019 = vmatmul.msk.bf16.gmra.mxu2 %vm1248_vm8, %v3224_v51 }
 0x2f5   : > { %v2020_v22 = vpack.c.bf16 %v2019_v25, %v2019_v25 }
 0x2f6   : > { %v2015_v5 = vpop.f32.mrf.mxu0 }
 0x2f7   : > { %v2086_v24 = vsel %vm1252_vm7, %v2020_v22, 0 }
 0x2f8   : > { %2095 = vmatpush.bf16.msra.mxu1 %v2086_v24  ;;  %3252 = vmatpush.bf16.msrb.mxu3 %v2086_v24 }
 0x2fb   : > { %3062 = vmatmul.msk.bf16.gmra.mxu3 %vm1248_vm8, %v3219_v58  ;;  %3104 = vmatmul.msk.bf16.vlgmr.msra.gmra.mxu1 %vm1248_vm8, %v3228_v36 }
 0x2fc   : > { %2232 = vmatpush.bf16.msra.mxu3 %v4165_v23  ;;  %2552 = vmatpush.bf16.msrb.mxu1 %v4176_v48  ;;  %v3232_v23 = vld [vmem:[%s4514_s5 + $0xa0] sm:$0xff] }
 0x2fe   : > { %v2162_v16 = vpop.f32.mrf.mxu0 }
 0x301   : > { %3169 = vmatmul.msk.bf16.vlgmr.msra.gmra.mxu0 %vm1248_vm8, %v4130_v12  ;;  %v3226_v12 = vld [vmem:[%s4514_s5 + $0x70] sm:$0xff] }
 0x303   : > { %3020 = vmatmul.msk.bf16.gmra.mxu2 %vm1248_vm8, %v3225_v7 }
 0x30b   : > { %3105 = vmatmul.msk.bf16.gmra.mxu1 %vm1248_vm8, %v3229_v37  ;;  %3108 = vmatmul.msk.bf16.vlgmr.msrb.gmra.mxu3 %vm1248_vm8, %v3232_v23 }
 0x30c   : > { %2279 = vmatpush.bf16.msrb.mxu3 %v4176_v48 }
 0x30e   : > { %v1826_v38 = vpop.f32.mrf.mxu3 }
 0x313   : > { %3021 = vmatmul.msk.bf16.gmra.mxu2 %vm1248_vm8, %v3226_v12 }
 0x316   : > { %v4311_v42 = vpop.f32.mrf.mxu3 }
 0x31b   : > { %3106 = vmatmul.msk.bf16.gmra.mxu1 %vm1248_vm8, %v3230_v56  ;;  %3109 = vmatmul.msk.bf16.gmra.mxu3 %vm1248_vm8, %v3233_v21 }
 0x31e   : > { %v1831_v48 = vpop.f32.mrf.mxu3 }
 0x323   : > { %3022 = vmatmul.msk.bf16.gmra.mxu2 %vm1248_vm8, %v3227_v28 }
 0x326   : > { %v1833_v43 = vpop.f32.mrf.mxu3 }
 0x32b   : > { %3107 = vmatmul.msk.bf16.gmra.mxu1 %vm1248_vm8, %v3231_v29  ;;  %3110 = vmatmul.msk.bf16.gmra.mxu3 %vm1248_vm8, %v3234_v31 }
 0x32e   : > { %v1836_v40 = vpop.f32.mrf.mxu3 }
 0x333   : > { %3115 = vmatmul.msk.bf16.vlgmr.msra.gmra.mxu2 %vm1248_vm8, %v4078_v30 }
 0x336   : > { %v4335_v47 = vpop.f32.mrf.mxu3  ;;  %v1710_v10 = vpop.f32.mrf.mxu2 }
 0x337   : > { %v1827_v19 = vadd.f32 %v1826_v38, %v1710_v10 }
 0x33b   : > { %3111 = vmatmul.msk.bf16.gmra.mxu3 %vm1248_vm8, %v3235_v63  ;;  %3167 = vmatmul.msk.bf16.vlgmr.msrb.gmra.mxu1 %vm1248_vm8, %v4099_v0 }
 0x33e   : > { %v1841_v50 = vpop.f32.mrf.mxu3  ;;  %v4343_v33 = vpop.f32.mrf.mxu2 }
 0x343   : > { %3118 = vmatmul.msk.bf16.vlgmr.msrb.gmra.mxu2 %vm1248_vm8, %v4099_v0  ;;  %v2482_v0 = vsel %vm1252_vm7, %v4011_v13, 0 }
 0x346   : > { %v4347_v30 = vpop.f32.mrf.mxu3  ;;  %v1715_v45 = vpop.f32.mrf.mxu2 }
 0x347   : > { %v1832_v55 = vadd.f32 %v1831_v48, %v1715_v45 }
 0x34b   : > { %3116 = vmatmul.msk.bf16.vlgmr.msra.gmra.mxu3 %vm1248_vm8, %v4105_v1 }
 0x34c   : > { %2447 = vmatpush.bf16.msra.mxu3 %v4198_v49 }
 0x34e   : > { %v1846_v52 = vpop.f32.mrf.mxu3  ;;  %v1717_v34 = vpop.f32.mrf.mxu2 }
 0x356   : > { %v1848_v39 = vpop.f32.mrf.mxu3  ;;  %v1720_v61 = vpop.f32.mrf.mxu2 }
 0x357   : > { %v1837_v60 = vadd.f32 %v1836_v40, %v1720_v61 }
 0x35b   : > { %3119 = vmatmul.msk.bf16.vlgmr.msrb.gmra.mxu3 %vm1248_vm8, %v4090_v54 }
 0x35c   : > { %2491 = vmatpush.bf16.msrb.mxu3 %v2482_v0 }
 0x35e   : > { %v1851_v27 = vpop.f32.mrf.mxu3  ;;  %v1722_v57 = vpop.f32.mrf.mxu2 }
 0x35f   : > { %v1839_v28 = vadd.f32 %v4335_v47, %v1722_v57 }
 0x366   : > { %v1853_v53 = vpop.f32.mrf.mxu3  ;;  %v1725_v3 = vpop.f32.mrf.mxu2 }
 0x367   : > { %v1842_v35 = vadd.f32 %v1841_v50, %v1725_v3 }
 0x36b   : > { %3161 = vmatmul.msk.bf16.vlgmr.msra.gmra.mxu3 %vm1248_vm8, %v3959_v14 }
 0x36c   : > { %2519 = vmatpush.bf16.msra.mxu3 %v4207_v46  ;;  %v2164_v46 = vpop.f32.mrf.mxu0 }
 0x36e   : > { %v1856_v49 = vpop.f32.mrf.mxu3  ;;  %v4359_v32 = vpop.f32.mrf.mxu2 }
 0x374   : > { %v2175_v26 = vpop.f32.mrf.mxu0 }
 0x375   : > { %v2176_v58 = vadd.f32 %v2175_v26, %v2162_v16 }
 0x376   : > { %v1858_v59 = vpop.f32.mrf.mxu3  ;;  %v1730_v4 = vpop.f32.mrf.mxu2 }
 0x377   : > { %v1847_v8 = vadd.f32 %v1846_v52, %v1730_v4 }
 0x378   : > { %v2097_v2 = vpop.f32.mrf.mxu1 }
 0x379   : > { %v4361_v13 = vadd.f32 %v2097_v2, %v1827_v19 }
 0x37b   : > { %3163 = vmatmul.msk.bf16.vlgmr.msrb.gmra.mxu3 %vm1248_vm8, %v4031_v41  ;;  %v1834_v41 = vadd.f32 %v1833_v43, %v1717_v34 }
 0x37c   : > { %2566 = vmatpush.bf16.msrb.mxu3 %v4217_v11  ;;  %v2177_v5 = vpop.f32.mrf.mxu0 }
 0x37e   : > { %v1861_v9 = vpop.f32.mrf.mxu3  ;;  %v1732_v17 = vpop.f32.mrf.mxu2 }
 0x37f   : > { %v1849_v36 = vadd.f32 %v1848_v39, %v1732_v17 }
 0x380   : > { %v4366_v14 = vpop.f32.mrf.mxu1 }
 0x384   : > { %v2206_v56 = vpop.f32.mrf.mxu0 }
 0x386   : > { %v1863_v18 = vpop.f32.mrf.mxu3  ;;  %v1735_v15 = vpop.f32.mrf.mxu2 }
 0x387   : > { %v1852_v20 = vadd.f32 %v1851_v27, %v1735_v15 }
 0x388   : > { %v2102_v6 = vpop.f32.mrf.mxu1 }
 0x389   : > { %v4368_v51 = vadd.f32 %v2102_v6, %v1832_v55 }
 0x38b   : > { %3165 = vmatmul.msk.bf16.vlgmr.msra.gmra.mxu3 %vm1248_vm8, %v4105_v1 }
 0x38c   : > { %v2208_v40 = vpop.f32.mrf.mxu0 }
 0x38e   : > { %v2117_v62 = vpop.f32.mrf.mxu3  ;;  %v1737_v25 = vpop.f32.mrf.mxu2 }
 0x38f   : > { %v4372_v22 = vadd.f32 %v2117_v62, %v1847_v8  ;;  %v1854_v63 = vadd.f32 %v1853_v53, %v1737_v25 }
 0x390   : > { %v2104_v11 = vpop.f32.mrf.mxu1 }
 0x391   : > { %v4374_v24 = vadd.f32 %v2104_v11, %v1834_v41 }
 0x396   : > { %v2119_v7 = vpop.f32.mrf.mxu3  ;;  %v1740_v37 = vpop.f32.mrf.mxu2 }
 0x397   : > { %v4376_v23 = vadd.f32 %v2119_v7, %v1849_v36  ;;  %v1857_v38 = vadd.f32 %v1856_v49, %v1740_v37 }
 0x398   : > { %v2107_v12 = vpop.f32.mrf.mxu1 }
 0x399   : > { %v4378_v21 = vadd.f32 %v2107_v12, %v1837_v60  ;;  %v2253_v60 = vpop.f32.mrf.mxu0 }
 0x39b   : > { %3168 = vmatmul.msk.bf16.vlgmr.msrb.gmra.mxu3 %vm1248_vm8, %v4090_v54 }
 0x39e   : > { %v2122_v1 = vpop.f32.mrf.mxu3  ;;  %v1742_v48 = vpop.f32.mrf.mxu2 }
 0x39f   : > { %v4383_v43 = vadd.f32 %v2122_v1, %v1852_v20  ;;  %v1859_v29 = vadd.f32 %v1858_v59, %v1742_v48 }
 0x3a0   : > { %v2109_v31 = vpop.f32.mrf.mxu1 }
 0x3a1   : > { %v4385_v10 = vadd.f32 %v2109_v31, %v1839_v28  ;;  %v2255_v3 = vpop.f32.mrf.mxu0 }
 0x3a6   : > { %v2124_v19 = vpop.f32.mrf.mxu3  ;;  %v1745_v50 = vpop.f32.mrf.mxu2 }
 0x3a7   : > { %v4387_v45 = vadd.f32 %v2124_v19, %v1854_v63  ;;  %v1862_v55 = vadd.f32 %v1861_v9, %v1745_v50  ;;  %v3237_v19 = vld [vmem:[%s4514_s5 + $0xc8] sm:$0xff] }
 0x3a8   : > { %v2112_v52 = vpop.f32.mrf.mxu1 }
 0x3a9   : > { %v4389_v34 = vadd.f32 %v2112_v52, %v1842_v35  ;;  %v2300_v4 = vpop.f32.mrf.mxu0 }
 0x3ae   : > { %v2127_v54 = vpop.f32.mrf.mxu3  ;;  %v1747_v39 = vpop.f32.mrf.mxu2 }
 0x3af   : > { %v4391_v61 = vadd.f32 %v2127_v54, %v1857_v38  ;;  %v1864_v47 = vadd.f32 %v1863_v18, %v1747_v39  ;;  %v2210_v18 = vadd.f32 %v2206_v56, %v2176_v58  ;;  %v3236_v58 = vld [vmem:[%s4514_s5 + $0xc0] sm:$0xff] }
 0x3b0   : > { %v4405_v56 = vpop.f32.mrf.mxu1 }
 0x3b1   : > { %v2302_v16 = vpop.f32.mrf.mxu0 }
 0x3b6   : > { %v2129_v0 = vpop.f32.mrf.mxu3  ;;  %v2220_v27 = vpop.f32.mrf.mxu2 }
 0x3b7   : > { %v4393_v57 = vadd.f32 %v2129_v0, %v1859_v29  ;;  %v2224_v15 = vadd.f32 %v2220_v27, %v2210_v18 }
 0x3b8   : > { %v2554_v40 = vpop.f32.mrf.mxu1 }
 0x3b9   : > { %v2462_v46 = vpop.f32.mrf.mxu0 }
 0x3be   : > { %v2132_v53 = vpop.f32.mrf.mxu3  ;;  %v2222_v49 = vpop.f32.mrf.mxu2 }
 0x3bf   : > { %v4395_v59 = vadd.f32 %v2132_v53, %v1862_v55 }
 0x3c0   : > { %v2556_v55 = vpop.f32.mrf.mxu1 }
 0x3c1   : > { %v2464_v26 = vpop.f32.mrf.mxu0 }
 0x3c2   : > { %v3240_v26 = vld [vmem:[%s4514_s5 + $0xe0] sm:$0xff] }
 0x3c6   : > { %v2134_v8 = vpop.f32.mrf.mxu3  ;;  %v2267_v2 = vpop.f32.mrf.mxu2 }
 0x3c7   : > { %v4397_v35 = vadd.f32 %v2134_v8, %v1864_v47  ;;  %v3238_v47 = vld [vmem:[%s4514_s5 + $0xd0] sm:$0xff]  ;;  %v3239_v8 = vld [vmem:[%s4514_s5 + $0xd8] sm:$0xff] }
 0x3c9   : > { %v2507_v5 = vpop.f32.mrf.mxu0 }
 0x3ce   : > { %v2234_v9 = vpop.f32.mrf.mxu3  ;;  %v2269_v17 = vpop.f32.mrf.mxu2 }
 0x3cf   : > { %v2238_v20 = vadd.f32 %v2234_v9, %v2224_v15 }
 0x3d1   : > { %v2257_v62 = vadd.f32 %v2253_v60, %v2238_v20  ;;  %v2509_v1 = vpop.f32.mrf.mxu0 }
 0x3d3   : > { %v2271_v25 = vadd.f32 %v2267_v2, %v2257_v62  ;;  %v3244_v62 = vld [vmem:[%s4514_s5 + $0x100] sm:$0xff] }
 0x3d6   : > { %v2236_v6 = vpop.f32.mrf.mxu3 }
 0x3d9   : > { %v2540_v29 = vpop.f32.mrf.mxu0 }
 0x3de   : > { %v2281_v41 = vpop.f32.mrf.mxu3 }
 0x3df   : > { %v2285_v11 = vadd.f32 %v2281_v41, %v2271_v25  ;;  %v3245_v25 = vld [vmem:[%s4514_s5 + $0x108] sm:$0xff]  ;;  %v3242_v41 = vld [vmem:[%s4514_s5 + $0xf0] sm:$0xff] }
 0x3e1   : > { %v2304_v36 = vadd.f32 %v2300_v4, %v2285_v11  ;;  %v2542_v63 = vpop.f32.mrf.mxu0  ;;  %v3246_v11 = vld [vmem:[%s4514_s5 + $0x110] sm:$0xff] }
 0x3e2   : > { %v2746_v63 = vpop.permute.xlu2 %2745 }
 0x3e3   : > { %v2305_v7 = vadd.f32 %v2304_v36, %v4191_v44  ;;  %v3247_v36 = vld [vmem:[%s4514_s5 + $0x118] sm:$0xff] }
 0x3e5   : > { %v2306_v37 = vmax.f32 %v2305_v7, 0.0  ;;  %v3248_v7 = vld [vmem:[%s4514_s5 + $0x120] sm:$0xff] }
 0x3e6   : > { %v2283_v38 = vpop.f32.mrf.mxu3 }
 0x3e7   : > { %v2307_v12 = vpack.c.bf16 %v2306_v37, %v2306_v37  ;;  %v3249_v37 = vld [vmem:[%s4514_s5 + $0x128] sm:$0xff] }
 0x3e9   : > { %v2373_v48 = vsel %vm1252_vm7, %v2307_v12, 0  ;;  %v2587_v52 = vpop.f32.mrf.mxu0  ;;  %v3250_v12 = vld [vmem:[%s4514_s5 + $0x130] sm:$0xff] }
 0x3ea   : > { %2382 = vmatpush.bf16.msra.mxu2 %v2373_v48  ;;  %v3251_v48 = vld [vmem:[%s4514_s5 + $0x138] sm:$0xff] }
 0x3ed   : > { %3153 = vmatmul.msk.bf16.vlgmr.msra.gmra.mxu2 %vm1248_vm8, %v3236_v58 }
 0x3ee   : > { %v2449_v28 = vpop.f32.mrf.mxu3 }
 0x3ef   : > { %v2463_v60 = vadd.f32 %v2462_v46, %v2449_v28 }
 0x3f1   : > { %v2589_v39 = vpop.f32.mrf.mxu0 }
 0x3f6   : > { %v2451_v31 = vpop.f32.mrf.mxu3 }
 0x3fd   : > { %3154 = vmatmul.msk.bf16.gmra.mxu2 %vm1248_vm8, %v3237_v19  ;;  %v1829_v19 = vadd.f32 %v4311_v42, %v4343_v33 }
 0x3fe   : > { %v2493_v50 = vpop.f32.mrf.mxu3 }
 0x3ff   : > { %v2497_v27 = vadd.f32 %v2493_v50, %v2463_v60  ;;  %v2138_v55 = vadd.f32 %v4366_v14, %v1829_v19  ;;  %v2751_v60 = vpop.permute.xlu0 %2750 }
 0x401   : > { %v2511_v3 = vadd.f32 %v2507_v5, %v2497_v27  ;;  %v3243_v5 = vld [vmem:[%s4514_s5 + $0xf8] sm:$0xff] }
 0x406   : > { %v2495_v54 = vpop.f32.mrf.mxu3 }
 0x40d   : > { %3155 = vmatmul.msk.bf16.gmra.mxu2 %vm1248_vm8, %v3238_v47 }
 0x40e   : > { %v2521_v0 = vpop.f32.mrf.mxu3 }
 0x40f   : > { %v2525_v53 = vadd.f32 %v2521_v0, %v2511_v3 }
 0x411   : > { %v2544_v4 = vadd.f32 %v2540_v29, %v2525_v53 }
 0x413   : > { %v2558_v2 = vadd.f32 %v2554_v40, %v2544_v4 }
 0x416   : > { %v2523_v49 = vpop.f32.mrf.mxu3 }
 0x417   : > { %v2756_v49 = vpop.permute.xlu1 %2755 }
 0x41d   : > { %3156 = vmatmul.msk.bf16.gmra.mxu2 %vm1248_vm8, %v3239_v8  ;;  %v2761_v8 = vpop.permute.xlu2 %2760 }
 0x41e   : > { %v2568_v16 = vpop.f32.mrf.mxu3 }
 0x41f   : > { %v2572_v9 = vadd.f32 %v2568_v16, %v2558_v2 }
 0x421   : > { %v2591_v17 = vadd.f32 %v2587_v52, %v2572_v9 }
 0x423   : > { %v2592_v46 = vadd.f32 %v2591_v17, %v4191_v44  ;;  %v3241_v44 = vld [vmem:[%s4514_s5 + $0xe8] sm:$0xff] }
 0x425   : > { %v2593_v18 = vmax.f32 %v2592_v46, 0.0 }
 0x426   : > { %v2570_v15 = vpop.f32.mrf.mxu3 }
 0x427   : > { %v2594_v20 = vpack.c.bf16 %v2593_v18, %v2593_v18  ;;  %v2766_v18 = vpop.permute.xlu0 %2765 }
 0x429   : > { %v2660_v6 = vsel %vm1252_vm7, %v2594_v20, 0 }
 0x42a   : > { %2669 = vmatpush.bf16.msra.mxu1 %v2660_v6 }
 0x42d   : > { %3157 = vmatmul.msk.bf16.gmra.mxu2 %vm1248_vm8, %v3240_v26  ;;  %3202 = vmatmul.msk.bf16.vlgmr.msra.gmra.mxu1 %vm1248_vm8, %v3244_v62  ;;  %v2771_v62 = vpop.permute.xlu1 %2770 }
 0x43d   : > { %3158 = vmatmul.msk.bf16.gmra.mxu2 %vm1248_vm8, %v3241_v44  ;;  %3203 = vmatmul.msk.bf16.gmra.mxu1 %vm1248_vm8, %v3245_v25 }
 0x44d   : > { %3159 = vmatmul.msk.bf16.gmra.mxu2 %vm1248_vm8, %v3242_v41  ;;  %3204 = vmatmul.msk.bf16.gmra.mxu1 %vm1248_vm8, %v3246_v11 }
 0x45d   : > { %3160 = vmatmul.msk.bf16.gmra.mxu2 %vm1248_vm8, %v3243_v5  ;;  %3205 = vmatmul.msk.bf16.gmra.mxu1 %vm1248_vm8, %v3247_v36  ;;  %v2776_v5 = vpop.permute.xlu2 %2775 }
 0x46d   : > { %3206 = vmatmul.msk.bf16.gmra.mxu1 %vm1248_vm8, %v3248_v7 }
 0x470   : > { %v2384_v38 = vpop.f32.mrf.mxu2 }
 0x471   : > { %v2424_v29 = vadd.f32 %v2384_v38, %v4361_v13 }
 0x478   : > { %v2386_v1 = vpop.f32.mrf.mxu2 }
 0x479   : > { %v2425_v54 = vadd.f32 %v2386_v1, %v2138_v55  ;;  %v2781_v1 = vpop.permute.xlu0 %2780 }
 0x47d   : > { %3207 = vmatmul.msk.bf16.gmra.mxu1 %vm1248_vm8, %v3249_v37 }
 0x480   : > { %v2389_v58 = vpop.f32.mrf.mxu2 }
 0x481   : > { %v2426_v27 = vadd.f32 %v2389_v58, %v4368_v51 }
 0x488   : > { %v2391_v28 = vpop.f32.mrf.mxu2 }
 0x489   : > { %v2427_v42 = vadd.f32 %v2391_v28, %v4374_v24 }
 0x48d   : > { %3208 = vmatmul.msk.bf16.gmra.mxu1 %vm1248_vm8, %v3250_v12 }
 0x490   : > { %v2394_v52 = vpop.f32.mrf.mxu2 }
 0x491   : > { %v2428_v9 = vadd.f32 %v2394_v52, %v4378_v21  ;;  %v1844_v21 = vadd.f32 %v4347_v30, %v4359_v32 }
 0x493   : > { %v2144_v7 = vadd.f32 %v4405_v56, %v1844_v21 }
 0x498   : > { %v2396_v13 = vpop.f32.mrf.mxu2 }
 0x499   : > { %v2429_v20 = vadd.f32 %v2396_v13, %v4385_v10 }
 0x49d   : > { %3209 = vmatmul.msk.bf16.gmra.mxu1 %vm1248_vm8, %v3251_v48 }
 0x4a0   : > { %v2399_v2 = vpop.f32.mrf.mxu2 }
 0x4a1   : > { %v2430_v25 = vadd.f32 %v2399_v2, %v4389_v34 }
 0x4a8   : > { %v2401_v15 = vpop.f32.mrf.mxu2 }
 0x4a9   : > { %v2431_v37 = vadd.f32 %v2401_v15, %v2144_v7 }
 0x4aa   : > { %v2671_v31 = vpop.f32.mrf.mxu1 }
 0x4ab   : > { %v2711_v40 = vadd.f32 %v2671_v31, %v2424_v29  ;;  %v2786_v29 = vpop.permute.xlu1 %2785 }
 0x4ad   : > { %v2823_v50 = vadd.f32 %v2746_v63, %v2711_v40  ;;  %v2791_v63 = vpop.permute.xlu2 %2790 }
 0x4af   : > { %2839 = vxpose.xlu0.b32.start [1/16] (narrow) %v2823_v50, 8 }
 0x4b0   : > { %v2404_v44 = vpop.f32.mrf.mxu2 }
 0x4b1   : > { %v2432_v58 = vadd.f32 %v2404_v44, %v4372_v22 }
 0x4b2   : > { %v2673_v39 = vpop.f32.mrf.mxu1 }
 0x4b3   : > { %v2712_v47 = vadd.f32 %v2673_v39, %v2425_v54  ;;  %v2796_v39 = vpop.permute.xlu0 %2795  ;;  %v2801_v13 = vpop.permute.xlu1 %2800 }
 0x4b5   : > { %v2824_v0 = vadd.f32 %v2751_v60, %v2712_v47 }
 0x4b7   : > { %2840 = vxpose.xlu0.b32.cont [2/16] (narrow) %v2824_v0, 8 }
 0x4b8   : > { %v2406_v10 = vpop.f32.mrf.mxu2 }
 0x4b9   : > { %v2433_v30 = vadd.f32 %v2406_v10, %v4376_v23 }
 0x4ba   : > { %v2676_v3 = vpop.f32.mrf.mxu1 }
 0x4bb   : > { %v2713_v53 = vadd.f32 %v2676_v3, %v2426_v27  ;;  %v2811_v2 = vpop.permute.xlu0 %2810 }
 0x4bd   : > { %v2825_v4 = vadd.f32 %v2756_v49, %v2713_v53 }
 0x4bf   : > { %2841 = vxpose.xlu0.b32.cont [3/16] (narrow) %v2825_v4, 8 }
 0x4c0   : > { %v2409_v31 = vpop.f32.mrf.mxu2 }
 0x4c1   : > { %v2434_v55 = vadd.f32 %v2409_v31, %v4383_v43 }
 0x4c2   : > { %v2678_v33 = vpop.f32.mrf.mxu1 }
 0x4c3   : > { %v2714_v14 = vadd.f32 %v2678_v33, %v2427_v42  ;;  %v2806_v42 = vpop.permute.xlu2 %2805 }
 0x4c5   : > { %v2826_v16 = vadd.f32 %v2761_v8, %v2714_v14 }
 0x4c7   : > { %2842 = vxpose.xlu0.b32.cont [4/16] (narrow) %v2826_v16, 8 }
 0x4c8   : > { %v2411_v50 = vpop.f32.mrf.mxu2 }
 0x4c9   : > { %v2435_v60 = vadd.f32 %v2411_v50, %v4387_v45 }
 0x4ca   : > { %v2681_v17 = vpop.f32.mrf.mxu1 }
 0x4cb   : > { %v2715_v46 = vadd.f32 %v2681_v17, %v2428_v9 }
 0x4cd   : > { %v2827_v51 = vadd.f32 %v2766_v18, %v2715_v46  ;;  %v2816_v46 = vpop.permute.xlu1 %2815 }
 0x4cf   : > { %2843 = vxpose.xlu0.b32.cont [5/16] (narrow) %v2827_v51, 8 }
 0x4d0   : > { %v2414_v47 = vpop.f32.mrf.mxu2 }
 0x4d1   : > { %v2436_v3 = vadd.f32 %v2414_v47, %v4391_v61 }
 0x4d2   : > { %v2683_v6 = vpop.f32.mrf.mxu1 }
 0x4d3   : > { %v2716_v26 = vadd.f32 %v2683_v6, %v2429_v20  ;;  %v2821_v6 = vpop.permute.xlu2 %2820 }
 0x4d5   : > { %v2828_v24 = vadd.f32 %v2771_v62, %v2716_v26 }
 0x4d7   : > { %2844 = vxpose.xlu0.b32.cont [6/16] (narrow) %v2828_v24, 8 }
 0x4d8   : > { %v2416_v53 = vpop.f32.mrf.mxu2 }
 0x4d9   : > { %v2437_v33 = vadd.f32 %v2416_v53, %v4393_v57 }
 0x4da   : > { %v2686_v41 = vpop.f32.mrf.mxu1 }
 0x4db   : > { %v2717_v11 = vadd.f32 %v2686_v41, %v2430_v25 }
 0x4dd   : > { %v2829_v36 = vadd.f32 %v2776_v5, %v2717_v11 }
 0x4df   : > { %2845 = vxpose.xlu0.b32.cont [7/16] (narrow) %v2829_v36, 8 }
 0x4e0   : > { %v2419_v16 = vpop.f32.mrf.mxu2 }
 0x4e1   : > { %v2438_v9 = vadd.f32 %v2419_v16, %v4395_v59 }
 0x4e2   : > { %v2688_v38 = vpop.f32.mrf.mxu1 }
 0x4e3   : > { %v2718_v12 = vadd.f32 %v2688_v38, %v2431_v37 }
 0x4e5   : > { %v2830_v48 = vadd.f32 %v2781_v1, %v2718_v12 }
 0x4e7   : > { %2846 = vxpose.xlu0.b32.cont [8/16] (narrow) %v2830_v48, 8 }
 0x4e8   : > { %v2421_v51 = vpop.f32.mrf.mxu2 }
 0x4e9   : > { %v2439_v15 = vadd.f32 %v2421_v51, %v4397_v35 }
 0x4ea   : > { %v2691_v34 = vpop.f32.mrf.mxu1 }
 0x4eb   : > { %v2719_v28 = vadd.f32 %v2691_v34, %v2432_v58 }
 0x4ed   : > { %v2831_v40 = vadd.f32 %v2786_v29, %v2719_v28 }
 0x4ef   : > { %2847 = vxpose.xlu0.b32.cont [9/16] (narrow) %v2831_v40, 8 }
 0x4f2   : > { %v2693_v32 = vpop.f32.mrf.mxu1 }
 0x4f3   : > { %v2720_v56 = vadd.f32 %v2693_v32, %v2433_v30 }
 0x4f5   : > { %v2832_v19 = vadd.f32 %v2791_v63, %v2720_v56 }
 0x4f7   : > { %2848 = vxpose.xlu0.b32.cont [10/16] (narrow) %v2832_v19, 8 }
 0x4fa   : > { %v2696_v52 = vpop.f32.mrf.mxu1 }
 0x4fb   : > { %v2721_v54 = vadd.f32 %v2696_v52, %v2434_v55 }
 0x4fd   : > { %v2833_v22 = vadd.f32 %v2796_v39, %v2721_v54 }
 0x4ff   : > { %2849 = vxpose.xlu0.b32.cont [11/16] (narrow) %v2833_v22, 8 }
 0x502   : > { %v2698_v0 = vpop.f32.mrf.mxu1 }
 0x503   : > { %v2722_v27 = vadd.f32 %v2698_v0, %v2435_v60 }
 0x505   : > { %v2834_v23 = vadd.f32 %v2801_v13, %v2722_v27 }
 0x507   : > { %2850 = vxpose.xlu0.b32.cont [12/16] (narrow) %v2834_v23, 8 }
 0x50a   : > { %v2701_v49 = vpop.f32.mrf.mxu1 }
 0x50b   : > { %v2723_v4 = vadd.f32 %v2701_v49, %v2436_v3 }
 0x50d   : > { %v2835_v43 = vadd.f32 %v2806_v42, %v2723_v4 }
 0x50f   : > { %2851 = vxpose.xlu0.b32.cont [13/16] (narrow) %v2835_v43, 8 }
 0x512   : > { %v2703_v14 = vpop.f32.mrf.mxu1 }
 0x513   : > { %v2724_v8 = vadd.f32 %v2703_v14, %v2437_v33 }
 0x515   : > { %v2836_v45 = vadd.f32 %v2811_v2, %v2724_v8 }
 0x517   : > { %2852 = vxpose.xlu0.b32.cont [14/16] (narrow) %v2836_v45, 8 }
 0x51a   : > { %v2706_v17 = vpop.f32.mrf.mxu1 }
 0x51b   : > { %v2725_v61 = vadd.f32 %v2706_v17, %v2438_v9 }
 0x51d   : > { %v2837_v18 = vadd.f32 %v2816_v46, %v2725_v61 }
 0x51f   : > { %2853 = vxpose.xlu0.b32.cont [15/16] (narrow) %v2837_v18, 8 }
 0x522   : > { %v2708_v20 = vpop.f32.mrf.mxu1 }
 0x523   : > { %v2726_v57 = vadd.f32 %v2708_v20, %v2439_v15 }
 0x525   : > { %v2838_v26 = vadd.f32 %v2821_v6, %v2726_v57 }
 0x527   : > { %2854 = vxpose.xlu0.b32.end [16/16] (narrow) %v2838_v26, 8 }
 0x553   : > { %v2855_v59 = vpop.trf.xlu0 }
 0x554   : > { %2871 = vst [vmem:[%s366_s19] sm:$0x1f] %v2855_v59 }
 0x555 PF: > { %s17_s28 = sadd.s32 1, %s3419_s28   ;;  %s4517_s24 = smov %s3407_s25 }
 0x556   : > { %p14_p10 = scmp.ge.s32.totalorder %s17_s28, 4   ;;  %s4518_s25 = smov %s3499_s9 }
 0x557   : > { %s4519_s26 = smov %s3415_s27  ;;  %s4520_s27 = smov %s4522_s29 }
 0x558   :  { %16 = sbr.rel (!%p14_p10) target bundleno = 3 (0x3), region = 121 }

</bundles_post_ra>
